<compile_context>
chip_gen: v5e
topology: v5e:2x2
jax: 0.10.0
libtpu: 0.0.40
codegen_flags: <defaults>
</compile_context>

<pallas_src>
import jax
import jax.numpy as jnp
from jax.experimental import pallas as pl
from jax.experimental.pallas import tpu as pltpu


# ----------------------------------------------------------------------------
# Tiling / VMEM planning
# ----------------------------------------------------------------------------
def _round_up(x, m):
  return (x + m - 1) // m * m


def _vmem_budget():
  """VMEM limit ≈ 75% of physical capacity (leaves compiler scratch headroom).

  Falls back to the smallest generation (v7x, 64 MiB) if the query fails, so
  the same code stays safe on v5e/v6e (128 MiB) and v7x (64 MiB).
  """
  cap = 64 << 20
  try:
    cap = int(pltpu.get_tpu_info().vmem_capacity_bytes)
  except Exception:  # pragma: no cover - query not available
    pass
  return max(min(cap * 3 // 4, cap - (12 << 20)), 16 << 20)


def _plan_rows(rows, per_row_bytes, fixed_bytes, budget):
  """Pick (TR, padded_rows).

  TR is a multiple of 16 (bf16 sublane packing), the grid has >= 2 steps
  whenever rows > 16 (v7x: split rows across two TensorCores and give the
  pipeline something to overlap), and the double-buffered working set stays
  inside the VMEM budget. Rows are padded up to a tileable multiple instead of
  falling back to one huge block.
  """
  if rows <= 16:
    return rows, rows
  avail = max(budget - fixed_bytes, 2 << 20)
  cap = max(16, min(avail // max(per_row_bytes, 1), 4096))
  cap -= cap % 16
  cap = max(cap, 16)
  half = max(16, (rows // 2) - (rows // 2) % 16)
  tr0 = min(cap, half)
  grid = -(-rows // tr0)
  tr = _round_up(-(-rows // grid), 16)
  return tr, tr * grid


def _pad_rows(x, rows_padded, axis):
  pad = rows_padded - x.shape[axis]
  if pad == 0:
    return x
  cfg = [(0, 0)] * x.ndim
  cfg[axis] = (0, pad)
  return jnp.pad(x, cfg)


def _param_bytes(params):
  return sum(W.size * W.dtype.itemsize + b.size * b.dtype.itemsize
             for W, b in params)


def _add_const(arr, in_specs, args):
  """Append a grid-invariant (weight/bias) input."""
  nd = arr.ndim
  in_specs.append(pl.BlockSpec(arr.shape, lambda i, _nd=nd: (0,) * _nd))
  args.append(arr)


# ----------------------------------------------------------------------------
# Pallas kernels
# ----------------------------------------------------------------------------
def pallas_edge_mlp_mean(nb_knc, q_pos, params, rel_dim):
  """Edge MLP + mean over K neighbors (InteractionNetworkNeighborhood hot path).

  nb_knc: (K, R, Cf) bf16 gathered neighbor features, k-major; the first
  `rel_dim` channels are the neighbor positions, so the relative position is
  computed in-kernel (no [rel || feat] concat in HBM).  The first MLP layer is
  a split-weight sum rel@W_rel + nb@W_fea.  The K axis is folded into the
  matmul M dimension.  Returns (R, Cout) f32.
  """
  K, R, Cf = nb_knc.shape
  D = rel_dim
  n_layers = len(params)
  Cout = params[-1][0].shape[1]
  h_max = max(W.shape[1] for W, _ in params)

  budget = _vmem_budget()
  per_row = (2 * (K * Cf * 2 + D * 4)        # double-buffered input blocks
             + 2 * Cout * 4                  # double-buffered output block
             + K * (Cf * 2 + h_max * 6))     # live f32 + bf16 activations
  fixed = 2 * _param_bytes(params) + (4 << 20)
  TR, Rp = _plan_rows(R, per_row, fixed, budget)
  grid = Rp // TR

  nb_p = _pad_rows(nb_knc, Rp, 1)
  qp_p = _pad_rows(q_pos, Rp, 0)

  # Split the first-layer weight XLA-side: rows [0:D] act on rel, [D:] on nb.
  W0, b0 = params[0]
  w0r, w0f = W0[:D], W0[D:]

  def kernel(nb_ref, qp_ref, w0r_ref, w0f_ref, b0_ref, *refs):
    rest = refs[:2 * (n_layers - 1)]
    o_ref = refs[2 * (n_layers - 1)]
    nb = nb_ref[...]                                         # (K, TR, Cf) bf16
    rel = nb[:, :, :D].astype(jnp.float32) - qp_ref[...][None]
    rel = rel.reshape(K * TR, D).astype(jnp.bfloat16)
    nb_flat = nb.reshape(K * TR, Cf)                         # fold K into rows
    h = (jnp.dot(rel, w0r_ref[...], preferred_element_type=jnp.float32)
         + jnp.dot(nb_flat, w0f_ref[...], preferred_element_type=jnp.float32)
         + b0_ref[...])
    for i in range(n_layers - 1):
      h = jnp.maximum(h, 0.0)
      h = jnp.dot(h.astype(jnp.bfloat16), rest[2 * i][...],
                  preferred_element_type=jnp.float32) + rest[2 * i + 1][...]
    h = h.reshape(K, TR, Cout)
    o_ref[...] = (jnp.sum(h, axis=0) * (1.0 / K)).astype(o_ref.dtype)

  in_specs = [pl.BlockSpec((K, TR, Cf), lambda i: (0, i, 0)),
              pl.BlockSpec((TR, D), lambda i: (i, 0))]
  args = [nb_p, qp_p]
  _add_const(w0r, in_specs, args)
  _add_const(w0f, in_specs, args)
  _add_const(b0, in_specs, args)
  for W, b in params[1:]:
    _add_const(W, in_specs, args)
    _add_const(b, in_specs, args)

  out = pl.pallas_call(
      kernel,
      out_shape=jax.ShapeDtypeStruct((Rp, Cout), jnp.float32),
      grid=(grid,),
      in_specs=in_specs,
      out_specs=pl.BlockSpec((TR, Cout), lambda i: (i, 0)),
      compiler_params=pltpu.CompilerParams(
          dimension_semantics=("parallel",) if grid > 1 else ("arbitrary",),
          vmem_limit_bytes=budget),
  )(*args)
  return out[:R] if Rp != R else out


def pallas_time_edge_combine(nb_tnc, q_time, key_flat, space_flat,
                             edge_params, comb_params, rel_dim):
  """Fused layer tail: time edge-MLP + mean over T, then combine MLP.

  No concatenation anywhere: rel comes from the first `rel_dim` channels of the
  gathered features, and the combine MLP's first layer is split into three row
  blocks (key @ Wk + space @ Ws + time_nei @ Wt + b) instead of
  concat([key, space, time]) @ W.  One pallas_call replaces edge-MLP + concat +
  SetTransform.  Returns (R, Cout) f32.
  """
  T, R, Cft = nb_tnc.shape
  Dt = rel_dim
  Ck = key_flat.shape[1]
  Cs = space_flat.shape[1]
  n_e = len(edge_params)
  n_c = len(comb_params)
  Cmid = edge_params[-1][0].shape[1]
  Cout = comb_params[-1][0].shape[1]
  he_max = max(W.shape[1] for W, _ in edge_params)
  hc_max = max(W.shape[1] for W, _ in comb_params)

  budget = _vmem_budget()
  per_row = (2 * (T * Cft * 2 + Dt * 4 + (Ck + Cs) * 2)  # double-buffered inputs
             + 2 * Cout * 4                              # double-buffered output
             + T * (Cft * 2 + he_max * 6)                # live edge activations
             + Cmid * 6 + hc_max * 6)                    # live combine activations
  fixed = 2 * (_param_bytes(edge_params) + _param_bytes(comb_params)) + (4 << 20)
  TR, Rp = _plan_rows(R, per_row, fixed, budget)
  grid = Rp // TR

  nb_p = _pad_rows(nb_tnc, Rp, 1)
  qt_p = _pad_rows(q_time, Rp, 0)
  k_p = _pad_rows(key_flat, Rp, 0)
  s_p = _pad_rows(space_flat, Rp, 0)

  We0, be0 = edge_params[0]
  Wc0, bc0 = comb_params[0]
  e_w0r, e_w0f = We0[:Dt], We0[Dt:]
  c_wk, c_ws, c_wt = Wc0[:Ck], Wc0[Ck:Ck + Cs], Wc0[Ck + Cs:]

  def kernel(nb_ref, qt_ref, k_ref, s_ref, *refs):
    ne_rest = 2 * (n_e - 1)
    nc_rest = 2 * (n_c - 1)
    e_w0r_ref, e_w0f_ref, e_b0_ref = refs[0], refs[1], refs[2]
    e_rest = refs[3:3 + ne_rest]
    c_wk_ref, c_ws_ref, c_wt_ref, c_b0_ref = refs[3 + ne_rest:7 + ne_rest]
    c_rest = refs[7 + ne_rest:7 + ne_rest + nc_rest]
    o_ref = refs[7 + ne_rest + nc_rest]

    nb = nb_ref[...]                                         # (T, TR, Cft) bf16
    rel = nb[:, :, :Dt].astype(jnp.float32) - qt_ref[...][None]
    rel = rel.reshape(T * TR, Dt).astype(jnp.bfloat16)
    nb_flat = nb.reshape(T * TR, Cft)                        # fold T into rows
    h = (jnp.dot(rel, e_w0r_ref[...], preferred_element_type=jnp.float32)
         + jnp.dot(nb_flat, e_w0f_ref[...], preferred_element_type=jnp.float32)
         + e_b0_ref[...])
    for i in range(n_e - 1):
      h = jnp.maximum(h, 0.0)
      h = jnp.dot(h.astype(jnp.bfloat16), e_rest[2 * i][...],
                  preferred_element_type=jnp.float32) + e_rest[2 * i + 1][...]
    time_nei = jnp.sum(h.reshape(T, TR, Cmid), axis=0) * (1.0 / T)   # (TR, Cmid)

    # Combine MLP, concat-free (split first-layer weight).
    c = (jnp.dot(k_ref[...], c_wk_ref[...], preferred_element_type=jnp.float32)
         + jnp.dot(s_ref[...], c_ws_ref[...], preferred_element_type=jnp.float32)
         + jnp.dot(time_nei.astype(jnp.bfloat16), c_wt_ref[...],
                   preferred_element_type=jnp.float32)
         + c_b0_ref[...])
    for i in range(n_c - 1):
      c = jnp.maximum(c, 0.0)
      c = jnp.dot(c.astype(jnp.bfloat16), c_rest[2 * i][...],
                  preferred_element_type=jnp.float32) + c_rest[2 * i + 1][...]
    o_ref[...] = c.astype(o_ref.dtype)

  in_specs = [pl.BlockSpec((T, TR, Cft), lambda i: (0, i, 0)),
              pl.BlockSpec((TR, Dt), lambda i: (i, 0)),
              pl.BlockSpec((TR, Ck), lambda i: (i, 0)),
              pl.BlockSpec((TR, Cs), lambda i: (i, 0))]
  args = [nb_p, qt_p, k_p, s_p]
  _add_const(e_w0r, in_specs, args)
  _add_const(e_w0f, in_specs, args)
  _add_const(be0, in_specs, args)
  for W, b in edge_params[1:]:
    _add_const(W, in_specs, args)
    _add_const(b, in_specs, args)
  _add_const(c_wk, in_specs, args)
  _add_const(c_ws, in_specs, args)
  _add_const(c_wt, in_specs, args)
  _add_const(bc0, in_specs, args)
  for W, b in comb_params[1:]:
    _add_const(W, in_specs, args)
    _add_const(b, in_specs, args)

  out = pl.pallas_call(
      kernel,
      out_shape=jax.ShapeDtypeStruct((Rp, Cout), jnp.float32),
      grid=(grid,),
      in_specs=in_specs,
      out_specs=pl.BlockSpec((TR, Cout), lambda i: (i, 0)),
      compiler_params=pltpu.CompilerParams(
          dimension_semantics=("parallel",) if grid > 1 else ("arbitrary",),
          vmem_limit_bytes=budget),
  )(*args)
  return out[:R] if Rp != R else out


# ----------------------------------------------------------------------------
# Glue: neighborhoods, time encoding, module wiring (plain JAX)
# ----------------------------------------------------------------------------
class TimeEncoder:
  """Deterministic sinusoidal time encoder with `out_dim` frequencies."""

  def __init__(self, out_dim):
    self.out_dim = out_dim
    self.freqs = (2.0 ** jnp.arange(out_dim, dtype=jnp.float32)) * 0.25

  def encode(self, t):
    # t: (B, N) scalar times -> (B, N, out_dim)
    return jnp.sin(t[..., None] * self.freqs)


def knn_indices(q_pos, k_pos, k):
  """(B,Q,D) x (B,N,D) -> (B,Q,K) nearest-key indices."""
  # TODO(synk): top-k neighbor selection stays in plain JAX; a Pallas tiled
  #   distance/top-k kernel only pays off at much larger N.
  d2 = jnp.sum((q_pos[:, :, None, :] - k_pos[:, None, :, :]) ** 2, axis=-1)
  _, idx = jax.lax.top_k(-d2, k)
  return idx


def gather_kmajor(feats, idx):
  """feats (B,N,C), idx (B,Q,K) -> (K,B,Q,C): gather lands directly in the
  k-major layout the kernels consume (no moveaxis of the big edge tensor)."""
  b_idx = jnp.arange(feats.shape[0])[None, :, None]
  idx_t = jnp.transpose(idx, (2, 0, 1))            # tiny int32 transpose
  return feats[b_idx, idx_t]


def gather_edges_bf16(feat_table, idx):
  """(B,N,C) f32 table + (B,Q,K) idx -> (K, B*Q, C) bf16 neighbor features.

  The cast happens on the small pre-gather table, so the K×-duplicated tensor
  is written to / read from HBM in bf16 (half the dominant traffic).
  """
  K = idx.shape[-1]
  B, Qn = idx.shape[0], idx.shape[1]
  nb = gather_kmajor(feat_table.astype(jnp.bfloat16), idx)   # (K,B,Q,C) bf16
  return nb.reshape(K, B * Qn, -1)


def temporal_interaction_forward(params, data, ids, space_pts, time_pts,
                                 query_pts, time_encoder, neighbors, timesteps):
  """Mirrors TemporalInteraction.forward (query_type='time'); `ids` unused."""
  del ids
  B, N, _ = data.shape
  Q = query_pts.shape[1]
  key_feats = data
  enc_time = time_encoder.encode(time_pts)                        # (B,N,Te)
  enc_query = time_encoder.encode(query_pts)                      # (B,Q,Te)
  pos_dim = space_pts.shape[-1]
  t_dim = enc_time.shape[-1]

  # kNN tables depend only on (fixed) positions -> compute once, reuse per layer.
  space_idx = knn_indices(space_pts, space_pts, neighbors)        # (B,N,K)
  time_idx = knn_indices(enc_time, enc_time, timesteps)           # (B,N,T)
  target_idx = knn_indices(enc_query, enc_time, timesteps)        # (B,Q,T)

  space_qpos = space_pts.reshape(B * N, pos_dim)                  # f32, small
  time_qpos = enc_time.reshape(B * N, t_dim)                      # f32, small

  # encode_input
  for sp, tp, cp in zip(params["space"], params["time"], params["comb"]):
    # Space conv: neighbor features = [space_pts || key_feats] (tiny concat,
    # pre-gather); rel is derived in-kernel from the first pos_dim channels.
    space_in = jnp.concatenate([space_pts, key_feats], axis=-1)
    space_nb = gather_edges_bf16(space_in, space_idx)             # (K,B*N,·) bf16
    space_nei = pallas_edge_mlp_mean(space_nb, space_qpos, sp,
                                     rel_dim=pos_dim).reshape(B, N, -1)

    # Fused time edge-MLP + mean + combine MLP (concat-free, split weights).
    time_in = jnp.concatenate([enc_time, key_feats, space_nei], axis=-1)
    time_nb = gather_edges_bf16(time_in, time_idx)                # (T,B*N,·) bf16
    key_feats = pallas_time_edge_combine(
        time_nb, time_qpos,
        key_feats.reshape(B * N, -1).astype(jnp.bfloat16),
        space_nei.reshape(B * N, -1).astype(jnp.bfloat16),
        tp, cp, rel_dim=t_dim).reshape(B, N, -1)

  # encode_queries (query_type='time')
  target_in = jnp.concatenate([enc_time, key_feats], axis=-1)
  target_nb = gather_edges_bf16(target_in, target_idx)            # (T,B*Q,·) bf16
  query_feats = pallas_edge_mlp_mean(target_nb,
                                     enc_query.reshape(B * Q, t_dim),
                                     params["target"], rel_dim=t_dim)
  return query_feats.reshape(B, Q, -1)


# ----------------------------------------------------------------------------
# Deterministic parameter construction (weights pre-cast to bf16 once)
# ----------------------------------------------------------------------------
def init_mlp(key, sizes):
  params = []
  for i in range(len(sizes) - 1):
    key, kw, kb = jax.random.split(key, 3)
    W = jax.random.normal(kw, (sizes[i], sizes[i + 1]), jnp.float32)
    W = (W / jnp.sqrt(jnp.float32(sizes[i]))).astype(jnp.bfloat16)
    b = 0.01 * jax.random.normal(kb, (1, sizes[i + 1]), jnp.float32)
    params.append((W, b))
  return key, params


def make_temporal_interaction_params(key, feat_size, edge_hidden, latent_sizes,
                                     neighborhood_sizes, combine_hidden,
                                     target_size, pos_dim, time_out):
  params = {"space": [], "time": [], "comb": []}
  in_size = feat_size
  for ls, n_sz in zip(latent_sizes, neighborhood_sizes):
    # space conv: c_in = in_size + pos_dim, rel-pos dim = pos_dim
    key, p = init_mlp(key, [pos_dim + (in_size + pos_dim)] + edge_hidden + [n_sz])
    params["space"].append(p)
    # time conv: c_in = in_size + n_sz + time_out, rel-pos dim = time_out
    key, p = init_mlp(key, [time_out + (time_out + in_size + n_sz)]
                      + edge_hidden + [n_sz])
    params["time"].append(p)
    # combine MLP: in_size + 2*n_sz -> combine_hidden -> ls
    key, p = init_mlp(key, [in_size + 2 * n_sz] + combine_hidden + [ls])
    params["comb"].append(p)
    in_size = ls
  # target conv: c_in = ls + query_dim, doubled edge hidden, out = target_size
  key, p = init_mlp(key, [time_out + (time_out + in_size)]
                    + [2 * h for h in edge_hidden] + [target_size])
  params["target"] = p
  return key, params


# ----------------------------------------------------------------------------
if __name__ == "__main__":
  # Module hyper-parameters (small, consistent with _make_modules).
  feat_size = 4
  edge_hidden = [16, 16]
  latent_sizes = [16, 32]
  neighborhood_sizes = [8, 8]
  neighbors = 4          # spatial kNN size
  timesteps = 8          # temporal kNN size
  combine_hidden = [32]
  target_size = 16
  pos_dim = 2
  time_out_dim = 8
  B, N, Q = 2, 16, 8

  tenc = TimeEncoder(time_out_dim)

  key = jax.random.PRNGKey(0)
  key, params = make_temporal_interaction_params(
      key, feat_size, edge_hidden, latent_sizes, neighborhood_sizes,
      combine_hidden, target_size, pos_dim, time_out_dim)

  key, kd, ks, kt, kq = jax.random.split(key, 5)
  data = jax.random.normal(kd, (B, N, feat_size), jnp.float32)
  space_pts = jax.random.normal(ks, (B, N, pos_dim), jnp.float32)
  time_pts = jax.random.uniform(kt, (B, N), jnp.float32, 0.0, 10.0)
  query_pts = jax.random.uniform(kq, (B, Q), jnp.float32, 0.0, 10.0)
  ids = jnp.tile(jnp.arange(N, dtype=jnp.int32)[None, :], (B, 1))  # unused

  # jit the whole forward so the XLA glue (top_k, gathers, tiny concats/casts)
  # between the pallas_calls is compiled once instead of dispatched eagerly.
  fwd = jax.jit(lambda p, d, sp, tp, qp: temporal_interaction_forward(
      p, d, ids, sp, tp, qp, tenc, neighbors, timesteps))

  out = fwd(params, data, space_pts, time_pts, query_pts)
  out = jax.block_until_ready(out)

  assert out.shape == (B, Q, target_size), out.shape
  assert jnp.all(jnp.isfinite(out))
  print("KERNEL_OK")
</pallas_src>

<mosaic_0001>
module attributes {stable_mosaic.version = 11 : i64} {
  func.func @kernel(%arg0: i32, %arg1: memref<4x16x6xbf16, #tpu.memory_space<vmem>>, %arg2: memref<16x2xf32, #tpu.memory_space<vmem>>, %arg3: memref<2x16xbf16, #tpu.memory_space<vmem>>, %arg4: memref<6x16xbf16, #tpu.memory_space<vmem>>, %arg5: memref<1x16xf32, #tpu.memory_space<vmem>>, %arg6: memref<16x16xbf16, #tpu.memory_space<vmem>>, %arg7: memref<1x16xf32, #tpu.memory_space<vmem>>, %arg8: memref<16x8xbf16, #tpu.memory_space<vmem>>, %arg9: memref<1x8xf32, #tpu.memory_space<vmem>>, %arg10: memref<16x8xf32, #tpu.memory_space<vmem>>) attributes {dimension_semantics = [#tpu.dimension_semantics<parallel>], iteration_bounds = array<i64: 2>, scalar_prefetch = 0 : i64, scratch_operands = 0 : i64, tpu.core_type = #tpu.core_type<tc>, window_params = [{transform_indices = @transform_0, window_bounds = array<i64: 4, 16, 6>}, {transform_indices = @transform_1, window_bounds = array<i64: 16, 2>}, {pipeline_mode = #tpu.pipeline_mode<synchronous>, transform_indices = @transform_2, window_bounds = array<i64: 2, 16>}, {pipeline_mode = #tpu.pipeline_mode<synchronous>, transform_indices = @transform_3, window_bounds = array<i64: 6, 16>}, {pipeline_mode = #tpu.pipeline_mode<synchronous>, transform_indices = @transform_4, window_bounds = array<i64: 1, 16>}, {pipeline_mode = #tpu.pipeline_mode<synchronous>, transform_indices = @transform_5, window_bounds = array<i64: 16, 16>}, {pipeline_mode = #tpu.pipeline_mode<synchronous>, transform_indices = @transform_6, window_bounds = array<i64: 1, 16>}, {pipeline_mode = #tpu.pipeline_mode<synchronous>, transform_indices = @transform_7, window_bounds = array<i64: 16, 8>}, {pipeline_mode = #tpu.pipeline_mode<synchronous>, transform_indices = @transform_8, window_bounds = array<i64: 1, 8>}, {transform_indices = @transform_9, window_bounds = array<i64: 16, 8>}]} {
    %c0 = arith.constant 0 : index
    %c0_0 = arith.constant 0 : index
    %c0_1 = arith.constant 0 : index
    %0 = vector.load %arg1[%c0, %c0_0, %c0_1] : memref<4x16x6xbf16, #tpu.memory_space<vmem>>, vector<4x16x6xbf16>
    %1 = vector.extract_strided_slice %0 {offsets = [0, 0, 0], sizes = [4, 16, 2], strides = [1, 1, 1]} : vector<4x16x6xbf16> to vector<4x16x2xbf16>
    %2 = arith.extf %1 : vector<4x16x2xbf16> to vector<4x16x2xf32>
    %c0_2 = arith.constant 0 : index
    %c0_3 = arith.constant 0 : index
    %3 = vector.load %arg2[%c0_2, %c0_3] : memref<16x2xf32, #tpu.memory_space<vmem>>, vector<16x2xf32>
    %4 = vector.shape_cast %3 : vector<16x2xf32> to vector<1x16x2xf32>
    %5 = vector.broadcast %4 : vector<1x16x2xf32> to vector<4x16x2xf32>
    %6 = arith.subf %2, %5 : vector<4x16x2xf32>
    %7 = vector.shape_cast %6 : vector<4x16x2xf32> to vector<64x2xf32>
    %8 = arith.truncf %7 : vector<64x2xf32> to vector<64x2xbf16>
    %9 = vector.shape_cast %0 : vector<4x16x6xbf16> to vector<64x6xbf16>
    %c0_4 = arith.constant 0 : index
    %c0_5 = arith.constant 0 : index
    %10 = vector.load %arg3[%c0_4, %c0_5] : memref<2x16xbf16, #tpu.memory_space<vmem>>, vector<2x16xbf16>
    %cst = arith.constant dense<0.000000e+00> : vector<64x16xf32>
    %11 = tpu.matmul %8, %10, %cst {dimension_numbers = #tpu.dot_dimension_numbers<[1], [0], [0], [1], [0, 0, 1, 1], [], []>} : vector<64x2xbf16>, vector<2x16xbf16>, vector<64x16xf32> -> vector<64x16xf32>
    %c0_6 = arith.constant 0 : index
    %c0_7 = arith.constant 0 : index
    %12 = vector.load %arg4[%c0_6, %c0_7] : memref<6x16xbf16, #tpu.memory_space<vmem>>, vector<6x16xbf16>
    %cst_8 = arith.constant dense<0.000000e+00> : vector<64x16xf32>
    %13 = tpu.matmul %9, %12, %cst_8 {dimension_numbers = #tpu.dot_dimension_numbers<[1], [0], [0], [1], [0, 0, 1, 1], [], []>} : vector<64x6xbf16>, vector<6x16xbf16>, vector<64x16xf32> -> vector<64x16xf32>
    %14 = arith.addf %11, %13 : vector<64x16xf32>
    %c0_9 = arith.constant 0 : index
    %c0_10 = arith.constant 0 : index
    %15 = vector.load %arg5[%c0_9, %c0_10] : memref<1x16xf32, #tpu.memory_space<vmem>>, vector<1x16xf32>
    %16 = vector.broadcast %15 : vector<1x16xf32> to vector<64x16xf32>
    %17 = arith.addf %14, %16 : vector<64x16xf32>
    %cst_11 = arith.constant 0.000000e+00 : f32
    %18 = vector.broadcast %cst_11 : f32 to vector<64x16xf32>
    %19 = arith.maximumf %17, %18 : vector<64x16xf32>
    %20 = arith.truncf %19 : vector<64x16xf32> to vector<64x16xbf16>
    %c0_12 = arith.constant 0 : index
    %c0_13 = arith.constant 0 : index
    %21 = vector.load %arg6[%c0_12, %c0_13] : memref<16x16xbf16, #tpu.memory_space<vmem>>, vector<16x16xbf16>
    %cst_14 = arith.constant dense<0.000000e+00> : vector<64x16xf32>
    %22 = tpu.matmul %20, %21, %cst_14 {dimension_numbers = #tpu.dot_dimension_numbers<[1], [0], [0], [1], [0, 0, 1, 1], [], []>} : vector<64x16xbf16>, vector<16x16xbf16>, vector<64x16xf32> -> vector<64x16xf32>
    %c0_15 = arith.constant 0 : index
    %c0_16 = arith.constant 0 : index
    %23 = vector.load %arg7[%c0_15, %c0_16] : memref<1x16xf32, #tpu.memory_space<vmem>>, vector<1x16xf32>
    %24 = vector.broadcast %23 : vector<1x16xf32> to vector<64x16xf32>
    %25 = arith.addf %22, %24 : vector<64x16xf32>
    %cst_17 = arith.constant 0.000000e+00 : f32
    %26 = vector.broadcast %cst_17 : f32 to vector<64x16xf32>
    %27 = arith.maximumf %25, %26 : vector<64x16xf32>
    %28 = arith.truncf %27 : vector<64x16xf32> to vector<64x16xbf16>
    %c0_18 = arith.constant 0 : index
    %c0_19 = arith.constant 0 : index
    %29 = vector.load %arg8[%c0_18, %c0_19] : memref<16x8xbf16, #tpu.memory_space<vmem>>, vector<16x8xbf16>
    %cst_20 = arith.constant dense<0.000000e+00> : vector<64x8xf32>
    %30 = tpu.matmul %28, %29, %cst_20 {dimension_numbers = #tpu.dot_dimension_numbers<[1], [0], [0], [1], [0, 0, 1, 1], [], []>} : vector<64x16xbf16>, vector<16x8xbf16>, vector<64x8xf32> -> vector<64x8xf32>
    %c0_21 = arith.constant 0 : index
    %c0_22 = arith.constant 0 : index
    %31 = vector.load %arg9[%c0_21, %c0_22] : memref<1x8xf32, #tpu.memory_space<vmem>>, vector<1x8xf32>
    %32 = vector.broadcast %31 : vector<1x8xf32> to vector<64x8xf32>
    %33 = arith.addf %30, %32 : vector<64x8xf32>
    %34 = vector.shape_cast %33 : vector<64x8xf32> to vector<4x16x8xf32>
    %cst_23 = arith.constant dense<0.000000e+00> : vector<16x8xf32>
    %35 = vector.multi_reduction <add>, %34, %cst_23 [0] : vector<4x16x8xf32> to vector<16x8xf32>
    %cst_24 = arith.constant 2.500000e-01 : f32
    %36 = vector.broadcast %cst_24 : f32 to vector<16x8xf32>
    %37 = arith.mulf %35, %36 : vector<16x8xf32>
    %c0_25 = arith.constant 0 : index
    %c0_26 = arith.constant 0 : index
    %38 = vector.load %arg10[%c0_25, %c0_26] : memref<16x8xf32, #tpu.memory_space<vmem>>, vector<16x8xf32>
    tpu.vector_store %arg10[%c0_25, %c0_26], %37 {strides = array<i32>} : memref<16x8xf32, #tpu.memory_space<vmem>>, vector<16x8xf32>,
    return
  }
  func.func @transform_0(%arg0: i32) -> (i32, i32, i32) {
    %c0_i32 = arith.constant 0 : i32
    %c0_i32_0 = arith.constant 0 : i32
    %c0_i32_1 = arith.constant 0 : i32
    return %c0_i32, %arg0, %c0_i32_0 : i32, i32, i32
  }
  func.func @transform_1(%arg0: i32) -> (i32, i32) {
    %c0_i32 = arith.constant 0 : i32
    %c0_i32_0 = arith.constant 0 : i32
    return %arg0, %c0_i32 : i32, i32
  }
  func.func @transform_2(%arg0: i32) -> (i32, i32) {
    %c0_i32 = arith.constant 0 : i32
    %c0_i32_0 = arith.constant 0 : i32
    %c0_i32_1 = arith.constant 0 : i32
    return %c0_i32, %c0_i32_0 : i32, i32
  }
  func.func @transform_3(%arg0: i32) -> (i32, i32) {
    %c0_i32 = arith.constant 0 : i32
    %c0_i32_0 = arith.constant 0 : i32
    %c0_i32_1 = arith.constant 0 : i32
    return %c0_i32, %c0_i32_0 : i32, i32
  }
  func.func @transform_4(%arg0: i32) -> (i32, i32) {
    %c0_i32 = arith.constant 0 : i32
    %c0_i32_0 = arith.constant 0 : i32
    %c0_i32_1 = arith.constant 0 : i32
    return %c0_i32, %c0_i32_0 : i32, i32
  }
  func.func @transform_5(%arg0: i32) -> (i32, i32) {
    %c0_i32 = arith.constant 0 : i32
    %c0_i32_0 = arith.constant 0 : i32
    %c0_i32_1 = arith.constant 0 : i32
    return %c0_i32, %c0_i32_0 : i32, i32
  }
  func.func @transform_6(%arg0: i32) -> (i32, i32) {
    %c0_i32 = arith.constant 0 : i32
    %c0_i32_0 = arith.constant 0 : i32
    %c0_i32_1 = arith.constant 0 : i32
    return %c0_i32, %c0_i32_0 : i32, i32
  }
  func.func @transform_7(%arg0: i32) -> (i32, i32) {
    %c0_i32 = arith.constant 0 : i32
    %c0_i32_0 = arith.constant 0 : i32
    %c0_i32_1 = arith.constant 0 : i32
    return %c0_i32, %c0_i32_0 : i32, i32
  }
  func.func @transform_8(%arg0: i32) -> (i32, i32) {
    %c0_i32 = arith.constant 0 : i32
    %c0_i32_0 = arith.constant 0 : i32
    %c0_i32_1 = arith.constant 0 : i32
    return %c0_i32, %c0_i32_0 : i32, i32
  }
  func.func @transform_9(%arg0: i32) -> (i32, i32) {
    %c0_i32 = arith.constant 0 : i32
    %c0_i32_0 = arith.constant 0 : i32
    return %arg0, %c0_i32 : i32, i32
  }
}

module attributes {stable_mosaic.version = 11 : i64} {
  func.func @kernel(%arg0: i32, %arg1: memref<8x16x20xbf16, #tpu.memory_space<vmem>>, %arg2: memref<16x8xf32, #tpu.memory_space<vmem>>, %arg3: memref<16x4xbf16, #tpu.memory_space<vmem>>, %arg4: memref<16x8xbf16, #tpu.memory_space<vmem>>, %arg5: memref<8x16xbf16, #tpu.memory_space<vmem>>, %arg6: memref<20x16xbf16, #tpu.memory_space<vmem>>, %arg7: memref<1x16xf32, #tpu.memory_space<vmem>>, %arg8: memref<16x16xbf16, #tpu.memory_space<vmem>>, %arg9: memref<1x16xf32, #tpu.memory_space<vmem>>, %arg10: memref<16x8xbf16, #tpu.memory_space<vmem>>, %arg11: memref<1x8xf32, #tpu.memory_space<vmem>>, %arg12: memref<4x32xbf16, #tpu.memory_space<vmem>>, %arg13: memref<8x32xbf16, #tpu.memory_space<vmem>>, %arg14: memref<8x32xbf16, #tpu.memory_space<vmem>>, %arg15: memref<1x32xf32, #tpu.memory_space<vmem>>, %arg16: memref<32x16xbf16, #tpu.memory_space<vmem>>, %arg17: memref<1x16xf32, #tpu.memory_space<vmem>>, %arg18: memref<16x16xf32, #tpu.memory_space<vmem>>) attributes {dimension_semantics = [#tpu.dimension_semantics<parallel>], iteration_bounds = array<i64: 2>, scalar_prefetch = 0 : i64, scratch_operands = 0 : i64, tpu.core_type = #tpu.core_type<tc>, window_params = [{transform_indices = @transform_0, window_bounds = array<i64: 8, 16, 20>}, {transform_indices = @transform_1, window_bounds = array<i64: 16, 8>}, {transform_indices = @transform_2, window_bounds = array<i64: 16, 4>}, {transform_indices = @transform_3, window_bounds = array<i64: 16, 8>}, {pipeline_mode = #tpu.pipeline_mode<synchronous>, transform_indices = @transform_4, window_bounds = array<i64: 8, 16>}, {pipeline_mode = #tpu.pipeline_mode<synchronous>, transform_indices = @transform_5, window_bounds = array<i64: 20, 16>}, {pipeline_mode = #tpu.pipeline_mode<synchronous>, transform_indices = @transform_6, window_bounds = array<i64: 1, 16>}, {pipeline_mode = #tpu.pipeline_mode<synchronous>, transform_indices = @transform_7, window_bounds = array<i64: 16, 16>}, {pipeline_mode = #tpu.pipeline_mode<synchronous>, transform_indices = @transform_8, window_bounds = array<i64: 1, 16>}, {pipeline_mode = #tpu.pipeline_mode<synchronous>, transform_indices = @transform_9, window_bounds = array<i64: 16, 8>}, {pipeline_mode = #tpu.pipeline_mode<synchronous>, transform_indices = @transform_10, window_bounds = array<i64: 1, 8>}, {pipeline_mode = #tpu.pipeline_mode<synchronous>, transform_indices = @transform_11, window_bounds = array<i64: 4, 32>}, {pipeline_mode = #tpu.pipeline_mode<synchronous>, transform_indices = @transform_12, window_bounds = array<i64: 8, 32>}, {pipeline_mode = #tpu.pipeline_mode<synchronous>, transform_indices = @transform_13, window_bounds = array<i64: 8, 32>}, {pipeline_mode = #tpu.pipeline_mode<synchronous>, transform_indices = @transform_14, window_bounds = array<i64: 1, 32>}, {pipeline_mode = #tpu.pipeline_mode<synchronous>, transform_indices = @transform_15, window_bounds = array<i64: 32, 16>}, {pipeline_mode = #tpu.pipeline_mode<synchronous>, transform_indices = @transform_16, window_bounds = array<i64: 1, 16>}, {transform_indices = @transform_17, window_bounds = array<i64: 16, 16>}]} {
    %c0 = arith.constant 0 : index
    %c0_0 = arith.constant 0 : index
    %c0_1 = arith.constant 0 : index
    %0 = vector.load %arg1[%c0, %c0_0, %c0_1] : memref<8x16x20xbf16, #tpu.memory_space<vmem>>, vector<8x16x20xbf16>
    %1 = vector.extract_strided_slice %0 {offsets = [0, 0, 0], sizes = [8, 16, 8], strides = [1, 1, 1]} : vector<8x16x20xbf16> to vector<8x16x8xbf16>
    %2 = arith.extf %1 : vector<8x16x8xbf16> to vector<8x16x8xf32>
    %c0_2 = arith.constant 0 : index
    %c0_3 = arith.constant 0 : index
    %3 = vector.load %arg2[%c0_2, %c0_3] : memref<16x8xf32, #tpu.memory_space<vmem>>, vector<16x8xf32>
    %4 = vector.shape_cast %3 : vector<16x8xf32> to vector<1x16x8xf32>
    %5 = vector.broadcast %4 : vector<1x16x8xf32> to vector<8x16x8xf32>
    %6 = arith.subf %2, %5 : vector<8x16x8xf32>
    %7 = vector.shape_cast %6 : vector<8x16x8xf32> to vector<128x8xf32>
    %8 = arith.truncf %7 : vector<128x8xf32> to vector<128x8xbf16>
    %9 = vector.shape_cast %0 : vector<8x16x20xbf16> to vector<128x20xbf16>
    %c0_4 = arith.constant 0 : index
    %c0_5 = arith.constant 0 : index
    %10 = vector.load %arg5[%c0_4, %c0_5] : memref<8x16xbf16, #tpu.memory_space<vmem>>, vector<8x16xbf16>
    %cst = arith.constant dense<0.000000e+00> : vector<128x16xf32>
    %11 = tpu.matmul %8, %10, %cst {dimension_numbers = #tpu.dot_dimension_numbers<[1], [0], [0], [1], [0, 0, 1, 1], [], []>} : vector<128x8xbf16>, vector<8x16xbf16>, vector<128x16xf32> -> vector<128x16xf32>
    %c0_6 = arith.constant 0 : index
    %c0_7 = arith.constant 0 : index
    %12 = vector.load %arg6[%c0_6, %c0_7] : memref<20x16xbf16, #tpu.memory_space<vmem>>, vector<20x16xbf16>
    %cst_8 = arith.constant dense<0.000000e+00> : vector<128x16xf32>
    %13 = tpu.matmul %9, %12, %cst_8 {dimension_numbers = #tpu.dot_dimension_numbers<[1], [0], [0], [1], [0, 0, 1, 1], [], []>} : vector<128x20xbf16>, vector<20x16xbf16>, vector<128x16xf32> -> vector<128x16xf32>
    %14 = arith.addf %11, %13 : vector<128x16xf32>
    %c0_9 = arith.constant 0 : index
    %c0_10 = arith.constant 0 : index
    %15 = vector.load %arg7[%c0_9, %c0_10] : memref<1x16xf32, #tpu.memory_space<vmem>>, vector<1x16xf32>
    %16 = vector.broadcast %15 : vector<1x16xf32> to vector<128x16xf32>
    %17 = arith.addf %14, %16 : vector<128x16xf32>
    %cst_11 = arith.constant 0.000000e+00 : f32
    %18 = vector.broadcast %cst_11 : f32 to vector<128x16xf32>
    %19 = arith.maximumf %17, %18 : vector<128x16xf32>
    %20 = arith.truncf %19 : vector<128x16xf32> to vector<128x16xbf16>
    %c0_12 = arith.constant 0 : index
    %c0_13 = arith.constant 0 : index
    %21 = vector.load %arg8[%c0_12, %c0_13] : memref<16x16xbf16, #tpu.memory_space<vmem>>, vector<16x16xbf16>
    %cst_14 = arith.constant dense<0.000000e+00> : vector<128x16xf32>
    %22 = tpu.matmul %20, %21, %cst_14 {dimension_numbers = #tpu.dot_dimension_numbers<[1], [0], [0], [1], [0, 0, 1, 1], [], []>} : vector<128x16xbf16>, vector<16x16xbf16>, vector<128x16xf32> -> vector<128x16xf32>
    %c0_15 = arith.constant 0 : index
    %c0_16 = arith.constant 0 : index
    %23 = vector.load %arg9[%c0_15, %c0_16] : memref<1x16xf32, #tpu.memory_space<vmem>>, vector<1x16xf32>
    %24 = vector.broadcast %23 : vector<1x16xf32> to vector<128x16xf32>
    %25 = arith.addf %22, %24 : vector<128x16xf32>
    %cst_17 = arith.constant 0.000000e+00 : f32
    %26 = vector.broadcast %cst_17 : f32 to vector<128x16xf32>
    %27 = arith.maximumf %25, %26 : vector<128x16xf32>
    %28 = arith.truncf %27 : vector<128x16xf32> to vector<128x16xbf16>
    %c0_18 = arith.constant 0 : index
    %c0_19 = arith.constant 0 : index
    %29 = vector.load %arg10[%c0_18, %c0_19] : memref<16x8xbf16, #tpu.memory_space<vmem>>, vector<16x8xbf16>
    %cst_20 = arith.constant dense<0.000000e+00> : vector<128x8xf32>
    %30 = tpu.matmul %28, %29, %cst_20 {dimension_numbers = #tpu.dot_dimension_numbers<[1], [0], [0], [1], [0, 0, 1, 1], [], []>} : vector<128x16xbf16>, vector<16x8xbf16>, vector<128x8xf32> -> vector<128x8xf32>
    %c0_21 = arith.constant 0 : index
    %c0_22 = arith.constant 0 : index
    %31 = vector.load %arg11[%c0_21, %c0_22] : memref<1x8xf32, #tpu.memory_space<vmem>>, vector<1x8xf32>
    %32 = vector.broadcast %31 : vector<1x8xf32> to vector<128x8xf32>
    %33 = arith.addf %30, %32 : vector<128x8xf32>
    %34 = vector.shape_cast %33 : vector<128x8xf32> to vector<8x16x8xf32>
    %cst_23 = arith.constant dense<0.000000e+00> : vector<16x8xf32>
    %35 = vector.multi_reduction <add>, %34, %cst_23 [0] : vector<8x16x8xf32> to vector<16x8xf32>
    %cst_24 = arith.constant 1.250000e-01 : f32
    %36 = vector.broadcast %cst_24 : f32 to vector<16x8xf32>
    %37 = arith.mulf %35, %36 : vector<16x8xf32>
    %c0_25 = arith.constant 0 : index
    %c0_26 = arith.constant 0 : index
    %38 = vector.load %arg3[%c0_25, %c0_26] : memref<16x4xbf16, #tpu.memory_space<vmem>>, vector<16x4xbf16>
    %c0_27 = arith.constant 0 : index
    %c0_28 = arith.constant 0 : index
    %39 = vector.load %arg12[%c0_27, %c0_28] : memref<4x32xbf16, #tpu.memory_space<vmem>>, vector<4x32xbf16>
    %cst_29 = arith.constant dense<0.000000e+00> : vector<16x32xf32>
    %40 = tpu.matmul %38, %39, %cst_29 {dimension_numbers = #tpu.dot_dimension_numbers<[1], [0], [0], [1], [0, 0, 1, 1], [], []>} : vector<16x4xbf16>, vector<4x32xbf16>, vector<16x32xf32> -> vector<16x32xf32>
    %c0_30 = arith.constant 0 : index
    %c0_31 = arith.constant 0 : index
    %41 = vector.load %arg4[%c0_30, %c0_31] : memref<16x8xbf16, #tpu.memory_space<vmem>>, vector<16x8xbf16>
    %c0_32 = arith.constant 0 : index
    %c0_33 = arith.constant 0 : index
    %42 = vector.load %arg13[%c0_32, %c0_33] : memref<8x32xbf16, #tpu.memory_space<vmem>>, vector<8x32xbf16>
    %cst_34 = arith.constant dense<0.000000e+00> : vector<16x32xf32>
    %43 = tpu.matmul %41, %42, %cst_34 {dimension_numbers = #tpu.dot_dimension_numbers<[1], [0], [0], [1], [0, 0, 1, 1], [], []>} : vector<16x8xbf16>, vector<8x32xbf16>, vector<16x32xf32> -> vector<16x32xf32>
    %44 = arith.addf %40, %43 : vector<16x32xf32>
    %45 = arith.truncf %37 : vector<16x8xf32> to vector<16x8xbf16>
    %c0_35 = arith.constant 0 : index
    %c0_36 = arith.constant 0 : index
    %46 = vector.load %arg14[%c0_35, %c0_36] : memref<8x32xbf16, #tpu.memory_space<vmem>>, vector<8x32xbf16>
    %cst_37 = arith.constant dense<0.000000e+00> : vector<16x32xf32>
    %47 = tpu.matmul %45, %46, %cst_37 {dimension_numbers = #tpu.dot_dimension_numbers<[1], [0], [0], [1], [0, 0, 1, 1], [], []>} : vector<16x8xbf16>, vector<8x32xbf16>, vector<16x32xf32> -> vector<16x32xf32>
    %48 = arith.addf %44, %47 : vector<16x32xf32>
    %c0_38 = arith.constant 0 : index
    %c0_39 = arith.constant 0 : index
    %49 = vector.load %arg15[%c0_38, %c0_39] : memref<1x32xf32, #tpu.memory_space<vmem>>, vector<1x32xf32>
    %50 = vector.broadcast %49 : vector<1x32xf32> to vector<16x32xf32>
    %51 = arith.addf %48, %50 : vector<16x32xf32>
    %cst_40 = arith.constant 0.000000e+00 : f32
    %52 = vector.broadcast %cst_40 : f32 to vector<16x32xf32>
    %53 = arith.maximumf %51, %52 : vector<16x32xf32>
    %54 = arith.truncf %53 : vector<16x32xf32> to vector<16x32xbf16>
    %c0_41 = arith.constant 0 : index
    %c0_42 = arith.constant 0 : index
    %55 = vector.load %arg16[%c0_41, %c0_42] : memref<32x16xbf16, #tpu.memory_space<vmem>>, vector<32x16xbf16>
    %cst_43 = arith.constant dense<0.000000e+00> : vector<16x16xf32>
    %56 = tpu.matmul %54, %55, %cst_43 {dimension_numbers = #tpu.dot_dimension_numbers<[1], [0], [0], [1], [0, 0, 1, 1], [], []>} : vector<16x32xbf16>, vector<32x16xbf16>, vector<16x16xf32> -> vector<16x16xf32>
    %c0_44 = arith.constant 0 : index
    %c0_45 = arith.constant 0 : index
    %57 = vector.load %arg17[%c0_44, %c0_45] : memref<1x16xf32, #tpu.memory_space<vmem>>, vector<1x16xf32>
    %58 = vector.broadcast %57 : vector<1x16xf32> to vector<16x16xf32>
    %59 = arith.addf %56, %58 : vector<16x16xf32>
    %c0_46 = arith.constant 0 : index
    %c0_47 = arith.constant 0 : index
    %60 = vector.load %arg18[%c0_46, %c0_47] : memref<16x16xf32, #tpu.memory_space<vmem>>, vector<16x16xf32>
    tpu.vector_store %arg18[%c0_46, %c0_47], %59 {strides = array<i32>} : memref<16x16xf32, #tpu.memory_space<vmem>>, vector<16x16xf32>,
    return
  }
  func.func @transform_0(%arg0: i32) -> (i32, i32, i32) {
    %c0_i32 = arith.constant 0 : i32
    %c0_i32_0 = arith.constant 0 : i32
    %c0_i32_1 = arith.constant 0 : i32
    return %c0_i32, %arg0, %c0_i32_0 : i32, i32, i32
  }
  func.func @transform_1(%arg0: i32) -> (i32, i32) {
    %c0_i32 = arith.constant 0 : i32
    %c0_i32_0 = arith.constant 0 : i32
    return %arg0, %c0_i32 : i32, i32
  }
  func.func @transform_2(%arg0: i32) -> (i32, i32) {
    %c0_i32 = arith.constant 0 : i32
    %c0_i32_0 = arith.constant 0 : i32
    return %arg0, %c0_i32 : i32, i32
  }
  func.func @transform_3(%arg0: i32) -> (i32, i32) {
    %c0_i32 = arith.constant 0 : i32
    %c0_i32_0 = arith.constant 0 : i32
    return %arg0, %c0_i32 : i32, i32
  }
  func.func @transform_4(%arg0: i32) -> (i32, i32) {
    %c0_i32 = arith.constant 0 : i32
    %c0_i32_0 = arith.constant 0 : i32
    %c0_i32_1 = arith.constant 0 : i32
    return %c0_i32, %c0_i32_0 : i32, i32
  }
  func.func @transform_5(%arg0: i32) -> (i32, i32) {
    %c0_i32 = arith.constant 0 : i32
    %c0_i32_0 = arith.constant 0 : i32
    %c0_i32_1 = arith.constant 0 : i32
    return %c0_i32, %c0_i32_0 : i32, i32
  }
  func.func @transform_6(%arg0: i32) -> (i32, i32) {
    %c0_i32 = arith.constant 0 : i32
    %c0_i32_0 = arith.constant 0 : i32
    %c0_i32_1 = arith.constant 0 : i32
    return %c0_i32, %c0_i32_0 : i32, i32
  }
  func.func @transform_7(%arg0: i32) -> (i32, i32) {
    %c0_i32 = arith.constant 0 : i32
    %c0_i32_0 = arith.constant 0 : i32
    %c0_i32_1 = arith.constant 0 : i32
    return %c0_i32, %c0_i32_0 : i32, i32
  }
  func.func @transform_8(%arg0: i32) -> (i32, i32) {
    %c0_i32 = arith.constant 0 : i32
    %c0_i32_0 = arith.constant 0 : i32
    %c0_i32_1 = arith.constant 0 : i32
    return %c0_i32, %c0_i32_0 : i32, i32
  }
  func.func @transform_9(%arg0: i32) -> (i32, i32) {
    %c0_i32 = arith.constant 0 : i32
    %c0_i32_0 = arith.constant 0 : i32
    %c0_i32_1 = arith.constant 0 : i32
    return %c0_i32, %c0_i32_0 : i32, i32
  }
  func.func @transform_10(%arg0: i32) -> (i32, i32) {
    %c0_i32 = arith.constant 0 : i32
    %c0_i32_0 = arith.constant 0 : i32
    %c0_i32_1 = arith.constant 0 : i32
    return %c0_i32, %c0_i32_0 : i32, i32
  }
  func.func @transform_11(%arg0: i32) -> (i32, i32) {
    %c0_i32 = arith.constant 0 : i32
    %c0_i32_0 = arith.constant 0 : i32
    %c0_i32_1 = arith.constant 0 : i32
    return %c0_i32, %c0_i32_0 : i32, i32
  }
  func.func @transform_12(%arg0: i32) -> (i32, i32) {
    %c0_i32 = arith.constant 0 : i32
    %c0_i32_0 = arith.constant 0 : i32
    %c0_i32_1 = arith.constant 0 : i32
    return %c0_i32, %c0_i32_0 : i32, i32
  }
  func.func @transform_13(%arg0: i32) -> (i32, i32) {
    %c0_i32 = arith.constant 0 : i32
    %c0_i32_0 = arith.constant 0 : i32
    %c0_i32_1 = arith.constant 0 : i32
    return %c0_i32, %c0_i32_0 : i32, i32
  }
  func.func @transform_14(%arg0: i32) -> (i32, i32) {
    %c0_i32 = arith.constant 0 : i32
    %c0_i32_0 = arith.constant 0 : i32
    %c0_i32_1 = arith.constant 0 : i32
    return %c0_i32, %c0_i32_0 : i32, i32
  }
  func.func @transform_15(%arg0: i32) -> (i32, i32) {
    %c0_i32 = arith.constant 0 : i32
    %c0_i32_0 = arith.constant 0 : i32
    %c0_i32_1 = arith.constant 0 : i32
    return %c0_i32, %c0_i32_0 : i32, i32
  }
  func.func @transform_16(%arg0: i32) -> (i32, i32) {
    %c0_i32 = arith.constant 0 : i32
    %c0_i32_0 = arith.constant 0 : i32
    %c0_i32_1 = arith.constant 0 : i32
    return %c0_i32, %c0_i32_0 : i32, i32
  }
  func.func @transform_17(%arg0: i32) -> (i32, i32) {
    %c0_i32 = arith.constant 0 : i32
    %c0_i32_0 = arith.constant 0 : i32
    return %arg0, %c0_i32 : i32, i32
  }
}

module attributes {stable_mosaic.version = 11 : i64} {
  func.func @kernel(%arg0: i32, %arg1: memref<4x16x18xbf16, #tpu.memory_space<vmem>>, %arg2: memref<16x2xf32, #tpu.memory_space<vmem>>, %arg3: memref<2x16xbf16, #tpu.memory_space<vmem>>, %arg4: memref<18x16xbf16, #tpu.memory_space<vmem>>, %arg5: memref<1x16xf32, #tpu.memory_space<vmem>>, %arg6: memref<16x16xbf16, #tpu.memory_space<vmem>>, %arg7: memref<1x16xf32, #tpu.memory_space<vmem>>, %arg8: memref<16x8xbf16, #tpu.memory_space<vmem>>, %arg9: memref<1x8xf32, #tpu.memory_space<vmem>>, %arg10: memref<16x8xf32, #tpu.memory_space<vmem>>) attributes {dimension_semantics = [#tpu.dimension_semantics<parallel>], iteration_bounds = array<i64: 2>, scalar_prefetch = 0 : i64, scratch_operands = 0 : i64, tpu.core_type = #tpu.core_type<tc>, window_params = [{transform_indices = @transform_0, window_bounds = array<i64: 4, 16, 18>}, {transform_indices = @transform_1, window_bounds = array<i64: 16, 2>}, {pipeline_mode = #tpu.pipeline_mode<synchronous>, transform_indices = @transform_2, window_bounds = array<i64: 2, 16>}, {pipeline_mode = #tpu.pipeline_mode<synchronous>, transform_indices = @transform_3, window_bounds = array<i64: 18, 16>}, {pipeline_mode = #tpu.pipeline_mode<synchronous>, transform_indices = @transform_4, window_bounds = array<i64: 1, 16>}, {pipeline_mode = #tpu.pipeline_mode<synchronous>, transform_indices = @transform_5, window_bounds = array<i64: 16, 16>}, {pipeline_mode = #tpu.pipeline_mode<synchronous>, transform_indices = @transform_6, window_bounds = array<i64: 1, 16>}, {pipeline_mode = #tpu.pipeline_mode<synchronous>, transform_indices = @transform_7, window_bounds = array<i64: 16, 8>}, {pipeline_mode = #tpu.pipeline_mode<synchronous>, transform_indices = @transform_8, window_bounds = array<i64: 1, 8>}, {transform_indices = @transform_9, window_bounds = array<i64: 16, 8>}]} {
    %c0 = arith.constant 0 : index
    %c0_0 = arith.constant 0 : index
    %c0_1 = arith.constant 0 : index
    %0 = vector.load %arg1[%c0, %c0_0, %c0_1] : memref<4x16x18xbf16, #tpu.memory_space<vmem>>, vector<4x16x18xbf16>
    %1 = vector.extract_strided_slice %0 {offsets = [0, 0, 0], sizes = [4, 16, 2], strides = [1, 1, 1]} : vector<4x16x18xbf16> to vector<4x16x2xbf16>
    %2 = arith.extf %1 : vector<4x16x2xbf16> to vector<4x16x2xf32>
    %c0_2 = arith.constant 0 : index
    %c0_3 = arith.constant 0 : index
    %3 = vector.load %arg2[%c0_2, %c0_3] : memref<16x2xf32, #tpu.memory_space<vmem>>, vector<16x2xf32>
    %4 = vector.shape_cast %3 : vector<16x2xf32> to vector<1x16x2xf32>
    %5 = vector.broadcast %4 : vector<1x16x2xf32> to vector<4x16x2xf32>
    %6 = arith.subf %2, %5 : vector<4x16x2xf32>
    %7 = vector.shape_cast %6 : vector<4x16x2xf32> to vector<64x2xf32>
    %8 = arith.truncf %7 : vector<64x2xf32> to vector<64x2xbf16>
    %9 = vector.shape_cast %0 : vector<4x16x18xbf16> to vector<64x18xbf16>
    %c0_4 = arith.constant 0 : index
    %c0_5 = arith.constant 0 : index
    %10 = vector.load %arg3[%c0_4, %c0_5] : memref<2x16xbf16, #tpu.memory_space<vmem>>, vector<2x16xbf16>
    %cst = arith.constant dense<0.000000e+00> : vector<64x16xf32>
    %11 = tpu.matmul %8, %10, %cst {dimension_numbers = #tpu.dot_dimension_numbers<[1], [0], [0], [1], [0, 0, 1, 1], [], []>} : vector<64x2xbf16>, vector<2x16xbf16>, vector<64x16xf32> -> vector<64x16xf32>
    %c0_6 = arith.constant 0 : index
    %c0_7 = arith.constant 0 : index
    %12 = vector.load %arg4[%c0_6, %c0_7] : memref<18x16xbf16, #tpu.memory_space<vmem>>, vector<18x16xbf16>
    %cst_8 = arith.constant dense<0.000000e+00> : vector<64x16xf32>
    %13 = tpu.matmul %9, %12, %cst_8 {dimension_numbers = #tpu.dot_dimension_numbers<[1], [0], [0], [1], [0, 0, 1, 1], [], []>} : vector<64x18xbf16>, vector<18x16xbf16>, vector<64x16xf32> -> vector<64x16xf32>
    %14 = arith.addf %11, %13 : vector<64x16xf32>
    %c0_9 = arith.constant 0 : index
    %c0_10 = arith.constant 0 : index
    %15 = vector.load %arg5[%c0_9, %c0_10] : memref<1x16xf32, #tpu.memory_space<vmem>>, vector<1x16xf32>
    %16 = vector.broadcast %15 : vector<1x16xf32> to vector<64x16xf32>
    %17 = arith.addf %14, %16 : vector<64x16xf32>
    %cst_11 = arith.constant 0.000000e+00 : f32
    %18 = vector.broadcast %cst_11 : f32 to vector<64x16xf32>
    %19 = arith.maximumf %17, %18 : vector<64x16xf32>
    %20 = arith.truncf %19 : vector<64x16xf32> to vector<64x16xbf16>
    %c0_12 = arith.constant 0 : index
    %c0_13 = arith.constant 0 : index
    %21 = vector.load %arg6[%c0_12, %c0_13] : memref<16x16xbf16, #tpu.memory_space<vmem>>, vector<16x16xbf16>
    %cst_14 = arith.constant dense<0.000000e+00> : vector<64x16xf32>
    %22 = tpu.matmul %20, %21, %cst_14 {dimension_numbers = #tpu.dot_dimension_numbers<[1], [0], [0], [1], [0, 0, 1, 1], [], []>} : vector<64x16xbf16>, vector<16x16xbf16>, vector<64x16xf32> -> vector<64x16xf32>
    %c0_15 = arith.constant 0 : index
    %c0_16 = arith.constant 0 : index
    %23 = vector.load %arg7[%c0_15, %c0_16] : memref<1x16xf32, #tpu.memory_space<vmem>>, vector<1x16xf32>
    %24 = vector.broadcast %23 : vector<1x16xf32> to vector<64x16xf32>
    %25 = arith.addf %22, %24 : vector<64x16xf32>
    %cst_17 = arith.constant 0.000000e+00 : f32
    %26 = vector.broadcast %cst_17 : f32 to vector<64x16xf32>
    %27 = arith.maximumf %25, %26 : vector<64x16xf32>
    %28 = arith.truncf %27 : vector<64x16xf32> to vector<64x16xbf16>
    %c0_18 = arith.constant 0 : index
    %c0_19 = arith.constant 0 : index
    %29 = vector.load %arg8[%c0_18, %c0_19] : memref<16x8xbf16, #tpu.memory_space<vmem>>, vector<16x8xbf16>
    %cst_20 = arith.constant dense<0.000000e+00> : vector<64x8xf32>
    %30 = tpu.matmul %28, %29, %cst_20 {dimension_numbers = #tpu.dot_dimension_numbers<[1], [0], [0], [1], [0, 0, 1, 1], [], []>} : vector<64x16xbf16>, vector<16x8xbf16>, vector<64x8xf32> -> vector<64x8xf32>
    %c0_21 = arith.constant 0 : index
    %c0_22 = arith.constant 0 : index
    %31 = vector.load %arg9[%c0_21, %c0_22] : memref<1x8xf32, #tpu.memory_space<vmem>>, vector<1x8xf32>
    %32 = vector.broadcast %31 : vector<1x8xf32> to vector<64x8xf32>
    %33 = arith.addf %30, %32 : vector<64x8xf32>
    %34 = vector.shape_cast %33 : vector<64x8xf32> to vector<4x16x8xf32>
    %cst_23 = arith.constant dense<0.000000e+00> : vector<16x8xf32>
    %35 = vector.multi_reduction <add>, %34, %cst_23 [0] : vector<4x16x8xf32> to vector<16x8xf32>
    %cst_24 = arith.constant 2.500000e-01 : f32
    %36 = vector.broadcast %cst_24 : f32 to vector<16x8xf32>
    %37 = arith.mulf %35, %36 : vector<16x8xf32>
    %c0_25 = arith.constant 0 : index
    %c0_26 = arith.constant 0 : index
    %38 = vector.load %arg10[%c0_25, %c0_26] : memref<16x8xf32, #tpu.memory_space<vmem>>, vector<16x8xf32>
    tpu.vector_store %arg10[%c0_25, %c0_26], %37 {strides = array<i32>} : memref<16x8xf32, #tpu.memory_space<vmem>>, vector<16x8xf32>,
    return
  }
  func.func @transform_0(%arg0: i32) -> (i32, i32, i32) {
    %c0_i32 = arith.constant 0 : i32
    %c0_i32_0 = arith.constant 0 : i32
    %c0_i32_1 = arith.constant 0 : i32
    return %c0_i32, %arg0, %c0_i32_0 : i32, i32, i32
  }
  func.func @transform_1(%arg0: i32) -> (i32, i32) {
    %c0_i32 = arith.constant 0 : i32
    %c0_i32_0 = arith.constant 0 : i32
    return %arg0, %c0_i32 : i32, i32
  }
  func.func @transform_2(%arg0: i32) -> (i32, i32) {
    %c0_i32 = arith.constant 0 : i32
    %c0_i32_0 = arith.constant 0 : i32
    %c0_i32_1 = arith.constant 0 : i32
    return %c0_i32, %c0_i32_0 : i32, i32
  }
  func.func @transform_3(%arg0: i32) -> (i32, i32) {
    %c0_i32 = arith.constant 0 : i32
    %c0_i32_0 = arith.constant 0 : i32
    %c0_i32_1 = arith.constant 0 : i32
    return %c0_i32, %c0_i32_0 : i32, i32
  }
  func.func @transform_4(%arg0: i32) -> (i32, i32) {
    %c0_i32 = arith.constant 0 : i32
    %c0_i32_0 = arith.constant 0 : i32
    %c0_i32_1 = arith.constant 0 : i32
    return %c0_i32, %c0_i32_0 : i32, i32
  }
  func.func @transform_5(%arg0: i32) -> (i32, i32) {
    %c0_i32 = arith.constant 0 : i32
    %c0_i32_0 = arith.constant 0 : i32
    %c0_i32_1 = arith.constant 0 : i32
    return %c0_i32, %c0_i32_0 : i32, i32
  }
  func.func @transform_6(%arg0: i32) -> (i32, i32) {
    %c0_i32 = arith.constant 0 : i32
    %c0_i32_0 = arith.constant 0 : i32
    %c0_i32_1 = arith.constant 0 : i32
    return %c0_i32, %c0_i32_0 : i32, i32
  }
  func.func @transform_7(%arg0: i32) -> (i32, i32) {
    %c0_i32 = arith.constant 0 : i32
    %c0_i32_0 = arith.constant 0 : i32
    %c0_i32_1 = arith.constant 0 : i32
    return %c0_i32, %c0_i32_0 : i32, i32
  }
  func.func @transform_8(%arg0: i32) -> (i32, i32) {
    %c0_i32 = arith.constant 0 : i32
    %c0_i32_0 = arith.constant 0 : i32
    %c0_i32_1 = arith.constant 0 : i32
    return %c0_i32, %c0_i32_0 : i32, i32
  }
  func.func @transform_9(%arg0: i32) -> (i32, i32) {
    %c0_i32 = arith.constant 0 : i32
    %c0_i32_0 = arith.constant 0 : i32
    return %arg0, %c0_i32 : i32, i32
  }
}

module attributes {stable_mosaic.version = 11 : i64} {
  func.func @kernel(%arg0: i32, %arg1: memref<8x16x32xbf16, #tpu.memory_space<vmem>>, %arg2: memref<16x8xf32, #tpu.memory_space<vmem>>, %arg3: memref<16x16xbf16, #tpu.memory_space<vmem>>, %arg4: memref<16x8xbf16, #tpu.memory_space<vmem>>, %arg5: memref<8x16xbf16, #tpu.memory_space<vmem>>, %arg6: memref<32x16xbf16, #tpu.memory_space<vmem>>, %arg7: memref<1x16xf32, #tpu.memory_space<vmem>>, %arg8: memref<16x16xbf16, #tpu.memory_space<vmem>>, %arg9: memref<1x16xf32, #tpu.memory_space<vmem>>, %arg10: memref<16x8xbf16, #tpu.memory_space<vmem>>, %arg11: memref<1x8xf32, #tpu.memory_space<vmem>>, %arg12: memref<16x32xbf16, #tpu.memory_space<vmem>>, %arg13: memref<8x32xbf16, #tpu.memory_space<vmem>>, %arg14: memref<8x32xbf16, #tpu.memory_space<vmem>>, %arg15: memref<1x32xf32, #tpu.memory_space<vmem>>, %arg16: memref<32x32xbf16, #tpu.memory_space<vmem>>, %arg17: memref<1x32xf32, #tpu.memory_space<vmem>>, %arg18: memref<16x32xf32, #tpu.memory_space<vmem>>) attributes {dimension_semantics = [#tpu.dimension_semantics<parallel>], iteration_bounds = array<i64: 2>, scalar_prefetch = 0 : i64, scratch_operands = 0 : i64, tpu.core_type = #tpu.core_type<tc>, window_params = [{transform_indices = @transform_0, window_bounds = array<i64: 8, 16, 32>}, {transform_indices = @transform_1, window_bounds = array<i64: 16, 8>}, {transform_indices = @transform_2, window_bounds = array<i64: 16, 16>}, {transform_indices = @transform_3, window_bounds = array<i64: 16, 8>}, {pipeline_mode = #tpu.pipeline_mode<synchronous>, transform_indices = @transform_4, window_bounds = array<i64: 8, 16>}, {pipeline_mode = #tpu.pipeline_mode<synchronous>, transform_indices = @transform_5, window_bounds = array<i64: 32, 16>}, {pipeline_mode = #tpu.pipeline_mode<synchronous>, transform_indices = @transform_6, window_bounds = array<i64: 1, 16>}, {pipeline_mode = #tpu.pipeline_mode<synchronous>, transform_indices = @transform_7, window_bounds = array<i64: 16, 16>}, {pipeline_mode = #tpu.pipeline_mode<synchronous>, transform_indices = @transform_8, window_bounds = array<i64: 1, 16>}, {pipeline_mode = #tpu.pipeline_mode<synchronous>, transform_indices = @transform_9, window_bounds = array<i64: 16, 8>}, {pipeline_mode = #tpu.pipeline_mode<synchronous>, transform_indices = @transform_10, window_bounds = array<i64: 1, 8>}, {pipeline_mode = #tpu.pipeline_mode<synchronous>, transform_indices = @transform_11, window_bounds = array<i64: 16, 32>}, {pipeline_mode = #tpu.pipeline_mode<synchronous>, transform_indices = @transform_12, window_bounds = array<i64: 8, 32>}, {pipeline_mode = #tpu.pipeline_mode<synchronous>, transform_indices = @transform_13, window_bounds = array<i64: 8, 32>}, {pipeline_mode = #tpu.pipeline_mode<synchronous>, transform_indices = @transform_14, window_bounds = array<i64: 1, 32>}, {pipeline_mode = #tpu.pipeline_mode<synchronous>, transform_indices = @transform_15, window_bounds = array<i64: 32, 32>}, {pipeline_mode = #tpu.pipeline_mode<synchronous>, transform_indices = @transform_16, window_bounds = array<i64: 1, 32>}, {transform_indices = @transform_17, window_bounds = array<i64: 16, 32>}]} {
    %c0 = arith.constant 0 : index
    %c0_0 = arith.constant 0 : index
    %c0_1 = arith.constant 0 : index
    %0 = vector.load %arg1[%c0, %c0_0, %c0_1] : memref<8x16x32xbf16, #tpu.memory_space<vmem>>, vector<8x16x32xbf16>
    %1 = vector.extract_strided_slice %0 {offsets = [0, 0, 0], sizes = [8, 16, 8], strides = [1, 1, 1]} : vector<8x16x32xbf16> to vector<8x16x8xbf16>
    %2 = arith.extf %1 : vector<8x16x8xbf16> to vector<8x16x8xf32>
    %c0_2 = arith.constant 0 : index
    %c0_3 = arith.constant 0 : index
    %3 = vector.load %arg2[%c0_2, %c0_3] : memref<16x8xf32, #tpu.memory_space<vmem>>, vector<16x8xf32>
    %4 = vector.shape_cast %3 : vector<16x8xf32> to vector<1x16x8xf32>
    %5 = vector.broadcast %4 : vector<1x16x8xf32> to vector<8x16x8xf32>
    %6 = arith.subf %2, %5 : vector<8x16x8xf32>
    %7 = vector.shape_cast %6 : vector<8x16x8xf32> to vector<128x8xf32>
    %8 = arith.truncf %7 : vector<128x8xf32> to vector<128x8xbf16>
    %9 = vector.shape_cast %0 : vector<8x16x32xbf16> to vector<128x32xbf16>
    %c0_4 = arith.constant 0 : index
    %c0_5 = arith.constant 0 : index
    %10 = vector.load %arg5[%c0_4, %c0_5] : memref<8x16xbf16, #tpu.memory_space<vmem>>, vector<8x16xbf16>
    %cst = arith.constant dense<0.000000e+00> : vector<128x16xf32>
    %11 = tpu.matmul %8, %10, %cst {dimension_numbers = #tpu.dot_dimension_numbers<[1], [0], [0], [1], [0, 0, 1, 1], [], []>} : vector<128x8xbf16>, vector<8x16xbf16>, vector<128x16xf32> -> vector<128x16xf32>
    %c0_6 = arith.constant 0 : index
    %c0_7 = arith.constant 0 : index
    %12 = vector.load %arg6[%c0_6, %c0_7] : memref<32x16xbf16, #tpu.memory_space<vmem>>, vector<32x16xbf16>
    %cst_8 = arith.constant dense<0.000000e+00> : vector<128x16xf32>
    %13 = tpu.matmul %9, %12, %cst_8 {dimension_numbers = #tpu.dot_dimension_numbers<[1], [0], [0], [1], [0, 0, 1, 1], [], []>} : vector<128x32xbf16>, vector<32x16xbf16>, vector<128x16xf32> -> vector<128x16xf32>
    %14 = arith.addf %11, %13 : vector<128x16xf32>
    %c0_9 = arith.constant 0 : index
    %c0_10 = arith.constant 0 : index
    %15 = vector.load %arg7[%c0_9, %c0_10] : memref<1x16xf32, #tpu.memory_space<vmem>>, vector<1x16xf32>
    %16 = vector.broadcast %15 : vector<1x16xf32> to vector<128x16xf32>
    %17 = arith.addf %14, %16 : vector<128x16xf32>
    %cst_11 = arith.constant 0.000000e+00 : f32
    %18 = vector.broadcast %cst_11 : f32 to vector<128x16xf32>
    %19 = arith.maximumf %17, %18 : vector<128x16xf32>
    %20 = arith.truncf %19 : vector<128x16xf32> to vector<128x16xbf16>
    %c0_12 = arith.constant 0 : index
    %c0_13 = arith.constant 0 : index
    %21 = vector.load %arg8[%c0_12, %c0_13] : memref<16x16xbf16, #tpu.memory_space<vmem>>, vector<16x16xbf16>
    %cst_14 = arith.constant dense<0.000000e+00> : vector<128x16xf32>
    %22 = tpu.matmul %20, %21, %cst_14 {dimension_numbers = #tpu.dot_dimension_numbers<[1], [0], [0], [1], [0, 0, 1, 1], [], []>} : vector<128x16xbf16>, vector<16x16xbf16>, vector<128x16xf32> -> vector<128x16xf32>
    %c0_15 = arith.constant 0 : index
    %c0_16 = arith.constant 0 : index
    %23 = vector.load %arg9[%c0_15, %c0_16] : memref<1x16xf32, #tpu.memory_space<vmem>>, vector<1x16xf32>
    %24 = vector.broadcast %23 : vector<1x16xf32> to vector<128x16xf32>
    %25 = arith.addf %22, %24 : vector<128x16xf32>
    %cst_17 = arith.constant 0.000000e+00 : f32
    %26 = vector.broadcast %cst_17 : f32 to vector<128x16xf32>
    %27 = arith.maximumf %25, %26 : vector<128x16xf32>
    %28 = arith.truncf %27 : vector<128x16xf32> to vector<128x16xbf16>
    %c0_18 = arith.constant 0 : index
    %c0_19 = arith.constant 0 : index
    %29 = vector.load %arg10[%c0_18, %c0_19] : memref<16x8xbf16, #tpu.memory_space<vmem>>, vector<16x8xbf16>
    %cst_20 = arith.constant dense<0.000000e+00> : vector<128x8xf32>
    %30 = tpu.matmul %28, %29, %cst_20 {dimension_numbers = #tpu.dot_dimension_numbers<[1], [0], [0], [1], [0, 0, 1, 1], [], []>} : vector<128x16xbf16>, vector<16x8xbf16>, vector<128x8xf32> -> vector<128x8xf32>
    %c0_21 = arith.constant 0 : index
    %c0_22 = arith.constant 0 : index
    %31 = vector.load %arg11[%c0_21, %c0_22] : memref<1x8xf32, #tpu.memory_space<vmem>>, vector<1x8xf32>
    %32 = vector.broadcast %31 : vector<1x8xf32> to vector<128x8xf32>
    %33 = arith.addf %30, %32 : vector<128x8xf32>
    %34 = vector.shape_cast %33 : vector<128x8xf32> to vector<8x16x8xf32>
    %cst_23 = arith.constant dense<0.000000e+00> : vector<16x8xf32>
    %35 = vector.multi_reduction <add>, %34, %cst_23 [0] : vector<8x16x8xf32> to vector<16x8xf32>
    %cst_24 = arith.constant 1.250000e-01 : f32
    %36 = vector.broadcast %cst_24 : f32 to vector<16x8xf32>
    %37 = arith.mulf %35, %36 : vector<16x8xf32>
    %c0_25 = arith.constant 0 : index
    %c0_26 = arith.constant 0 : index
    %38 = vector.load %arg3[%c0_25, %c0_26] : memref<16x16xbf16, #tpu.memory_space<vmem>>, vector<16x16xbf16>
    %c0_27 = arith.constant 0 : index
    %c0_28 = arith.constant 0 : index
    %39 = vector.load %arg12[%c0_27, %c0_28] : memref<16x32xbf16, #tpu.memory_space<vmem>>, vector<16x32xbf16>
    %cst_29 = arith.constant dense<0.000000e+00> : vector<16x32xf32>
    %40 = tpu.matmul %38, %39, %cst_29 {dimension_numbers = #tpu.dot_dimension_numbers<[1], [0], [0], [1], [0, 0, 1, 1], [], []>} : vector<16x16xbf16>, vector<16x32xbf16>, vector<16x32xf32> -> vector<16x32xf32>
    %c0_30 = arith.constant 0 : index
    %c0_31 = arith.constant 0 : index
    %41 = vector.load %arg4[%c0_30, %c0_31] : memref<16x8xbf16, #tpu.memory_space<vmem>>, vector<16x8xbf16>
    %c0_32 = arith.constant 0 : index
    %c0_33 = arith.constant 0 : index
    %42 = vector.load %arg13[%c0_32, %c0_33] : memref<8x32xbf16, #tpu.memory_space<vmem>>, vector<8x32xbf16>
    %cst_34 = arith.constant dense<0.000000e+00> : vector<16x32xf32>
    %43 = tpu.matmul %41, %42, %cst_34 {dimension_numbers = #tpu.dot_dimension_numbers<[1], [0], [0], [1], [0, 0, 1, 1], [], []>} : vector<16x8xbf16>, vector<8x32xbf16>, vector<16x32xf32> -> vector<16x32xf32>
    %44 = arith.addf %40, %43 : vector<16x32xf32>
    %45 = arith.truncf %37 : vector<16x8xf32> to vector<16x8xbf16>
    %c0_35 = arith.constant 0 : index
    %c0_36 = arith.constant 0 : index
    %46 = vector.load %arg14[%c0_35, %c0_36] : memref<8x32xbf16, #tpu.memory_space<vmem>>, vector<8x32xbf16>
    %cst_37 = arith.constant dense<0.000000e+00> : vector<16x32xf32>
    %47 = tpu.matmul %45, %46, %cst_37 {dimension_numbers = #tpu.dot_dimension_numbers<[1], [0], [0], [1], [0, 0, 1, 1], [], []>} : vector<16x8xbf16>, vector<8x32xbf16>, vector<16x32xf32> -> vector<16x32xf32>
    %48 = arith.addf %44, %47 : vector<16x32xf32>
    %c0_38 = arith.constant 0 : index
    %c0_39 = arith.constant 0 : index
    %49 = vector.load %arg15[%c0_38, %c0_39] : memref<1x32xf32, #tpu.memory_space<vmem>>, vector<1x32xf32>
    %50 = vector.broadcast %49 : vector<1x32xf32> to vector<16x32xf32>
    %51 = arith.addf %48, %50 : vector<16x32xf32>
    %cst_40 = arith.constant 0.000000e+00 : f32
    %52 = vector.broadcast %cst_40 : f32 to vector<16x32xf32>
    %53 = arith.maximumf %51, %52 : vector<16x32xf32>
    %54 = arith.truncf %53 : vector<16x32xf32> to vector<16x32xbf16>
    %c0_41 = arith.constant 0 : index
    %c0_42 = arith.constant 0 : index
    %55 = vector.load %arg16[%c0_41, %c0_42] : memref<32x32xbf16, #tpu.memory_space<vmem>>, vector<32x32xbf16>
    %cst_43 = arith.constant dense<0.000000e+00> : vector<16x32xf32>
    %56 = tpu.matmul %54, %55, %cst_43 {dimension_numbers = #tpu.dot_dimension_numbers<[1], [0], [0], [1], [0, 0, 1, 1], [], []>} : vector<16x32xbf16>, vector<32x32xbf16>, vector<16x32xf32> -> vector<16x32xf32>
    %c0_44 = arith.constant 0 : index
    %c0_45 = arith.constant 0 : index
    %57 = vector.load %arg17[%c0_44, %c0_45] : memref<1x32xf32, #tpu.memory_space<vmem>>, vector<1x32xf32>
    %58 = vector.broadcast %57 : vector<1x32xf32> to vector<16x32xf32>
    %59 = arith.addf %56, %58 : vector<16x32xf32>
    %c0_46 = arith.constant 0 : index
    %c0_47 = arith.constant 0 : index
    %60 = vector.load %arg18[%c0_46, %c0_47] : memref<16x32xf32, #tpu.memory_space<vmem>>, vector<16x32xf32>
    tpu.vector_store %arg18[%c0_46, %c0_47], %59 {strides = array<i32>} : memref<16x32xf32, #tpu.memory_space<vmem>>, vector<16x32xf32>,
    return
  }
  func.func @transform_0(%arg0: i32) -> (i32, i32, i32) {
    %c0_i32 = arith.constant 0 : i32
    %c0_i32_0 = arith.constant 0 : i32
    %c0_i32_1 = arith.constant 0 : i32
    return %c0_i32, %arg0, %c0_i32_0 : i32, i32, i32
  }
  func.func @transform_1(%arg0: i32) -> (i32, i32) {
    %c0_i32 = arith.constant 0 : i32
    %c0_i32_0 = arith.constant 0 : i32
    return %arg0, %c0_i32 : i32, i32
  }
  func.func @transform_2(%arg0: i32) -> (i32, i32) {
    %c0_i32 = arith.constant 0 : i32
    %c0_i32_0 = arith.constant 0 : i32
    return %arg0, %c0_i32 : i32, i32
  }
  func.func @transform_3(%arg0: i32) -> (i32, i32) {
    %c0_i32 = arith.constant 0 : i32
    %c0_i32_0 = arith.constant 0 : i32
    return %arg0, %c0_i32 : i32, i32
  }
  func.func @transform_4(%arg0: i32) -> (i32, i32) {
    %c0_i32 = arith.constant 0 : i32
    %c0_i32_0 = arith.constant 0 : i32
    %c0_i32_1 = arith.constant 0 : i32
    return %c0_i32, %c0_i32_0 : i32, i32
  }
  func.func @transform_5(%arg0: i32) -> (i32, i32) {
    %c0_i32 = arith.constant 0 : i32
    %c0_i32_0 = arith.constant 0 : i32
    %c0_i32_1 = arith.constant 0 : i32
    return %c0_i32, %c0_i32_0 : i32, i32
  }
  func.func @transform_6(%arg0: i32) -> (i32, i32) {
    %c0_i32 = arith.constant 0 : i32
    %c0_i32_0 = arith.constant 0 : i32
    %c0_i32_1 = arith.constant 0 : i32
    return %c0_i32, %c0_i32_0 : i32, i32
  }
  func.func @transform_7(%arg0: i32) -> (i32, i32) {
    %c0_i32 = arith.constant 0 : i32
    %c0_i32_0 = arith.constant 0 : i32
    %c0_i32_1 = arith.constant 0 : i32
    return %c0_i32, %c0_i32_0 : i32, i32
  }
  func.func @transform_8(%arg0: i32) -> (i32, i32) {
    %c0_i32 = arith.constant 0 : i32
    %c0_i32_0 = arith.constant 0 : i32
    %c0_i32_1 = arith.constant 0 : i32
    return %c0_i32, %c0_i32_0 : i32, i32
  }
  func.func @transform_9(%arg0: i32) -> (i32, i32) {
    %c0_i32 = arith.constant 0 : i32
    %c0_i32_0 = arith.constant 0 : i32
    %c0_i32_1 = arith.constant 0 : i32
    return %c0_i32, %c0_i32_0 : i32, i32
  }
  func.func @transform_10(%arg0: i32) -> (i32, i32) {
    %c0_i32 = arith.constant 0 : i32
    %c0_i32_0 = arith.constant 0 : i32
    %c0_i32_1 = arith.constant 0 : i32
    return %c0_i32, %c0_i32_0 : i32, i32
  }
  func.func @transform_11(%arg0: i32) -> (i32, i32) {
    %c0_i32 = arith.constant 0 : i32
    %c0_i32_0 = arith.constant 0 : i32
    %c0_i32_1 = arith.constant 0 : i32
    return %c0_i32, %c0_i32_0 : i32, i32
  }
  func.func @transform_12(%arg0: i32) -> (i32, i32) {
    %c0_i32 = arith.constant 0 : i32
    %c0_i32_0 = arith.constant 0 : i32
    %c0_i32_1 = arith.constant 0 : i32
    return %c0_i32, %c0_i32_0 : i32, i32
  }
  func.func @transform_13(%arg0: i32) -> (i32, i32) {
    %c0_i32 = arith.constant 0 : i32
    %c0_i32_0 = arith.constant 0 : i32
    %c0_i32_1 = arith.constant 0 : i32
    return %c0_i32, %c0_i32_0 : i32, i32
  }
  func.func @transform_14(%arg0: i32) -> (i32, i32) {
    %c0_i32 = arith.constant 0 : i32
    %c0_i32_0 = arith.constant 0 : i32
    %c0_i32_1 = arith.constant 0 : i32
    return %c0_i32, %c0_i32_0 : i32, i32
  }
  func.func @transform_15(%arg0: i32) -> (i32, i32) {
    %c0_i32 = arith.constant 0 : i32
    %c0_i32_0 = arith.constant 0 : i32
    %c0_i32_1 = arith.constant 0 : i32
    return %c0_i32, %c0_i32_0 : i32, i32
  }
  func.func @transform_16(%arg0: i32) -> (i32, i32) {
    %c0_i32 = arith.constant 0 : i32
    %c0_i32_0 = arith.constant 0 : i32
    %c0_i32_1 = arith.constant 0 : i32
    return %c0_i32, %c0_i32_0 : i32, i32
  }
  func.func @transform_17(%arg0: i32) -> (i32, i32) {
    %c0_i32 = arith.constant 0 : i32
    %c0_i32_0 = arith.constant 0 : i32
    return %arg0, %c0_i32 : i32, i32
  }
}

module attributes {stable_mosaic.version = 11 : i64} {
  func.func @kernel(%arg0: i32, %arg1: memref<8x16x40xbf16, #tpu.memory_space<vmem>>, %arg2: memref<16x8xf32, #tpu.memory_space<vmem>>, %arg3: memref<8x32xbf16, #tpu.memory_space<vmem>>, %arg4: memref<40x32xbf16, #tpu.memory_space<vmem>>, %arg5: memref<1x32xf32, #tpu.memory_space<vmem>>, %arg6: memref<32x32xbf16, #tpu.memory_space<vmem>>, %arg7: memref<1x32xf32, #tpu.memory_space<vmem>>, %arg8: memref<32x16xbf16, #tpu.memory_space<vmem>>, %arg9: memref<1x16xf32, #tpu.memory_space<vmem>>, %arg10: memref<16x16xf32, #tpu.memory_space<vmem>>) attributes {dimension_semantics = [#tpu.dimension_semantics<arbitrary>], iteration_bounds = array<i64: 1>, scalar_prefetch = 0 : i64, scratch_operands = 0 : i64, tpu.core_type = #tpu.core_type<tc>, window_params = [{transform_indices = @transform_0, window_bounds = array<i64: 8, 16, 40>}, {transform_indices = @transform_1, window_bounds = array<i64: 16, 8>}, {pipeline_mode = #tpu.pipeline_mode<synchronous>, transform_indices = @transform_2, window_bounds = array<i64: 8, 32>}, {pipeline_mode = #tpu.pipeline_mode<synchronous>, transform_indices = @transform_3, window_bounds = array<i64: 40, 32>}, {pipeline_mode = #tpu.pipeline_mode<synchronous>, transform_indices = @transform_4, window_bounds = array<i64: 1, 32>}, {pipeline_mode = #tpu.pipeline_mode<synchronous>, transform_indices = @transform_5, window_bounds = array<i64: 32, 32>}, {pipeline_mode = #tpu.pipeline_mode<synchronous>, transform_indices = @transform_6, window_bounds = array<i64: 1, 32>}, {pipeline_mode = #tpu.pipeline_mode<synchronous>, transform_indices = @transform_7, window_bounds = array<i64: 32, 16>}, {pipeline_mode = #tpu.pipeline_mode<synchronous>, transform_indices = @transform_8, window_bounds = array<i64: 1, 16>}, {transform_indices = @transform_9, window_bounds = array<i64: 16, 16>}]} {
    %c0 = arith.constant 0 : index
    %c0_0 = arith.constant 0 : index
    %c0_1 = arith.constant 0 : index
    %0 = vector.load %arg1[%c0, %c0_0, %c0_1] : memref<8x16x40xbf16, #tpu.memory_space<vmem>>, vector<8x16x40xbf16>
    %1 = vector.extract_strided_slice %0 {offsets = [0, 0, 0], sizes = [8, 16, 8], strides = [1, 1, 1]} : vector<8x16x40xbf16> to vector<8x16x8xbf16>
    %2 = arith.extf %1 : vector<8x16x8xbf16> to vector<8x16x8xf32>
    %c0_2 = arith.constant 0 : index
    %c0_3 = arith.constant 0 : index
    %3 = vector.load %arg2[%c0_2, %c0_3] : memref<16x8xf32, #tpu.memory_space<vmem>>, vector<16x8xf32>
    %4 = vector.shape_cast %3 : vector<16x8xf32> to vector<1x16x8xf32>
    %5 = vector.broadcast %4 : vector<1x16x8xf32> to vector<8x16x8xf32>
    %6 = arith.subf %2, %5 : vector<8x16x8xf32>
    %7 = vector.shape_cast %6 : vector<8x16x8xf32> to vector<128x8xf32>
    %8 = arith.truncf %7 : vector<128x8xf32> to vector<128x8xbf16>
    %9 = vector.shape_cast %0 : vector<8x16x40xbf16> to vector<128x40xbf16>
    %c0_4 = arith.constant 0 : index
    %c0_5 = arith.constant 0 : index
    %10 = vector.load %arg3[%c0_4, %c0_5] : memref<8x32xbf16, #tpu.memory_space<vmem>>, vector<8x32xbf16>
    %cst = arith.constant dense<0.000000e+00> : vector<128x32xf32>
    %11 = tpu.matmul %8, %10, %cst {dimension_numbers = #tpu.dot_dimension_numbers<[1], [0], [0], [1], [0, 0, 1, 1], [], []>} : vector<128x8xbf16>, vector<8x32xbf16>, vector<128x32xf32> -> vector<128x32xf32>
    %c0_6 = arith.constant 0 : index
    %c0_7 = arith.constant 0 : index
    %12 = vector.load %arg4[%c0_6, %c0_7] : memref<40x32xbf16, #tpu.memory_space<vmem>>, vector<40x32xbf16>
    %cst_8 = arith.constant dense<0.000000e+00> : vector<128x32xf32>
    %13 = tpu.matmul %9, %12, %cst_8 {dimension_numbers = #tpu.dot_dimension_numbers<[1], [0], [0], [1], [0, 0, 1, 1], [], []>} : vector<128x40xbf16>, vector<40x32xbf16>, vector<128x32xf32> -> vector<128x32xf32>
    %14 = arith.addf %11, %13 : vector<128x32xf32>
    %c0_9 = arith.constant 0 : index
    %c0_10 = arith.constant 0 : index
    %15 = vector.load %arg5[%c0_9, %c0_10] : memref<1x32xf32, #tpu.memory_space<vmem>>, vector<1x32xf32>
    %16 = vector.broadcast %15 : vector<1x32xf32> to vector<128x32xf32>
    %17 = arith.addf %14, %16 : vector<128x32xf32>
    %cst_11 = arith.constant 0.000000e+00 : f32
    %18 = vector.broadcast %cst_11 : f32 to vector<128x32xf32>
    %19 = arith.maximumf %17, %18 : vector<128x32xf32>
    %20 = arith.truncf %19 : vector<128x32xf32> to vector<128x32xbf16>
    %c0_12 = arith.constant 0 : index
    %c0_13 = arith.constant 0 : index
    %21 = vector.load %arg6[%c0_12, %c0_13] : memref<32x32xbf16, #tpu.memory_space<vmem>>, vector<32x32xbf16>
    %cst_14 = arith.constant dense<0.000000e+00> : vector<128x32xf32>
    %22 = tpu.matmul %20, %21, %cst_14 {dimension_numbers = #tpu.dot_dimension_numbers<[1], [0], [0], [1], [0, 0, 1, 1], [], []>} : vector<128x32xbf16>, vector<32x32xbf16>, vector<128x32xf32> -> vector<128x32xf32>
    %c0_15 = arith.constant 0 : index
    %c0_16 = arith.constant 0 : index
    %23 = vector.load %arg7[%c0_15, %c0_16] : memref<1x32xf32, #tpu.memory_space<vmem>>, vector<1x32xf32>
    %24 = vector.broadcast %23 : vector<1x32xf32> to vector<128x32xf32>
    %25 = arith.addf %22, %24 : vector<128x32xf32>
    %cst_17 = arith.constant 0.000000e+00 : f32
    %26 = vector.broadcast %cst_17 : f32 to vector<128x32xf32>
    %27 = arith.maximumf %25, %26 : vector<128x32xf32>
    %28 = arith.truncf %27 : vector<128x32xf32> to vector<128x32xbf16>
    %c0_18 = arith.constant 0 : index
    %c0_19 = arith.constant 0 : index
    %29 = vector.load %arg8[%c0_18, %c0_19] : memref<32x16xbf16, #tpu.memory_space<vmem>>, vector<32x16xbf16>
    %cst_20 = arith.constant dense<0.000000e+00> : vector<128x16xf32>
    %30 = tpu.matmul %28, %29, %cst_20 {dimension_numbers = #tpu.dot_dimension_numbers<[1], [0], [0], [1], [0, 0, 1, 1], [], []>} : vector<128x32xbf16>, vector<32x16xbf16>, vector<128x16xf32> -> vector<128x16xf32>
    %c0_21 = arith.constant 0 : index
    %c0_22 = arith.constant 0 : index
    %31 = vector.load %arg9[%c0_21, %c0_22] : memref<1x16xf32, #tpu.memory_space<vmem>>, vector<1x16xf32>
    %32 = vector.broadcast %31 : vector<1x16xf32> to vector<128x16xf32>
    %33 = arith.addf %30, %32 : vector<128x16xf32>
    %34 = vector.shape_cast %33 : vector<128x16xf32> to vector<8x16x16xf32>
    %cst_23 = arith.constant dense<0.000000e+00> : vector<16x16xf32>
    %35 = vector.multi_reduction <add>, %34, %cst_23 [0] : vector<8x16x16xf32> to vector<16x16xf32>
    %cst_24 = arith.constant 1.250000e-01 : f32
    %36 = vector.broadcast %cst_24 : f32 to vector<16x16xf32>
    %37 = arith.mulf %35, %36 : vector<16x16xf32>
    %c0_25 = arith.constant 0 : index
    %c0_26 = arith.constant 0 : index
    %38 = vector.load %arg10[%c0_25, %c0_26] : memref<16x16xf32, #tpu.memory_space<vmem>>, vector<16x16xf32>
    tpu.vector_store %arg10[%c0_25, %c0_26], %37 {strides = array<i32>} : memref<16x16xf32, #tpu.memory_space<vmem>>, vector<16x16xf32>,
    return
  }
  func.func @transform_0(%arg0: i32) -> (i32, i32, i32) {
    %c0_i32 = arith.constant 0 : i32
    %c0_i32_0 = arith.constant 0 : i32
    %c0_i32_1 = arith.constant 0 : i32
    return %c0_i32, %arg0, %c0_i32_0 : i32, i32, i32
  }
  func.func @transform_1(%arg0: i32) -> (i32, i32) {
    %c0_i32 = arith.constant 0 : i32
    %c0_i32_0 = arith.constant 0 : i32
    return %arg0, %c0_i32 : i32, i32
  }
  func.func @transform_2(%arg0: i32) -> (i32, i32) {
    %c0_i32 = arith.constant 0 : i32
    %c0_i32_0 = arith.constant 0 : i32
    %c0_i32_1 = arith.constant 0 : i32
    return %c0_i32, %c0_i32_0 : i32, i32
  }
  func.func @transform_3(%arg0: i32) -> (i32, i32) {
    %c0_i32 = arith.constant 0 : i32
    %c0_i32_0 = arith.constant 0 : i32
    %c0_i32_1 = arith.constant 0 : i32
    return %c0_i32, %c0_i32_0 : i32, i32
  }
  func.func @transform_4(%arg0: i32) -> (i32, i32) {
    %c0_i32 = arith.constant 0 : i32
    %c0_i32_0 = arith.constant 0 : i32
    %c0_i32_1 = arith.constant 0 : i32
    return %c0_i32, %c0_i32_0 : i32, i32
  }
  func.func @transform_5(%arg0: i32) -> (i32, i32) {
    %c0_i32 = arith.constant 0 : i32
    %c0_i32_0 = arith.constant 0 : i32
    %c0_i32_1 = arith.constant 0 : i32
    return %c0_i32, %c0_i32_0 : i32, i32
  }
  func.func @transform_6(%arg0: i32) -> (i32, i32) {
    %c0_i32 = arith.constant 0 : i32
    %c0_i32_0 = arith.constant 0 : i32
    %c0_i32_1 = arith.constant 0 : i32
    return %c0_i32, %c0_i32_0 : i32, i32
  }
  func.func @transform_7(%arg0: i32) -> (i32, i32) {
    %c0_i32 = arith.constant 0 : i32
    %c0_i32_0 = arith.constant 0 : i32
    %c0_i32_1 = arith.constant 0 : i32
    return %c0_i32, %c0_i32_0 : i32, i32
  }
  func.func @transform_8(%arg0: i32) -> (i32, i32) {
    %c0_i32 = arith.constant 0 : i32
    %c0_i32_0 = arith.constant 0 : i32
    %c0_i32_1 = arith.constant 0 : i32
    return %c0_i32, %c0_i32_0 : i32, i32
  }
  func.func @transform_9(%arg0: i32) -> (i32, i32) {
    %c0_i32 = arith.constant 0 : i32
    %c0_i32_0 = arith.constant 0 : i32
    return %arg0, %c0_i32 : i32, i32
  }
}

</mosaic_0001>

<bundles_post_ra>
// kernel: neg.3
= control target key start
LH: loop header
LB: loop body
LE: loop exit
PB: predicated region body
PF: predicated region fallthrough
CT: control target
= control target key end

     0   :  { %s72_s0 = inlined_call_operand.vmem [shape: f32[2,16,16], index: 0, kind: input, shape index: {}]   ;;  %s73_s1 = inlined_call_operand.vmem [shape: f32[2,16,16], index: 1, kind: output, shape index: {}]  }
   0x1   :  { %v2_v0 = vld [vmem:[%s72_s0] sm:$0xff]  ;;  %v32_v1 = vld [vmem:[%s72_s0 + $0x10] sm:$0xff]  ;;  %v34_v2 = vld [vmem:[%s72_s0 + $0x8] sm:$0xff] }
   0x2   :  { %v5_v3 = vxor.u32 2147483648, %v2_v0  ;;  %v12_v4 = vxor.u32 2147483648, %v32_v1  ;;  %v20_v5 = vxor.u32 2147483648, %v34_v2  ;;  %v36_v6 = vld [vmem:[%s72_s0 + $0x18] sm:$0xff] }
   0x3   :  { %v28_v7 = vxor.u32 2147483648, %v36_v6 }
   0x4   :  { %7 = vst [vmem:[%s73_s1] sm:$0xff] %v5_v3 }
   0x5   :  { %33 = vst [vmem:[%s73_s1 + $0x10] sm:$0xff] %v12_v4 }
   0x6   :  { %35 = vst [vmem:[%s73_s1 + $0x8] sm:$0xff] %v20_v5 }
   0x7   :  { %37 = vst [vmem:[%s73_s1 + $0x18] sm:$0xff] %v28_v7 }

// kernel: _lambda_.5
= control target key start
LH: loop header
LB: loop body
LE: loop exit
PB: predicated region body
PF: predicated region fallthrough
CT: control target
= control target key end

     0   :  { %s973_s30 = smov 0   ;;  %s975_s10 = smov 0   ;;  %s1092_s0 = inlined_call_operand.vmem [shape: bf16[4,32,6], index: 0, kind: input, shape index: {}]   ;;  %s1093_s1 = inlined_call_operand.vmem [shape: f32[32,2], index: 1, kind: input, shape index: {}]   ;;  %s1094_s2 = inlined_call_operand.vmem [shape: bf16[2,16], index: 2, kind: input, shape index: {}]   ;;  %s1095_s3 = inlined_call_operand.vmem [shape: bf16[6,16], index: 3, kind: input, shape index: {}]   ;;  %s1096_s4 = inlined_call_operand.vmem [shape: f32[1,16], index: 4, kind: input, shape index: {}]   ;;  %s1097_s5 = inlined_call_operand.vmem [shape: bf16[16,16], index: 5, kind: input, shape index: {}]   ;;  %s1098_s6 = inlined_call_operand.vmem [shape: f32[1,16], index: 6, kind: input, shape index: {}]   ;;  %s1099_s7 = inlined_call_operand.vmem [shape: bf16[16,8], index: 7, kind: input, shape index: {}]   ;;  %s1100_s8 = inlined_call_operand.vmem [shape: f32[1,8], index: 8, kind: input, shape index: {}]   ;;  %s1101_s9 = inlined_call_operand.vmem [shape: f32[32,8], index: 9, kind: output, shape index: {}]  }
   0x1   :  { %s977_s11 = smov 0  }
   0x2 LB: > { %s810_s12 = sadd.s32 4294967295, %s921_s11   ;;  %s990_s13 = sadd.s32 1, %s921_s11   ;;  %s921_s11 = sphi %s977_s11, %s1104_s11   ;;  %s917_s10 = sphi %s975_s10, %s1103_s10   ;;  %s913_s30 = sphi %s973_s30, %s1102_s30  }
   0x3   : > { %s23_s14 = ssub.s32 %s921_s11, %s990_s13  ;;  %s26_s15 = sadd.s32 1, %s917_s10 }
   0x4   : > { %p24_p0 = scmp.eq.s32.totalorder %s23_s14, 0  ;;  %p33_p1 = scmp.ne.s32.totalorder %s917_s10, %s913_s30 }
   0x5   : > { %p34_p2 = scmp.eq.s32.totalorder %s921_s11, 0  ;;  %p813_p4 = scmp.ge.s32.totalorder %s921_s11, 2 }
   0x6   : > { %s999_s16 = scalar_select %p24_p0, %s917_s10, %s26_s15  }
   0x7   : > { %p35_p3 = por %p34_p2, %p33_p1  ;;  %279 = sbr.rel (%p813_p4) target bundleno = 20 (0x14), region = 44 }
   0xc   : > { %282 = sbr.rel (!%p35_p3) target bundleno = 20 (0x14), region = 48  ;;  %s284_s17 = sand.u32 (%p35_p3), 1, %s917_s10  }
   0xd   : > { %s865_s18 = sshll.u32 (%p35_p3), %s921_s11, 3  ;;  %s814_s19 = sshll.u32 (%p35_p3), %s284_s17, 5 }
   0xe   : > { %s289_s22 = scalar_lea.vmem (%p35_p3), %s1092_s0, %s865_s18  ;;  %s286_s23 = scalar_lea.vmem (%p35_p3), [#allocation2], %s814_s19 }
   0xf   : > { %v306_v0 = vld [vmem:[%s289_s22] sm:$0xff] (%p35_p3)   ;;  %v310_v1 = vld [vmem:[%s289_s22 + $0x10] sm:$0xff] (%p35_p3)  }
  0x10   : > { %v314_v2 = vld [vmem:[%s289_s22 + $0x20] sm:$0xff] (%p35_p3)   ;;  %307 = vst [vmem:[%s286_s23] sm:$0xff] (%p35_p3), %v306_v0   ;;  %v318_v3 = vld [vmem:[%s289_s22 + $0x30] sm:$0xff] (%p35_p3)  }
  0x11   : > { %311 = vst [vmem:[%s286_s23 + $0x8] sm:$0xff] %v310_v1  }
  0x12   : > { %315 = vst [vmem:[%s286_s23 + $0x10] sm:$0xff] %v314_v2  }
  0x13   : > { %319 = vst [vmem:[%s286_s23 + $0x18] sm:$0xff] %v318_v3  }
  0x14 PF: > { %p817_p5 = scmp.ge.s32.totalorder %s921_s11, 1  ;;  %p369_p6 = scmp.lt.s32.totalorder %s921_s11, 3 }
  0x16   : > { %p370_p7 = pnand %p817_p5, %p369_p6 }
  0x17   : > { %s376_s26 = sand.u32 (!%p370_p7), 1, %s913_s30   ;;  %s819_s14 = sshll.u32 (!%p370_p7), %s810_s12, 1 }
  0x18   : > { %373 = sbr.rel (%p370_p7) target bundleno = 523 (0x20b), region = 93  ;;  %s818_s27 = sshll.u32 (!%p370_p7), %s376_s26, 5 }
  0x19   : > { %p418_p8 = scmp.lt.s32.totalorder (!%p370_p7), %s819_s14, 3  ;;  %s1018_s15 = scalar_lea.vmem (!%p370_p7), [#allocation2], %s818_s27 }
  0x1d   : > { %v461_v4 = vld [vmem:[%s1095_s3] sm:$0x7]  ;;  %vm495_vm0 = vcmask 1042432   ;;  %vm541_vm1 = vcmask 1040384   ;;  %vm482_vm2 = vcmask 48128   ;;  %s1106_s14 = smov (!%p418_p8, %s819_s14), 3 }
  0x1e   : > { %v497_v5 = vsel %vm495_vm0, %v461_v4, 0  ;;  %v460_v6 = vld [vmem:[%s1094_s2] sm:$0x1]  ;;  %s820_s30 = sshll.u32 %s1106_s14, 3  ;;  %vm528_vm3 = vcmask 15360   ;;  %v432_v17 = vld [vmem:[%s1018_s15 + $0x8] sm:$0xff]  }
  0x1f   : > { %506 = vmatpush.bf16.msra.mxu0 %v497_v5  ;;  %v543_v7 = vsel %vm541_vm1, %v460_v6, 0  ;;  %v866_v8 = vld [vmem:[%s1018_s15] sm:$0xff]  ;;  %s421_s17 = scalar_lea.vmem %s1093_s1, %s820_s30  ;;  %v867_v18 = vld [vmem:[%s1018_s15 + $0x8] sm:$0xff]  ;;  %v440_v19 = vunpack.c.l.bf16 %v432_v17  ;;  %v441_v20 = vunpack.c.h.bf16 %v432_v17  ;;  %v434_v24 = vld [vmem:[%s1018_s15 + $0x10] sm:$0xff]   ;;  %vm610_vm4 = vcmask 130048  }
  0x20   : > { %552 = vmatpush.bf16.msra.mxu1 %v543_v7  ;;  %v430_v9 = vld [vmem:[%s1018_s15] sm:$0xff]   ;;  %v447_v13 = vld [vmem:[%s421_s17 + $0x8] sm:$0xff]  ;;  %v868_v25 = vld [vmem:[%s1018_s15 + $0x10] sm:$0xff]  ;;  %v442_v26 = vunpack.c.l.bf16 %v434_v24  ;;  %v443_v27 = vunpack.c.h.bf16 %v434_v24  ;;  %vm717_vm5 = vcmask 64512  }
  0x21   : > { %v438_v10 = vunpack.c.l.bf16 %v430_v9  ;;  %v439_v11 = vunpack.c.h.bf16 %v430_v9  ;;  %v446_v12 = vld [vmem:[%s421_s17] sm:$0xff]  ;;  %v451_v22 = vsub.f32 %v441_v20, %v447_v13  ;;  %v436_v31 = vld [vmem:[%s1018_s15 + $0x18] sm:$0xff]  }
  0x22   : > { %839 = vmatmul.msk.bf16.vlgmr.msra.gmra.mxu0 %vm482_vm2, %v866_v8  ;;  %v450_v21 = vsub.f32 %v440_v19, %v446_v12  ;;  %v452_v28 = vsub.f32 %v442_v26, %v446_v12  ;;  %v453_v29 = vsub.f32 %v443_v27, %v447_v13  ;;  %v869_v32 = vld [vmem:[%s1018_s15 + $0x18] sm:$0xff]  ;;  %v444_v33 = vunpack.c.l.bf16 %v436_v31  ;;  %v870_v38 = vld [vmem:[%s1097_s5] sm:$0xff]  ;;  %s427_s15 = scalar_lea.vmem %s1101_s9, %s820_s30 }
  0x23   : > { %v448_v14 = vsub.f32 %v438_v10, %v446_v12  ;;  %v449_v15 = vsub.f32 %v439_v11, %v447_v13  ;;  %v445_v34 = vunpack.c.h.bf16 %v436_v31  ;;  %630 = vmatpush.bf16.msra.mxu2 %v870_v38  ;;  %v896_v43 = vld [vmem:[%s1096_s4] ss:$0 sm:$0xff] }
  0x24   : > { %v457_v23 = vpack.c.bf16 %v451_v22, %v450_v21  ;;  %v458_v30 = vpack.c.bf16 %v453_v29, %v452_v28  ;;  %v454_v35 = vsub.f32 %v444_v33, %v446_v12  ;;  %v871_v20 = vld [vmem:[%s1099_s7] sm:$0xff] }
  0x25   : > { %v456_v16 = vpack.c.bf16 %v449_v15, %v448_v14  ;;  %v455_v36 = vsub.f32 %v445_v34, %v447_v13  ;;  %695 = vmatpush.bf16.msra.mxu3 %v871_v20  ;;  %v897_v22 = vld [vmem:[%s1098_s6] ss:$0 sm:$0xff] }
  0x27   : > { %843 = vmatmul.msk.bf16.vlgmr.msra.gmra.mxu1 %vm528_vm3, %v456_v16  ;;  %v459_v37 = vpack.c.bf16 %v455_v36, %v454_v35 }
  0x32   : > { %840 = vmatmul.msk.bf16.gmra.mxu0 %vm482_vm2, %v867_v18 }
  0x37   : > { %844 = vmatmul.msk.bf16.gmra.mxu1 %vm528_vm3, %v457_v23 }
  0x42   : > { %841 = vmatmul.msk.bf16.gmra.mxu0 %vm482_vm2, %v868_v25 }
  0x47   : > { %845 = vmatmul.msk.bf16.gmra.mxu1 %vm528_vm3, %v458_v30 }
  0x52   : > { %842 = vmatmul.msk.bf16.gmra.mxu0 %vm482_vm2, %v869_v32 }
  0x57   : > { %846 = vmatmul.msk.bf16.gmra.mxu1 %vm528_vm3, %v459_v37 }
  0x9f   : > { %v508_v39 = vpop.f32.mrf.mxu0 }
  0xa4   : > { %v554_v40 = vpop.f32.mrf.mxu1 }
  0xa5   : > { %v555_v42 = vadd.f32 %v554_v40, %v508_v39 }
  0xa7   : > { %v510_v41 = vpop.f32.mrf.mxu0  ;;  %v578_v46 = vadd.f32 %v896_v43, %v555_v42 }
  0xa9   : > { %v586_v49 = vmax.f32 %v578_v46, 0.0 }
  0xac   : > { %v556_v44 = vpop.f32.mrf.mxu1 }
  0xad   : > { %v557_v47 = vadd.f32 %v556_v44, %v510_v41 }
  0xaf   : > { %v513_v45 = vpop.f32.mrf.mxu0  ;;  %v579_v48 = vadd.f32 %v896_v43, %v557_v47 }
  0xb1   : > { %v587_v50 = vmax.f32 %v579_v48, 0.0 }
  0xb3   : > { %v594_v51 = vpack.c.bf16 %v587_v50, %v586_v49 }
  0xb4   : > { %v559_v52 = vpop.f32.mrf.mxu1 }
  0xb5   : > { %851 = vmatmul.msk.bf16.vlgmr.msra.gmra.mxu2 %vm610_vm4, %v594_v51  ;;  %v560_v54 = vadd.f32 %v559_v52, %v513_v45 }
  0xb7   : > { %v515_v53 = vpop.f32.mrf.mxu0  ;;  %v580_v56 = vadd.f32 %v896_v43, %v560_v54 }
  0xb9   : > { %v588_v60 = vmax.f32 %v580_v56, 0.0 }
  0xbc   : > { %v561_v55 = vpop.f32.mrf.mxu1 }
  0xbd   : > { %v562_v57 = vadd.f32 %v561_v55, %v515_v53  ;;  %v898_v55 = vld [vmem:[%s1100_s8] ss:$0 sm:$0xff] }
  0xbf   : > { %v518_v58 = vpop.f32.mrf.mxu0  ;;  %v581_v59 = vadd.f32 %v896_v43, %v562_v57 }
  0xc1   : > { %v589_v61 = vmax.f32 %v581_v59, 0.0 }
  0xc3   : > { %v595_v62 = vpack.c.bf16 %v589_v61, %v588_v60 }
  0xc4   : > { %v564_v63 = vpop.f32.mrf.mxu1 }
  0xc5   : > { %852 = vmatmul.msk.bf16.gmra.mxu2 %vm610_vm4, %v595_v62  ;;  %v565_v1 = vadd.f32 %v564_v63, %v518_v58 }
  0xc7   : > { %v520_v0 = vpop.f32.mrf.mxu0  ;;  %v582_v3 = vadd.f32 %v896_v43, %v565_v1 }
  0xc9   : > { %v590_v6 = vmax.f32 %v582_v3, 0.0 }
  0xcc   : > { %v566_v2 = vpop.f32.mrf.mxu1 }
  0xcd   : > { %v567_v4 = vadd.f32 %v566_v2, %v520_v0 }
  0xcf   : > { %v583_v5 = vadd.f32 %v896_v43, %v567_v4  ;;  %v523_v8 = vpop.f32.mrf.mxu0 }
  0xd1   : > { %v591_v7 = vmax.f32 %v583_v5, 0.0 }
  0xd3   : > { %v596_v9 = vpack.c.bf16 %v591_v7, %v590_v6 }
  0xd4   : > { %v569_v10 = vpop.f32.mrf.mxu1 }
  0xd5   : > { %853 = vmatmul.msk.bf16.gmra.mxu2 %vm610_vm4, %v596_v9  ;;  %v570_v11 = vadd.f32 %v569_v10, %v523_v8 }
  0xd7   : > { %v525_v12 = vpop.f32.mrf.mxu0  ;;  %v584_v14 = vadd.f32 %v896_v43, %v570_v11 }
  0xd9   : > { %v592_v17 = vmax.f32 %v584_v14, 0.0 }
  0xdc   : > { %v571_v13 = vpop.f32.mrf.mxu1 }
  0xdd   : > { %v572_v15 = vadd.f32 %v571_v13, %v525_v12 }
  0xdf   : > { %v585_v16 = vadd.f32 %v896_v43, %v572_v15 }
  0xe1   : > { %v593_v18 = vmax.f32 %v585_v16, 0.0 }
  0xe3   : > { %v597_v19 = vpack.c.bf16 %v593_v18, %v592_v17 }
  0xe5   : > { %854 = vmatmul.msk.bf16.gmra.mxu2 %vm610_vm4, %v597_v19 }
 0x138   : > { %v632_v21 = vpop.f32.mrf.mxu2 }
 0x139   : > { %v633_v23 = vadd.f32 %v897_v22, %v632_v21 }
 0x13b   : > { %v652_v26 = vmax.f32 %v633_v23, 0.0 }
 0x140   : > { %v634_v24 = vpop.f32.mrf.mxu2 }
 0x141   : > { %v635_v25 = vadd.f32 %v897_v22, %v634_v24 }
 0x143   : > { %v653_v27 = vmax.f32 %v635_v25, 0.0 }
 0x145   : > { %v660_v28 = vpack.c.bf16 %v653_v27, %v652_v26 }
 0x147   : > { %859 = vmatmul.msk.bf16.vlgmr.msra.gmra.mxu3 %vm610_vm4, %v660_v28 }
 0x148   : > { %v637_v29 = vpop.f32.mrf.mxu2 }
 0x149   : > { %v638_v30 = vadd.f32 %v897_v22, %v637_v29 }
 0x14b   : > { %v654_v33 = vmax.f32 %v638_v30, 0.0 }
 0x150   : > { %v639_v31 = vpop.f32.mrf.mxu2 }
 0x151   : > { %v640_v32 = vadd.f32 %v897_v22, %v639_v31 }
 0x153   : > { %v655_v34 = vmax.f32 %v640_v32, 0.0 }
 0x155   : > { %v661_v35 = vpack.c.bf16 %v655_v34, %v654_v33 }
 0x157   : > { %860 = vmatmul.msk.bf16.gmra.mxu3 %vm610_vm4, %v661_v35 }
 0x158   : > { %v642_v36 = vpop.f32.mrf.mxu2 }
 0x159   : > { %v643_v37 = vadd.f32 %v897_v22, %v642_v36 }
 0x15b   : > { %v656_v40 = vmax.f32 %v643_v37, 0.0 }
 0x160   : > { %v644_v38 = vpop.f32.mrf.mxu2 }
 0x161   : > { %v645_v39 = vadd.f32 %v897_v22, %v644_v38 }
 0x163   : > { %v657_v41 = vmax.f32 %v645_v39, 0.0 }
 0x165   : > { %v662_v42 = vpack.c.bf16 %v657_v41, %v656_v40 }
 0x167   : > { %861 = vmatmul.msk.bf16.gmra.mxu3 %vm610_vm4, %v662_v42 }
 0x168   : > { %v647_v43 = vpop.f32.mrf.mxu2 }
 0x169   : > { %v648_v44 = vadd.f32 %v897_v22, %v647_v43 }
 0x16b   : > { %v658_v47 = vmax.f32 %v648_v44, 0.0 }
 0x170   : > { %v649_v45 = vpop.f32.mrf.mxu2 }
 0x171   : > { %v650_v46 = vadd.f32 %v897_v22, %v649_v45 }
 0x173   : > { %v659_v48 = vmax.f32 %v650_v46, 0.0 }
 0x175   : > { %v663_v49 = vpack.c.bf16 %v659_v48, %v658_v47 }
 0x177   : > { %862 = vmatmul.msk.bf16.gmra.mxu3 %vm610_vm4, %v663_v49 }
 0x1ca   : > { %v697_v50 = vpop.f32.mrf.mxu3 }
 0x1cb   : > { %v698_v58 = vadd.f32 %v898_v55, %v697_v50 }
 0x1cd   : > { %v718_v61 = vsel %vm717_vm5, %v698_v58, 0.0 }
 0x1d2   : > { %v699_v51 = vpop.f32.mrf.mxu3 }
 0x1d3   : > { %v700_v4 = vadd.f32 %v898_v55, %v699_v51 }
 0x1d5   : > { %v725_v10 = vsel %vm717_vm5, %v700_v4, 0.0 }
 0x1da   : > { %v702_v52 = vpop.f32.mrf.mxu3 }
 0x1db   : > { %v703_v57 = vadd.f32 %v898_v55, %v702_v52 }
 0x1dd   : > { %v719_v60 = vsel %vm717_vm5, %v703_v57, 0.0 }
 0x1de   : > { %v720_v63 = vadd.f32 %v719_v60, %v718_v61 }
 0x1e2   : > { %v704_v53 = vpop.f32.mrf.mxu3 }
 0x1e3   : > { %v705_v1 = vadd.f32 %v898_v55, %v704_v53 }
 0x1e5   : > { %v726_v8 = vsel %vm717_vm5, %v705_v1, 0.0 }
 0x1e6   : > { %v727_v12 = vadd.f32 %v726_v8, %v725_v10 }
 0x1ea   : > { %v707_v54 = vpop.f32.mrf.mxu3 }
 0x1eb   : > { %v708_v59 = vadd.f32 %v898_v55, %v707_v54 }
 0x1ed   : > { %v721_v62 = vsel %vm717_vm5, %v708_v59, 0.0 }
 0x1ee   : > { %v722_v3 = vadd.f32 %v721_v62, %v720_v63 }
 0x1f2   : > { %v709_v56 = vpop.f32.mrf.mxu3 }
 0x1f3   : > { %v710_v5 = vadd.f32 %v898_v55, %v709_v56 }
 0x1f5   : > { %v728_v11 = vsel %vm717_vm5, %v710_v5, 0.0 }
 0x1f6   : > { %v729_v15 = vadd.f32 %v728_v11, %v727_v12 }
 0x1fa   : > { %v712_v0 = vpop.f32.mrf.mxu3 }
 0x1fb   : > { %v713_v2 = vadd.f32 %v898_v55, %v712_v0 }
 0x1fd   : > { %v723_v6 = vsel %vm717_vm5, %v713_v2, 0.0 }
 0x1fe   : > { %v724_v7 = vadd.f32 %v723_v6, %v722_v3 }
 0x200   : > { %v732_v9 = vmul.f32 0.25, %v724_v7 }
 0x202   : > { %734 = vst.msk [vmem:[%s427_s15] sm:$0xff] %vm717_vm5, %v732_v9  ;;  %v714_v13 = vpop.f32.mrf.mxu3 }
 0x203   : > { %v715_v14 = vadd.f32 %v898_v55, %v714_v13 }
 0x205   : > { %v730_v16 = vsel %vm717_vm5, %v715_v14, 0.0 }
 0x206   : > { %v731_v17 = vadd.f32 %v730_v16, %v729_v15 }
 0x208   : > { %v733_v18 = vmul.f32 0.25, %v731_v17 }
 0x20a   : > { %735 = vst.msk [vmem:[%s427_s15 + $0x8] sm:$0xff] %vm717_vm5, %v733_v18 }
 0x20b PF: > { %p16_p9 = scmp.ge.s32.totalorder %s990_s13, 4   ;;  %s1102_s30 = smov %s917_s10 }
 0x20c   : > { %s1103_s10 = smov %s999_s16  ;;  %s1104_s11 = smov %s990_s13 }
 0x20d   :  { %18 = sbr.rel (!%p16_p9) target bundleno = 2 (0x2), region = 135 }

// kernel: _lambda_.6
= control target key start
LH: loop header
LB: loop body
LE: loop exit
PB: predicated region body
PF: predicated region fallthrough
CT: control target
= control target key end

     0   :  { %s2025_s0 = inlined_call_operand.vmem [shape: bf16[8,32,20], index: 0, kind: input, shape index: {}]   ;;  %s2026_s1 = inlined_call_operand.vmem [shape: f32[32,8], index: 1, kind: input, shape index: {}]   ;;  %s2027_s2 = inlined_call_operand.vmem [shape: bf16[32,4], index: 2, kind: input, shape index: {}]   ;;  %s2028_s3 = inlined_call_operand.vmem [shape: bf16[32,8], index: 3, kind: input, shape index: {}]   ;;  %s2029_s4 = inlined_call_operand.vmem [shape: bf16[8,16], index: 4, kind: input, shape index: {}]   ;;  %s2030_s5 = inlined_call_operand.vmem [shape: bf16[20,16], index: 5, kind: input, shape index: {}]   ;;  %s2031_s6 = inlined_call_operand.vmem [shape: f32[1,16], index: 6, kind: input, shape index: {}]   ;;  %s2032_s7 = inlined_call_operand.vmem [shape: bf16[16,16], index: 7, kind: input, shape index: {}]   ;;  %s2033_s8 = inlined_call_operand.vmem [shape: f32[1,16], index: 8, kind: input, shape index: {}]   ;;  %s2034_s9 = inlined_call_operand.vmem [shape: bf16[16,8], index: 9, kind: input, shape index: {}]   ;;  %s2035_s10 = inlined_call_operand.vmem [shape: f32[1,8], index: 10, kind: input, shape index: {}]   ;;  %s2036_s11 = inlined_call_operand.vmem [shape: bf16[4,32], index: 11, kind: input, shape index: {}]   ;;  %s2037_s12 = inlined_call_operand.vmem [shape: bf16[8,32], index: 12, kind: input, shape index: {}]   ;;  %s2038_s13 = inlined_call_operand.vmem [shape: bf16[8,32], index: 13, kind: input, shape index: {}]   ;;  %s2039_s14 = inlined_call_operand.vmem [shape: f32[1,32], index: 14, kind: input, shape index: {}]   ;;  %s2040_s15 = inlined_call_operand.vmem [shape: bf16[32,16], index: 15, kind: input, shape index: {}]   ;;  %s2041_s16 = inlined_call_operand.vmem [shape: f32[1,16], index: 16, kind: input, shape index: {}]   ;;  %s2042_s17 = inlined_call_operand.vmem [shape: f32[32,16], index: 17, kind: output, shape index: {}]  }
   0x1   :  { %2043 = sst [smem:[#allocation3_spill]] %s2025_s0 }
   0x2   :  { %2044 = sst [smem:[#allocation4_spill]] %s2026_s1 }
   0x3   :  { %s1762_s24 = smov 0   ;;  %s1764_s25 = smov 0  }
   0x4   :  { %s1766_s26 = smov 0  }
   0x5 LB: > { %s1488_s27 = sadd.s32 4294967295, %s1670_s26   ;;  %s1779_s28 = sadd.s32 1, %s1670_s26   ;;  %s1670_s26 = sphi %s1766_s26, %s2049_s26   ;;  %s1666_s25 = sphi %s1764_s25, %s2048_s25   ;;  %s1662_s24 = sphi %s1762_s24, %s2047_s24  }
   0x6   : > { %s31_s29 = ssub.s32 %s1670_s26, %s1779_s28  ;;  %s34_s0 = sadd.s32 1, %s1666_s25 }
   0x7   : > { %p32_p0 = scmp.eq.s32.totalorder %s31_s29, 0  ;;  %p41_p1 = scmp.ne.s32.totalorder %s1666_s25, %s1662_s24 }
   0x8   : > { %p42_p2 = scmp.eq.s32.totalorder %s1670_s26, 0  ;;  %p1491_p4 = scmp.ge.s32.totalorder %s1670_s26, 2 }
   0x9   : > { %s1788_s30 = scalar_select %p32_p0, %s1666_s25, %s34_s0  }
   0xa   : > { %p43_p3 = por %p42_p2, %p41_p1  ;;  %483 = sbr.rel (%p1491_p4) target bundleno = 33 (0x21), region = 68 }
   0xf   : > { %486 = sbr.rel (!%p43_p3) target bundleno = 33 (0x21), region = 72  ;;  %s488_s18 = sand.u32 (%p43_p3), 1, %s1666_s25  }
  0x10   : > { %s1603_s19 = sshll.u32 (%p43_p3), %s1670_s26, 3  ;;  %s1492_s1 = sshll.u32 (%p43_p3), %s488_s18, 6 }
  0x11   : > { %s2045_s22 = sld [smem:[#allocation3_spill]] (%p43_p3)  ;;  %s490_s29 = scalar_lea.vmem (%p43_p3), [#allocation2], %s1492_s1 }
  0x17   : > { %s493_s23 = scalar_lea.vmem %s2045_s22, %s1603_s19 }
  0x18   : > { %v510_v0 = vld [vmem:[%s493_s23] sm:$0xff]   ;;  %v514_v1 = vld [vmem:[%s493_s23 + $0x10] sm:$0xff]  }
  0x19   : > { %v518_v2 = vld [vmem:[%s493_s23 + $0x20] sm:$0xff]   ;;  %511 = vst [vmem:[%s490_s29] sm:$0xff] %v510_v0   ;;  %v522_v3 = vld [vmem:[%s493_s23 + $0x30] sm:$0xff]  }
  0x1a   : > { %515 = vst [vmem:[%s490_s29 + $0x8] sm:$0xff] %v514_v1   ;;  %v526_v4 = vld [vmem:[%s493_s23 + $0x40] sm:$0xff]   ;;  %v530_v5 = vld [vmem:[%s493_s23 + $0x50] sm:$0xff]  }
  0x1b   : > { %519 = vst [vmem:[%s490_s29 + $0x10] sm:$0xff] %v518_v2   ;;  %v534_v6 = vld [vmem:[%s493_s23 + $0x60] sm:$0xff]   ;;  %v538_v7 = vld [vmem:[%s493_s23 + $0x70] sm:$0xff]  }
  0x1c   : > { %523 = vst [vmem:[%s490_s29 + $0x18] sm:$0xff] %v522_v3  }
  0x1d   : > { %527 = vst [vmem:[%s490_s29 + $0x20] sm:$0xff] %v526_v4  }
  0x1e   : > { %531 = vst [vmem:[%s490_s29 + $0x28] sm:$0xff] %v530_v5  }
  0x1f   : > { %535 = vst [vmem:[%s490_s29 + $0x30] sm:$0xff] %v534_v6  }
  0x20   : > { %539 = vst [vmem:[%s490_s29 + $0x38] sm:$0xff] %v538_v7  }
  0x21 PF: > { %p1495_p5 = scmp.ge.s32.totalorder %s1670_s26, 1  ;;  %p623_p6 = scmp.lt.s32.totalorder %s1670_s26, 3 }
  0x23   : > { %p624_p7 = pnand %p1495_p5, %p623_p6 }
  0x24   : > { %s630_s20 = sand.u32 (!%p624_p7), 1, %s1662_s24   ;;  %s1497_s21 = sshll.u32 (!%p624_p7), %s1488_s27, 1 }
  0x25   : > { %627 = sbr.rel (%p624_p7) target bundleno = 889 (0x379), region = 125  ;;  %s1496_s22 = sshll.u32 (!%p624_p7), %s630_s20, 6 }
  0x26   : > { %p698_p8 = scmp.lt.s32.totalorder (!%p624_p7), %s1497_s21, 3  ;;  %s1810_s23 = scalar_lea.vmem (!%p624_p7), [#allocation2], %s1496_s22 }
  0x27   : > { %s2046_s18 = sld [smem:[#allocation4_spill]] (!%p624_p7) }
  0x2a   : > { %v783_v8 = vld [vmem:[%s2030_s5 + $0x8] sm:$0x3]  ;;  %v780_v9 = vld [vmem:[%s2029_s4] sm:$0xf]  ;;  %vm936_vm0 = vcmask 1043456   ;;  %vm858_vm1 = vcmask 1041408  }
  0x2b   : > { %v829_v10 = vunpack.c.l.b16 %v783_v8  ;;  %v938_v11 = vsel %vm936_vm0, %v780_v9, 0  ;;  %s2051_s21 = smov (!%p698_p8, %s1497_s21), 3  ;;  %v722_v13 = vld [vmem:[%s1810_s23] sm:$0xff]   ;;  %vm911_vm2 = vcmask 64512   ;;  %vm833_vm3 = vcmask 162816   ;;  %v724_v24 = vld [vmem:[%s1810_s23 + $0x8] sm:$0xff]  }
  0x2c   : > { %947 = vmatpush.bf16.msra.mxu1 %v938_v11  ;;  %v738_v15 = vunpack.c.l.bf16 %v722_v13  ;;  %v739_v16 = vunpack.c.h.bf16 %v722_v13  ;;  %v1612_v17 = vld [vmem:[%s2030_s5] sm:$0xff]  ;;  %s1498_s27 = sshll.u32 %s2051_s21, 3  ;;  %v740_v25 = vunpack.c.l.bf16 %v724_v24  ;;  %v741_v26 = vunpack.c.h.bf16 %v724_v24  ;;  %v1605_v30 = vld [vmem:[%s1810_s23 + $0x8] sm:$0xff]  ;;  %v726_v31 = vld [vmem:[%s1810_s23 + $0x10] sm:$0xff]   ;;  %s1500_s29 = sshll.u32 %s2051_s21, 2 }
  0x2d   : > { %v831_v12 = vpack.c.b16 %v829_v10, %v829_v10  ;;  %s701_s19 = scalar_lea.vmem %s2046_s18, %s1498_s27  ;;  %v1604_v22 = vld [vmem:[%s1810_s23] sm:$0xff]  ;;  %v742_v32 = vunpack.c.l.bf16 %v726_v31  ;;  %v743_v33 = vunpack.c.h.bf16 %v726_v31  ;;  %v1606_v37 = vld [vmem:[%s1810_s23 + $0x10] sm:$0xff]  ;;  %v728_v38 = vld [vmem:[%s1810_s23 + $0x18] sm:$0xff]   ;;  %vm1045_vm4 = vcmask 130048   ;;  %s713_s22 = scalar_lea.vmem %s2028_s3, %s1500_s29 }
  0x2e   : > { %v1823_v18 = vld [vmem:[%s701_s19] sm:$0xff]  ;;  %v1825_v19 = vld [vmem:[%s701_s19 + $0x8] sm:$0xff]  ;;  %v744_v39 = vunpack.c.l.bf16 %v728_v38  ;;  %v745_v40 = vunpack.c.h.bf16 %v728_v38  ;;  %v1607_v44 = vld [vmem:[%s1810_s23 + $0x18] sm:$0xff]  ;;  %s707_s19 = scalar_lea.vmem %s2027_s2, %s1500_s29  ;;  %vm1296_vm5 = vcmask 31744   ;;  %vm1370_vm6 = vcmask 261120   ;;  %s719_s24 = scalar_lea.vmem %s2042_s17, %s1498_s27 }
  0x2f   : > { %v860_v14 = vsel %vm858_vm1, %v831_v12, 0  ;;  %v756_v20 = vsub.f32 %v738_v15, %v1823_v18  ;;  %v757_v21 = vsub.f32 %v739_v16, %v1825_v19  ;;  %v758_v27 = vsub.f32 %v740_v25, %v1823_v18  ;;  %v730_v45 = vld [vmem:[%s1810_s23 + $0x20] sm:$0xff]   ;;  %v732_v52 = vld [vmem:[%s1810_s23 + $0x28] sm:$0xff]   ;;  %v734_v59 = vld [vmem:[%s1810_s23 + $0x30] sm:$0xff]  }
  0x30   : > { %868 = vmatpush.bf16.msra.mxu0 %v860_v14  ;;  %v759_v28 = vsub.f32 %v741_v26, %v1825_v19  ;;  %v760_v34 = vsub.f32 %v742_v32, %v1823_v18  ;;  %v761_v35 = vsub.f32 %v743_v33, %v1825_v19  ;;  %v762_v41 = vsub.f32 %v744_v39, %v1823_v18  ;;  %v1608_v51 = vld [vmem:[%s1810_s23 + $0x20] sm:$0xff]  ;;  %v1609_v58 = vld [vmem:[%s1810_s23 + $0x28] sm:$0xff]  ;;  %v1610_v1 = vld [vmem:[%s1810_s23 + $0x30] sm:$0xff] }
  0x31   : > { %v772_v23 = vpack.c.bf16 %v757_v21, %v756_v20  ;;  %v763_v42 = vsub.f32 %v745_v40, %v1825_v19  ;;  %v746_v46 = vunpack.c.l.bf16 %v730_v45  ;;  %v747_v47 = vunpack.c.h.bf16 %v730_v45  ;;  %v736_v2 = vld [vmem:[%s1810_s23 + $0x38] sm:$0xff]   ;;  %v1613_v7 = vld [vmem:[%s2032_s7] sm:$0xff] }
  0x32   : > { %v773_v29 = vpack.c.bf16 %v759_v28, %v758_v27  ;;  %v774_v36 = vpack.c.bf16 %v761_v35, %v760_v34  ;;  %v748_v53 = vunpack.c.l.bf16 %v732_v52  ;;  %v749_v54 = vunpack.c.h.bf16 %v732_v52  ;;  %v1611_v9 = vld [vmem:[%s1810_s23 + $0x38] sm:$0xff]  ;;  %1077 = vmatpush.bf16.msra.mxu2 %v1613_v7  ;;  %v1880_v13 = vld [vmem:[%s2031_s6] ss:$0 sm:$0xff] }
  0x33   : > { %1549 = vmatmul.msk.bf16.vlgmr.msra.gmra.mxu1 %vm911_vm2, %v772_v23  ;;  %v775_v43 = vpack.c.bf16 %v763_v42, %v762_v41  ;;  %v764_v48 = vsub.f32 %v746_v46, %v1823_v18  ;;  %v765_v49 = vsub.f32 %v747_v47, %v1825_v19  ;;  %v750_v60 = vunpack.c.l.bf16 %v734_v59 }
  0x34   : > { %869 = vmatpush.bf16.msra.mxu0 %v1612_v17  ;;  %v766_v55 = vsub.f32 %v748_v53, %v1823_v18  ;;  %v767_v56 = vsub.f32 %v749_v54, %v1825_v19  ;;  %v751_v61 = vunpack.c.h.bf16 %v734_v59  ;;  %v752_v3 = vunpack.c.l.bf16 %v736_v2 }
  0x35   : > { %v776_v50 = vpack.c.bf16 %v765_v49, %v764_v48  ;;  %v768_v62 = vsub.f32 %v750_v60, %v1823_v18  ;;  %v753_v4 = vunpack.c.h.bf16 %v736_v2 }
  0x36   : > { %v777_v57 = vpack.c.bf16 %v767_v56, %v766_v55  ;;  %v769_v63 = vsub.f32 %v751_v61, %v1825_v19  ;;  %v770_v5 = vsub.f32 %v752_v3, %v1823_v18 }
  0x37   : > { %1541 = vmatmul.msk.bf16.vlgmr.msra.gmra.mxu0 %vm833_vm3, %v1604_v22  ;;  %v771_v6 = vsub.f32 %v753_v4, %v1825_v19 }
  0x38   : > { %v778_v0 = vpack.c.bf16 %v769_v63, %v768_v62 }
  0x39   : > { %v779_v8 = vpack.c.bf16 %v771_v6, %v770_v5 }
  0x43   : > { %1550 = vmatmul.msk.bf16.gmra.mxu1 %vm911_vm2, %v773_v29 }
  0x47   : > { %1542 = vmatmul.msk.bf16.gmra.mxu0 %vm833_vm3, %v1605_v30 }
  0x53   : > { %1551 = vmatmul.msk.bf16.gmra.mxu1 %vm911_vm2, %v774_v36 }
  0x57   : > { %1543 = vmatmul.msk.bf16.gmra.mxu0 %vm833_vm3, %v1606_v37 }
  0x63   : > { %1552 = vmatmul.msk.bf16.gmra.mxu1 %vm911_vm2, %v775_v43 }
  0x67   : > { %1544 = vmatmul.msk.bf16.gmra.mxu0 %vm833_vm3, %v1607_v44 }
  0x73   : > { %1553 = vmatmul.msk.bf16.gmra.mxu1 %vm911_vm2, %v776_v50 }
  0x77   : > { %1545 = vmatmul.msk.bf16.gmra.mxu0 %vm833_vm3, %v1608_v51 }
  0x83   : > { %1554 = vmatmul.msk.bf16.gmra.mxu1 %vm911_vm2, %v777_v57 }
  0x87   : > { %1546 = vmatmul.msk.bf16.gmra.mxu0 %vm833_vm3, %v1609_v58 }
  0x93   : > { %1555 = vmatmul.msk.bf16.gmra.mxu1 %vm911_vm2, %v778_v0 }
  0x97   : > { %1547 = vmatmul.msk.bf16.gmra.mxu0 %vm833_vm3, %v1610_v1 }
  0xa3   : > { %1556 = vmatmul.msk.bf16.gmra.mxu1 %vm911_vm2, %v779_v8 }
  0xa7   : > { %1548 = vmatmul.msk.bf16.gmra.mxu0 %vm833_vm3, %v1611_v9 }
  0xb0   : > { %v949_v10 = vpop.f32.mrf.mxu1 }
  0xb4   : > { %v871_v11 = vpop.f32.mrf.mxu0 }
  0xb5   : > { %v950_v12 = vadd.f32 %v949_v10, %v871_v11 }
  0xb7   : > { %v993_v16 = vadd.f32 %v1880_v13, %v950_v12 }
  0xb8   : > { %v951_v14 = vpop.f32.mrf.mxu1 }
  0xb9   : > { %v1009_v19 = vmax.f32 %v993_v16, 0.0 }
  0xbc   : > { %v873_v15 = vpop.f32.mrf.mxu0 }
  0xbd   : > { %v952_v17 = vadd.f32 %v951_v14, %v873_v15 }
  0xbf   : > { %v994_v18 = vadd.f32 %v1880_v13, %v952_v17 }
  0xc0   : > { %v954_v22 = vpop.f32.mrf.mxu1 }
  0xc1   : > { %v1010_v20 = vmax.f32 %v994_v18, 0.0 }
  0xc3   : > { %v1025_v21 = vpack.c.bf16 %v1010_v20, %v1009_v19 }
  0xc4   : > { %v876_v23 = vpop.f32.mrf.mxu0 }
  0xc5   : > { %1561 = vmatmul.msk.bf16.vlgmr.msra.gmra.mxu2 %vm1045_vm4, %v1025_v21  ;;  %v955_v24 = vadd.f32 %v954_v22, %v876_v23 }
  0xc7   : > { %v995_v27 = vadd.f32 %v1880_v13, %v955_v24 }
  0xc8   : > { %v956_v25 = vpop.f32.mrf.mxu1 }
  0xc9   : > { %v1011_v30 = vmax.f32 %v995_v27, 0.0 }
  0xcc   : > { %v878_v26 = vpop.f32.mrf.mxu0 }
  0xcd   : > { %v957_v28 = vadd.f32 %v956_v25, %v878_v26 }
  0xcf   : > { %v996_v29 = vadd.f32 %v1880_v13, %v957_v28 }
  0xd0   : > { %v959_v33 = vpop.f32.mrf.mxu1 }
  0xd1   : > { %v1012_v31 = vmax.f32 %v996_v29, 0.0 }
  0xd3   : > { %v1026_v32 = vpack.c.bf16 %v1012_v31, %v1011_v30 }
  0xd4   : > { %v881_v34 = vpop.f32.mrf.mxu0 }
  0xd5   : > { %1562 = vmatmul.msk.bf16.gmra.mxu2 %vm1045_vm4, %v1026_v32  ;;  %v960_v35 = vadd.f32 %v959_v33, %v881_v34 }
  0xd7   : > { %v997_v38 = vadd.f32 %v1880_v13, %v960_v35 }
  0xd8   : > { %v961_v36 = vpop.f32.mrf.mxu1 }
  0xd9   : > { %v1013_v41 = vmax.f32 %v997_v38, 0.0  ;;  %v1912_v38 = vld [vmem:[%s2033_s8] ss:$0 sm:$0xff] }
  0xdc   : > { %v883_v37 = vpop.f32.mrf.mxu0 }
  0xdd   : > { %v962_v39 = vadd.f32 %v961_v36, %v883_v37  ;;  %v1614_v36 = vld [vmem:[%s2034_s9] sm:$0xff] }
  0xde   : > { %1186 = vmatpush.bf16.msra.mxu3 %v1614_v36 }
  0xdf   : > { %v998_v40 = vadd.f32 %v1880_v13, %v962_v39 }
  0xe0   : > { %v964_v44 = vpop.f32.mrf.mxu1 }
  0xe1   : > { %v1014_v42 = vmax.f32 %v998_v40, 0.0 }
  0xe3   : > { %v1027_v43 = vpack.c.bf16 %v1014_v42, %v1013_v41 }
  0xe4   : > { %v886_v45 = vpop.f32.mrf.mxu0 }
  0xe5   : > { %1563 = vmatmul.msk.bf16.gmra.mxu2 %vm1045_vm4, %v1027_v43  ;;  %v965_v46 = vadd.f32 %v964_v44, %v886_v45 }
  0xe7   : > { %v999_v49 = vadd.f32 %v1880_v13, %v965_v46 }
  0xe8   : > { %v966_v47 = vpop.f32.mrf.mxu1 }
  0xe9   : > { %v1015_v52 = vmax.f32 %v999_v49, 0.0 }
  0xec   : > { %v888_v48 = vpop.f32.mrf.mxu0 }
  0xed   : > { %v967_v50 = vadd.f32 %v966_v47, %v888_v48 }
  0xef   : > { %v1000_v51 = vadd.f32 %v1880_v13, %v967_v50 }
  0xf0   : > { %v969_v55 = vpop.f32.mrf.mxu1 }
  0xf1   : > { %v1016_v53 = vmax.f32 %v1000_v51, 0.0 }
  0xf3   : > { %v1028_v54 = vpack.c.bf16 %v1016_v53, %v1015_v52 }
  0xf4   : > { %v891_v56 = vpop.f32.mrf.mxu0 }
  0xf5   : > { %1564 = vmatmul.msk.bf16.gmra.mxu2 %vm1045_vm4, %v1028_v54  ;;  %v970_v57 = vadd.f32 %v969_v55, %v891_v56 }
  0xf7   : > { %v1001_v60 = vadd.f32 %v1880_v13, %v970_v57 }
  0xf8   : > { %v971_v58 = vpop.f32.mrf.mxu1 }
  0xf9   : > { %v1017_v63 = vmax.f32 %v1001_v60, 0.0 }
  0xfc   : > { %v893_v59 = vpop.f32.mrf.mxu0 }
  0xfd   : > { %v972_v61 = vadd.f32 %v971_v58, %v893_v59 }
  0xff   : > { %v1002_v62 = vadd.f32 %v1880_v13, %v972_v61 }
 0x100   : > { %v974_v2 = vpop.f32.mrf.mxu1 }
 0x101   : > { %v1018_v0 = vmax.f32 %v1002_v62, 0.0 }
 0x103   : > { %v1029_v1 = vpack.c.bf16 %v1018_v0, %v1017_v63 }
 0x104   : > { %v896_v3 = vpop.f32.mrf.mxu0 }
 0x105   : > { %1565 = vmatmul.msk.bf16.gmra.mxu2 %vm1045_vm4, %v1029_v1  ;;  %v975_v4 = vadd.f32 %v974_v2, %v896_v3 }
 0x107   : > { %v1003_v7 = vadd.f32 %v1880_v13, %v975_v4 }
 0x108   : > { %v976_v5 = vpop.f32.mrf.mxu1 }
 0x109   : > { %v1019_v10 = vmax.f32 %v1003_v7, 0.0 }
 0x10c   : > { %v898_v6 = vpop.f32.mrf.mxu0 }
 0x10d   : > { %v977_v8 = vadd.f32 %v976_v5, %v898_v6 }
 0x10f   : > { %v1004_v9 = vadd.f32 %v1880_v13, %v977_v8 }
 0x110   : > { %v979_v14 = vpop.f32.mrf.mxu1 }
 0x111   : > { %v1020_v11 = vmax.f32 %v1004_v9, 0.0 }
 0x113   : > { %v1030_v12 = vpack.c.bf16 %v1020_v11, %v1019_v10 }
 0x114   : > { %v901_v15 = vpop.f32.mrf.mxu0 }
 0x115   : > { %1566 = vmatmul.msk.bf16.gmra.mxu2 %vm1045_vm4, %v1030_v12  ;;  %v980_v16 = vadd.f32 %v979_v14, %v901_v15 }
 0x117   : > { %v1005_v19 = vadd.f32 %v1880_v13, %v980_v16 }
 0x118   : > { %v981_v17 = vpop.f32.mrf.mxu1 }
 0x119   : > { %v1021_v22 = vmax.f32 %v1005_v19, 0.0 }
 0x11c   : > { %v903_v18 = vpop.f32.mrf.mxu0 }
 0x11d   : > { %v982_v20 = vadd.f32 %v981_v17, %v903_v18 }
 0x11f   : > { %v1006_v21 = vadd.f32 %v1880_v13, %v982_v20 }
 0x120   : > { %v984_v25 = vpop.f32.mrf.mxu1 }
 0x121   : > { %v1022_v23 = vmax.f32 %v1006_v21, 0.0 }
 0x123   : > { %v1031_v24 = vpack.c.bf16 %v1022_v23, %v1021_v22 }
 0x124   : > { %v906_v26 = vpop.f32.mrf.mxu0 }
 0x125   : > { %1567 = vmatmul.msk.bf16.gmra.mxu2 %vm1045_vm4, %v1031_v24  ;;  %v985_v27 = vadd.f32 %v984_v25, %v906_v26  ;;  %v1262_v24 = vld [vmem:[%s2036_s11] sm:$0x3] }
 0x126   : > { %v1318_v25 = vld [vmem:[%s2038_s13] sm:$0xf] }
 0x127   : > { %v1007_v30 = vadd.f32 %v1880_v13, %v985_v27  ;;  %v1265_v26 = vld [vmem:[%s2037_s12] sm:$0xf]  ;;  %v1301_v27 = vsel %vm858_vm1, %v1262_v24, 0 }
 0x128   : > { %v986_v28 = vpop.f32.mrf.mxu1  ;;  %1310 = vmatpush.bf16.msrb.mxu2 %v1301_v27 }
 0x129   : > { %v1023_v33 = vmax.f32 %v1007_v30, 0.0 }
 0x12c   : > { %v908_v29 = vpop.f32.mrf.mxu0 }
 0x12d   : > { %v987_v31 = vadd.f32 %v986_v28, %v908_v29  ;;  %v1323_v28 = vsel %vm936_vm0, %v1318_v25, 0  ;;  %v1275_v29 = vsel %vm936_vm0, %v1265_v26, 0 }
 0x12e   : > { %1332 = vmatpush.bf16.msrb.mxu3 %v1323_v28  ;;  %1284 = vmatpush.bf16.msrb.mxu1 %v1275_v29 }
 0x12f   : > { %v1008_v32 = vadd.f32 %v1880_v13, %v987_v31 }
 0x131   : > { %v1024_v34 = vmax.f32 %v1008_v32, 0.0 }
 0x133   : > { %v1032_v35 = vpack.c.bf16 %v1024_v34, %v1023_v33 }
 0x135   : > { %1568 = vmatmul.msk.bf16.gmra.mxu2 %vm1045_vm4, %v1032_v35 }
 0x148   : > { %v1079_v37 = vpop.f32.mrf.mxu2 }
 0x149   : > { %v1080_v39 = vadd.f32 %v1912_v38, %v1079_v37 }
 0x14b   : > { %v1119_v41 = vmax.f32 %v1080_v39, 0.0  ;;  %v1953_v39 = vld [vmem:[%s2035_s10] ss:$0 sm:$0xff] }
 0x150   : > { %v1081_v40 = vpop.f32.mrf.mxu2 }
 0x151   : > { %v1082_v13 = vadd.f32 %v1912_v38, %v1081_v40 }
 0x153   : > { %v1120_v42 = vmax.f32 %v1082_v13, 0.0 }
 0x155   : > { %v1135_v43 = vpack.c.bf16 %v1120_v42, %v1119_v41 }
 0x157   : > { %1573 = vmatmul.msk.bf16.vlgmr.msra.gmra.mxu3 %vm1045_vm4, %v1135_v43 }
 0x158   : > { %v1084_v44 = vpop.f32.mrf.mxu2 }
 0x159   : > { %v1085_v45 = vadd.f32 %v1912_v38, %v1084_v44 }
 0x15b   : > { %v1121_v48 = vmax.f32 %v1085_v45, 0.0 }
 0x160   : > { %v1086_v46 = vpop.f32.mrf.mxu2 }
 0x161   : > { %v1087_v47 = vadd.f32 %v1912_v38, %v1086_v46 }
 0x163   : > { %v1122_v49 = vmax.f32 %v1087_v47, 0.0 }
 0x165   : > { %v1136_v50 = vpack.c.bf16 %v1122_v49, %v1121_v48 }
 0x167   : > { %1574 = vmatmul.msk.bf16.gmra.mxu3 %vm1045_vm4, %v1136_v50 }
 0x168   : > { %v1089_v51 = vpop.f32.mrf.mxu2 }
 0x169   : > { %v1090_v52 = vadd.f32 %v1912_v38, %v1089_v51 }
 0x16b   : > { %v1123_v55 = vmax.f32 %v1090_v52, 0.0 }
 0x170   : > { %v1091_v53 = vpop.f32.mrf.mxu2 }
 0x171   : > { %v1092_v54 = vadd.f32 %v1912_v38, %v1091_v53 }
 0x173   : > { %v1124_v56 = vmax.f32 %v1092_v54, 0.0 }
 0x175   : > { %v1137_v57 = vpack.c.bf16 %v1124_v56, %v1123_v55 }
 0x177   : > { %1575 = vmatmul.msk.bf16.gmra.mxu3 %vm1045_vm4, %v1137_v57 }
 0x178   : > { %v1094_v58 = vpop.f32.mrf.mxu2 }
 0x179   : > { %v1095_v59 = vadd.f32 %v1912_v38, %v1094_v58 }
 0x17b   : > { %v1125_v62 = vmax.f32 %v1095_v59, 0.0 }
 0x180   : > { %v1096_v60 = vpop.f32.mrf.mxu2 }
 0x181   : > { %v1097_v61 = vadd.f32 %v1912_v38, %v1096_v60 }
 0x183   : > { %v1126_v63 = vmax.f32 %v1097_v61, 0.0 }
 0x185   : > { %v1138_v0 = vpack.c.bf16 %v1126_v63, %v1125_v62 }
 0x187   : > { %1576 = vmatmul.msk.bf16.gmra.mxu3 %vm1045_vm4, %v1138_v0 }
 0x188   : > { %v1099_v1 = vpop.f32.mrf.mxu2 }
 0x189   : > { %v1100_v2 = vadd.f32 %v1912_v38, %v1099_v1 }
 0x18b   : > { %v1127_v5 = vmax.f32 %v1100_v2, 0.0  ;;  %v1615_v2 = vld [vmem:[%s707_s19] sm:$0xff] }
 0x18c   : > { %1590 = vmatmul.msk.bf16.vlgmr.msrb.gmra.mxu2 %vm1296_vm5, %v1615_v2 }
 0x190   : > { %v1101_v3 = vpop.f32.mrf.mxu2 }
 0x191   : > { %v1102_v4 = vadd.f32 %v1912_v38, %v1101_v3 }
 0x193   : > { %v1128_v6 = vmax.f32 %v1102_v4, 0.0  ;;  %v1616_v4 = vld [vmem:[%s713_s22] sm:$0xff] }
 0x194   : > { %1585 = vmatmul.msk.bf16.vlgmr.msrb.gmra.mxu1 %vm911_vm2, %v1616_v4 }
 0x195   : > { %v1139_v7 = vpack.c.bf16 %v1128_v6, %v1127_v5  ;;  %v1618_v6 = vld [vmem:[%s2040_s15 + $0x8] sm:$0xff] }
 0x196   : > { %1380 = vmatpush.bf16.msrb.mxu0 %v1618_v6 }
 0x197   : > { %1577 = vmatmul.msk.bf16.gmra.mxu3 %vm1045_vm4, %v1139_v7  ;;  %v1617_v7 = vld [vmem:[%s2040_s15] sm:$0xff] }
 0x198   : > { %v1104_v8 = vpop.f32.mrf.mxu2 }
 0x199   : > { %v1105_v9 = vadd.f32 %v1912_v38, %v1104_v8 }
 0x19a   : > { %1381 = vmatpush.bf16.msrb.mxu0 %v1617_v7 }
 0x19b   : > { %v1129_v12 = vmax.f32 %v1105_v9, 0.0 }
 0x1a0   : > { %v1106_v10 = vpop.f32.mrf.mxu2 }
 0x1a1   : > { %v1107_v11 = vadd.f32 %v1912_v38, %v1106_v10 }
 0x1a3   : > { %v1130_v14 = vmax.f32 %v1107_v11, 0.0 }
 0x1a5   : > { %v1140_v15 = vpack.c.bf16 %v1130_v14, %v1129_v12 }
 0x1a7   : > { %1578 = vmatmul.msk.bf16.gmra.mxu3 %vm1045_vm4, %v1140_v15 }
 0x1a8   : > { %v1109_v16 = vpop.f32.mrf.mxu2 }
 0x1a9   : > { %v1110_v17 = vadd.f32 %v1912_v38, %v1109_v16 }
 0x1ab   : > { %v1131_v20 = vmax.f32 %v1110_v17, 0.0 }
 0x1b0   : > { %v1111_v18 = vpop.f32.mrf.mxu2 }
 0x1b1   : > { %v1112_v19 = vadd.f32 %v1912_v38, %v1111_v18 }
 0x1b3   : > { %v1132_v21 = vmax.f32 %v1112_v19, 0.0 }
 0x1b5   : > { %v1141_v22 = vpack.c.bf16 %v1132_v21, %v1131_v20 }
 0x1b7   : > { %1579 = vmatmul.msk.bf16.gmra.mxu3 %vm1045_vm4, %v1141_v22 }
 0x1b8   : > { %v1114_v23 = vpop.f32.mrf.mxu2 }
 0x1b9   : > { %v1115_v30 = vadd.f32 %v1912_v38, %v1114_v23 }
 0x1bb   : > { %v1133_v33 = vmax.f32 %v1115_v30, 0.0 }
 0x1c0   : > { %v1116_v31 = vpop.f32.mrf.mxu2 }
 0x1c1   : > { %v1117_v32 = vadd.f32 %v1912_v38, %v1116_v31 }
 0x1c3   : > { %v1134_v34 = vmax.f32 %v1117_v32, 0.0 }
 0x1c5   : > { %v1142_v35 = vpack.c.bf16 %v1134_v34, %v1133_v33 }
 0x1c7   : > { %1580 = vmatmul.msk.bf16.gmra.mxu3 %vm1045_vm4, %v1142_v35 }
 0x1da   : > { %v1188_v36 = vpop.f32.mrf.mxu3 }
 0x1db   : > { %v1189_v40 = vadd.f32 %v1953_v39, %v1188_v36 }
 0x1dd   : > { %v1228_v42 = vsel %vm911_vm2, %v1189_v40, 0.0 }
 0x1e2   : > { %v1190_v37 = vpop.f32.mrf.mxu3 }
 0x1e3   : > { %v1191_v44 = vadd.f32 %v1953_v39, %v1190_v37 }
 0x1e5   : > { %v1243_v47 = vsel %vm911_vm2, %v1191_v44, 0.0 }
 0x1ea   : > { %v1193_v13 = vpop.f32.mrf.mxu3 }
 0x1eb   : > { %v1194_v41 = vadd.f32 %v1953_v39, %v1193_v13 }
 0x1ed   : > { %v1229_v38 = vsel %vm911_vm2, %v1194_v41, 0.0 }
 0x1ee   : > { %v1230_v43 = vadd.f32 %v1229_v38, %v1228_v42 }
 0x1f2   : > { %v1195_v45 = vpop.f32.mrf.mxu3 }
 0x1f3   : > { %v1196_v46 = vadd.f32 %v1953_v39, %v1195_v45 }
 0x1f5   : > { %v1244_v48 = vsel %vm911_vm2, %v1196_v46, 0.0 }
 0x1f6   : > { %v1245_v49 = vadd.f32 %v1244_v48, %v1243_v47 }
 0x1fa   : > { %v1198_v50 = vpop.f32.mrf.mxu3 }
 0x1fb   : > { %v1199_v51 = vadd.f32 %v1953_v39, %v1198_v50 }
 0x1fd   : > { %v1231_v52 = vsel %vm911_vm2, %v1199_v51, 0.0 }
 0x1fe   : > { %v1232_v53 = vadd.f32 %v1231_v52, %v1230_v43 }
 0x202   : > { %v1200_v54 = vpop.f32.mrf.mxu3 }
 0x203   : > { %v1201_v55 = vadd.f32 %v1953_v39, %v1200_v54 }
 0x205   : > { %v1246_v56 = vsel %vm911_vm2, %v1201_v55, 0.0 }
 0x206   : > { %v1247_v57 = vadd.f32 %v1246_v56, %v1245_v49 }
 0x20a   : > { %v1203_v58 = vpop.f32.mrf.mxu3 }
 0x20b   : > { %v1204_v59 = vadd.f32 %v1953_v39, %v1203_v58 }
 0x20d   : > { %v1233_v60 = vsel %vm911_vm2, %v1204_v59, 0.0 }
 0x20e   : > { %v1234_v61 = vadd.f32 %v1233_v60, %v1232_v53 }
 0x20f   : > { %v1312_v43 = vpop.f32.mrf.mxu2 }
 0x211   : > { %v1286_v38 = vpop.f32.mrf.mxu1 }
 0x212   : > { %v1205_v62 = vpop.f32.mrf.mxu3  ;;  %v1313_v45 = vadd.f32 %v1312_v43, %v1286_v38 }
 0x213   : > { %v1206_v9 = vadd.f32 %v1953_v39, %v1205_v62 }
 0x215   : > { %v1248_v15 = vsel %vm911_vm2, %v1206_v9, 0.0 }
 0x216   : > { %v1249_v23 = vadd.f32 %v1248_v15, %v1247_v57  ;;  %v1647_v57 = vld [vmem:[%s2041_s16] ss:$0 sm:$0xff] }
 0x217   : > { %v1314_v47 = vpop.f32.mrf.mxu2 }
 0x219   : > { %v1288_v46 = vpop.f32.mrf.mxu1 }
 0x21a   : > { %v1208_v63 = vpop.f32.mrf.mxu3  ;;  %v1315_v49 = vadd.f32 %v1314_v47, %v1288_v46 }
 0x21b   : > { %v1209_v10 = vadd.f32 %v1953_v39, %v1208_v63 }
 0x21d   : > { %v1235_v16 = vsel %vm911_vm2, %v1209_v10, 0.0 }
 0x21e   : > { %v1236_v24 = vadd.f32 %v1235_v16, %v1234_v61 }
 0x222   : > { %v1210_v0 = vpop.f32.mrf.mxu3 }
 0x223   : > { %v1211_v11 = vadd.f32 %v1953_v39, %v1210_v0 }
 0x225   : > { %v1250_v19 = vsel %vm911_vm2, %v1211_v11, 0.0 }
 0x226   : > { %v1251_v27 = vadd.f32 %v1250_v19, %v1249_v23 }
 0x22a   : > { %v1213_v1 = vpop.f32.mrf.mxu3 }
 0x22b   : > { %v1214_v12 = vadd.f32 %v1953_v39, %v1213_v1 }
 0x22d   : > { %v1237_v20 = vsel %vm911_vm2, %v1214_v12, 0.0 }
 0x22e   : > { %v1238_v28 = vadd.f32 %v1237_v20, %v1236_v24 }
 0x232   : > { %v1215_v3 = vpop.f32.mrf.mxu3 }
 0x233   : > { %v1216_v17 = vadd.f32 %v1953_v39, %v1215_v3 }
 0x235   : > { %v1252_v25 = vsel %vm911_vm2, %v1216_v17, 0.0 }
 0x236   : > { %v1253_v31 = vadd.f32 %v1252_v25, %v1251_v27 }
 0x23a   : > { %v1218_v5 = vpop.f32.mrf.mxu3 }
 0x23b   : > { %v1219_v18 = vadd.f32 %v1953_v39, %v1218_v5 }
 0x23d   : > { %v1239_v26 = vsel %vm911_vm2, %v1219_v18, 0.0 }
 0x23e   : > { %v1240_v32 = vadd.f32 %v1239_v26, %v1238_v28 }
 0x242   : > { %v1220_v8 = vpop.f32.mrf.mxu3 }
 0x243   : > { %v1221_v21 = vadd.f32 %v1953_v39, %v1220_v8 }
 0x245   : > { %v1254_v29 = vsel %vm911_vm2, %v1221_v21, 0.0 }
 0x246   : > { %v1255_v35 = vadd.f32 %v1254_v29, %v1253_v31 }
 0x24a   : > { %v1223_v14 = vpop.f32.mrf.mxu3 }
 0x24b   : > { %v1224_v22 = vadd.f32 %v1953_v39, %v1223_v14 }
 0x24d   : > { %v1241_v30 = vsel %vm911_vm2, %v1224_v22, 0.0 }
 0x24e   : > { %v1242_v36 = vadd.f32 %v1241_v30, %v1240_v32 }
 0x250   : > { %v1258_v13 = vmul.f32 0.125, %v1242_v36 }
 0x252   : > { %v1225_v33 = vpop.f32.mrf.mxu3 }
 0x253   : > { %v1226_v34 = vadd.f32 %v1953_v39, %v1225_v33  ;;  %v1646_v39 = vld [vmem:[%s2039_s14] ss:$0 sm:$0xff] }
 0x255   : > { %v1256_v37 = vsel %vm911_vm2, %v1226_v34, 0.0 }
 0x256   : > { %v1257_v40 = vadd.f32 %v1256_v37, %v1255_v35 }
 0x258   : > { %v1259_v41 = vmul.f32 0.125, %v1257_v40 }
 0x25a   : > { %v1317_v42 = vpack.c.bf16 %v1259_v41, %v1258_v13 }
 0x25c   : > { %1591 = vmatmul.msk.bf16.vlgmr.msrb.gmra.mxu3 %vm911_vm2, %v1317_v42 }
 0x2df   : > { %v1334_v44 = vpop.f32.mrf.mxu3 }
 0x2e0   : > { %v1339_v48 = vadd.f32 %v1334_v44, %v1313_v45 }
 0x2e2   : > { %v1345_v51 = vadd.f32 %v1646_v39, %v1339_v48 }
 0x2e4   : > { %v1347_v54 = vmax.f32 %v1345_v51, 0.0 }
 0x2e7   : > { %v1336_v50 = vpop.f32.mrf.mxu3 }
 0x2e8   : > { %v1340_v52 = vadd.f32 %v1336_v50, %v1315_v49 }
 0x2ea   : > { %v1346_v53 = vadd.f32 %v1646_v39, %v1340_v52 }
 0x2ec   : > { %v1348_v55 = vmax.f32 %v1346_v53, 0.0 }
 0x2ee   : > { %v1349_v56 = vpack.c.bf16 %v1348_v55, %v1347_v54 }
 0x2f0   : > { %1600 = vmatmul.msk.bf16.vlgmr.msrb.gmra.mxu0 %vm1370_vm6, %v1349_v56 }
 0x36d   : > { %v1383_v58 = vpop.f32.mrf.mxu0 }
 0x36e   : > { %v1384_v59 = vadd.f32 %v1647_v57, %v1383_v58 }
 0x370   : > { %1388 = vst.msk [vmem:[%s719_s24] sm:$0xff] %vm1045_vm4, %v1384_v59 }
 0x375   : > { %v1385_v60 = vpop.f32.mrf.mxu0 }
 0x376   : > { %v1386_v61 = vadd.f32 %v1647_v57, %v1385_v60 }
 0x378   : > { %1389 = vst.msk [vmem:[%s719_s24 + $0x8] sm:$0xff] %vm1045_vm4, %v1386_v61 }
 0x379 PF: > { %p24_p9 = scmp.ge.s32.totalorder %s1779_s28, 4   ;;  %s2047_s24 = smov %s1666_s25 }
 0x37a   : > { %s2048_s25 = smov %s1788_s30  ;;  %s2049_s26 = smov %s1779_s28 }
 0x37b   :  { %26 = sbr.rel (!%p24_p9) target bundleno = 5 (0x5), region = 173 }

// kernel: _lambda_.7
= control target key start
LH: loop header
LB: loop body
LE: loop exit
PB: predicated region body
PF: predicated region fallthrough
CT: control target
= control target key end

     0   :  { %s988_s30 = smov 0   ;;  %s990_s10 = smov 0   ;;  %s1110_s0 = inlined_call_operand.vmem [shape: bf16[4,32,18], index: 0, kind: input, shape index: {}]   ;;  %s1111_s1 = inlined_call_operand.vmem [shape: f32[32,2], index: 1, kind: input, shape index: {}]   ;;  %s1112_s2 = inlined_call_operand.vmem [shape: bf16[2,16], index: 2, kind: input, shape index: {}]   ;;  %s1113_s3 = inlined_call_operand.vmem [shape: bf16[18,16], index: 3, kind: input, shape index: {}]   ;;  %s1114_s4 = inlined_call_operand.vmem [shape: f32[1,16], index: 4, kind: input, shape index: {}]   ;;  %s1115_s5 = inlined_call_operand.vmem [shape: bf16[16,16], index: 5, kind: input, shape index: {}]   ;;  %s1116_s6 = inlined_call_operand.vmem [shape: f32[1,16], index: 6, kind: input, shape index: {}]   ;;  %s1117_s7 = inlined_call_operand.vmem [shape: bf16[16,8], index: 7, kind: input, shape index: {}]   ;;  %s1118_s8 = inlined_call_operand.vmem [shape: f32[1,8], index: 8, kind: input, shape index: {}]   ;;  %s1119_s9 = inlined_call_operand.vmem [shape: f32[32,8], index: 9, kind: output, shape index: {}]  }
   0x1   :  { %s992_s11 = smov 0  }
   0x2 LB: > { %s820_s12 = sadd.s32 4294967295, %s936_s11   ;;  %s1005_s13 = sadd.s32 1, %s936_s11   ;;  %s936_s11 = sphi %s992_s11, %s1122_s11   ;;  %s932_s10 = sphi %s990_s10, %s1121_s10   ;;  %s928_s30 = sphi %s988_s30, %s1120_s30  }
   0x3   : > { %s23_s14 = ssub.s32 %s936_s11, %s1005_s13  ;;  %s26_s15 = sadd.s32 1, %s932_s10 }
   0x4   : > { %p24_p0 = scmp.eq.s32.totalorder %s23_s14, 0  ;;  %p33_p1 = scmp.ne.s32.totalorder %s932_s10, %s928_s30 }
   0x5   : > { %p34_p2 = scmp.eq.s32.totalorder %s936_s11, 0  ;;  %p823_p4 = scmp.ge.s32.totalorder %s936_s11, 2 }
   0x6   : > { %s1014_s16 = scalar_select %p24_p0, %s932_s10, %s26_s15  }
   0x7   : > { %p35_p3 = por %p34_p2, %p33_p1  ;;  %279 = sbr.rel (%p823_p4) target bundleno = 20 (0x14), region = 44 }
   0xc   : > { %282 = sbr.rel (!%p35_p3) target bundleno = 20 (0x14), region = 48  ;;  %s284_s17 = sand.u32 (%p35_p3), 1, %s932_s10  }
   0xd   : > { %s879_s18 = sshll.u32 (%p35_p3), %s936_s11, 3  ;;  %s824_s19 = sshll.u32 (%p35_p3), %s284_s17, 5 }
   0xe   : > { %s289_s22 = scalar_lea.vmem (%p35_p3), %s1110_s0, %s879_s18  ;;  %s286_s23 = scalar_lea.vmem (%p35_p3), [#allocation2], %s824_s19 }
   0xf   : > { %v306_v0 = vld [vmem:[%s289_s22] sm:$0xff] (%p35_p3)   ;;  %v310_v1 = vld [vmem:[%s289_s22 + $0x10] sm:$0xff] (%p35_p3)  }
  0x10   : > { %v314_v2 = vld [vmem:[%s289_s22 + $0x20] sm:$0xff] (%p35_p3)   ;;  %307 = vst [vmem:[%s286_s23] sm:$0xff] (%p35_p3), %v306_v0   ;;  %v318_v3 = vld [vmem:[%s289_s22 + $0x30] sm:$0xff] (%p35_p3)  }
  0x11   : > { %311 = vst [vmem:[%s286_s23 + $0x8] sm:$0xff] %v310_v1  }
  0x12   : > { %315 = vst [vmem:[%s286_s23 + $0x10] sm:$0xff] %v314_v2  }
  0x13   : > { %319 = vst [vmem:[%s286_s23 + $0x18] sm:$0xff] %v318_v3  }
  0x14 PF: > { %p827_p5 = scmp.ge.s32.totalorder %s936_s11, 1  ;;  %p369_p6 = scmp.lt.s32.totalorder %s936_s11, 3 }
  0x16   : > { %p370_p7 = pnand %p827_p5, %p369_p6 }
  0x17   : > { %s376_s28 = sand.u32 (!%p370_p7), 1, %s928_s30   ;;  %s829_s29 = sshll.u32 (!%p370_p7), %s820_s12, 1 }
  0x18   : > { %373 = sbr.rel (%p370_p7) target bundleno = 526 (0x20e), region = 93  ;;  %s828_s14 = sshll.u32 (!%p370_p7), %s376_s28, 5 }
  0x19   : > { %p418_p8 = scmp.lt.s32.totalorder (!%p370_p7), %s829_s29, 3  ;;  %s1035_s15 = scalar_lea.vmem (!%p370_p7), [#allocation2], %s828_s14 }
  0x1d   : > { %v463_v4 = vld [vmem:[%s1113_s3 + $0x8] sm:$0x1]  ;;  %vm506_vm0 = vcmask 1040384   ;;  %v460_v5 = vld [vmem:[%s1112_s2] sm:$0x1]  ;;  %s1124_s29 = smov (!%p418_p8, %s829_s29), 3 }
  0x1e   : > { %v489_v6 = vunpack.c.l.b16 %v463_v4  ;;  %v553_v7 = vsel %vm506_vm0, %v460_v5, 0  ;;  %v430_v9 = vld [vmem:[%s1035_s15] sm:$0xff]   ;;  %s830_s12 = sshll.u32 %s1124_s29, 3  ;;  %vm539_vm1 = vcmask 15360   ;;  %vm493_vm2 = vcmask 146432   ;;  %v432_v20 = vld [vmem:[%s1035_s15 + $0x8] sm:$0xff]  }
  0x1f   : > { %562 = vmatpush.bf16.msra.mxu1 %v553_v7  ;;  %v438_v11 = vunpack.c.l.bf16 %v430_v9  ;;  %v439_v12 = vunpack.c.h.bf16 %v430_v9  ;;  %v884_v13 = vld [vmem:[%s1113_s3] sm:$0xff]  ;;  %s421_s19 = scalar_lea.vmem %s1111_s1, %s830_s12  ;;  %v440_v21 = vunpack.c.l.bf16 %v432_v20  ;;  %v441_v22 = vunpack.c.h.bf16 %v432_v20  ;;  %v881_v26 = vld [vmem:[%s1035_s15 + $0x8] sm:$0xff]  ;;  %v434_v27 = vld [vmem:[%s1035_s15 + $0x10] sm:$0xff]   ;;  %s427_s11 = scalar_lea.vmem %s1119_s9, %s830_s12 }
  0x20   : > { %v491_v8 = vpack.c.b16 %v489_v6, %v489_v6  ;;  %v446_v14 = vld [vmem:[%s421_s19] sm:$0xff]  ;;  %v447_v15 = vld [vmem:[%s421_s19 + $0x8] sm:$0xff]  ;;  %v442_v28 = vunpack.c.l.bf16 %v434_v27  ;;  %v443_v29 = vunpack.c.h.bf16 %v434_v27  ;;  %v882_v33 = vld [vmem:[%s1035_s15 + $0x10] sm:$0xff]  ;;  %vm620_vm3 = vcmask 130048  }
  0x21   : > { %v448_v16 = vsub.f32 %v438_v11, %v446_v14  ;;  %v449_v17 = vsub.f32 %v439_v12, %v447_v15  ;;  %v880_v18 = vld [vmem:[%s1035_s15] sm:$0xff]  ;;  %v450_v23 = vsub.f32 %v440_v21, %v446_v14  ;;  %v451_v24 = vsub.f32 %v441_v22, %v447_v15  ;;  %v436_v34 = vld [vmem:[%s1035_s15 + $0x18] sm:$0xff]  }
  0x22   : > { %v508_v10 = vsel %vm506_vm0, %v491_v8, 0  ;;  %v452_v30 = vsub.f32 %v442_v28, %v446_v14  ;;  %v453_v31 = vsub.f32 %v443_v29, %v447_v15  ;;  %v444_v35 = vunpack.c.l.bf16 %v436_v34  ;;  %v883_v40 = vld [vmem:[%s1035_s15 + $0x18] sm:$0xff]  ;;  %v885_v41 = vld [vmem:[%s1115_s5] sm:$0xff] }
  0x23   : > { %516 = vmatpush.bf16.msra.mxu0 %v508_v10  ;;  %v456_v19 = vpack.c.bf16 %v449_v17, %v448_v16  ;;  %v457_v25 = vpack.c.bf16 %v451_v24, %v450_v23  ;;  %v445_v36 = vunpack.c.h.bf16 %v436_v34  ;;  %640 = vmatpush.bf16.msra.mxu2 %v885_v41  ;;  %v911_v45 = vld [vmem:[%s1114_s4] ss:$0 sm:$0xff]  ;;  %vm727_vm4 = vcmask 64512  }
  0x24   : > { %v458_v32 = vpack.c.bf16 %v453_v31, %v452_v30  ;;  %v454_v37 = vsub.f32 %v444_v35, %v446_v14  ;;  %v886_v23 = vld [vmem:[%s1117_s7] sm:$0xff] }
  0x25   : > { %857 = vmatmul.msk.bf16.vlgmr.msra.gmra.mxu1 %vm539_vm1, %v456_v19  ;;  %v455_v38 = vsub.f32 %v445_v36, %v447_v15  ;;  %705 = vmatpush.bf16.msra.mxu3 %v886_v23 }
  0x27   : > { %517 = vmatpush.bf16.msra.mxu0 %v884_v13  ;;  %v459_v39 = vpack.c.bf16 %v455_v38, %v454_v37 }
  0x2a   : > { %853 = vmatmul.msk.bf16.vlgmr.msra.gmra.mxu0 %vm493_vm2, %v880_v18 }
  0x35   : > { %858 = vmatmul.msk.bf16.gmra.mxu1 %vm539_vm1, %v457_v25  ;;  %v912_v25 = vld [vmem:[%s1116_s6] ss:$0 sm:$0xff] }
  0x3a   : > { %854 = vmatmul.msk.bf16.gmra.mxu0 %vm493_vm2, %v881_v26 }
  0x45   : > { %859 = vmatmul.msk.bf16.gmra.mxu1 %vm539_vm1, %v458_v32 }
  0x4a   : > { %855 = vmatmul.msk.bf16.gmra.mxu0 %vm493_vm2, %v882_v33 }
  0x55   : > { %860 = vmatmul.msk.bf16.gmra.mxu1 %vm539_vm1, %v459_v39 }
  0x5a   : > { %856 = vmatmul.msk.bf16.gmra.mxu0 %vm493_vm2, %v883_v40 }
  0xa2   : > { %v564_v42 = vpop.f32.mrf.mxu1 }
  0xa7   : > { %v519_v43 = vpop.f32.mrf.mxu0 }
  0xa8   : > { %v565_v44 = vadd.f32 %v564_v42, %v519_v43 }
  0xaa   : > { %v566_v46 = vpop.f32.mrf.mxu1  ;;  %v588_v48 = vadd.f32 %v911_v45, %v565_v44 }
  0xac   : > { %v596_v51 = vmax.f32 %v588_v48, 0.0 }
  0xaf   : > { %v521_v47 = vpop.f32.mrf.mxu0 }
  0xb0   : > { %v567_v49 = vadd.f32 %v566_v46, %v521_v47 }
  0xb2   : > { %v589_v50 = vadd.f32 %v911_v45, %v567_v49  ;;  %v569_v54 = vpop.f32.mrf.mxu1 }
  0xb4   : > { %v597_v52 = vmax.f32 %v589_v50, 0.0 }
  0xb6   : > { %v604_v53 = vpack.c.bf16 %v597_v52, %v596_v51 }
  0xb7   : > { %v524_v55 = vpop.f32.mrf.mxu0 }
  0xb8   : > { %865 = vmatmul.msk.bf16.vlgmr.msra.gmra.mxu2 %vm620_vm3, %v604_v53  ;;  %v570_v56 = vadd.f32 %v569_v54, %v524_v55 }
  0xba   : > { %v571_v57 = vpop.f32.mrf.mxu1  ;;  %v590_v59 = vadd.f32 %v911_v45, %v570_v56 }
  0xbc   : > { %v598_v62 = vmax.f32 %v590_v59, 0.0 }
  0xbf   : > { %v526_v58 = vpop.f32.mrf.mxu0 }
  0xc0   : > { %v572_v60 = vadd.f32 %v571_v57, %v526_v58  ;;  %v913_v58 = vld [vmem:[%s1118_s8] ss:$0 sm:$0xff] }
  0xc2   : > { %v591_v61 = vadd.f32 %v911_v45, %v572_v60  ;;  %v574_v1 = vpop.f32.mrf.mxu1 }
  0xc4   : > { %v599_v63 = vmax.f32 %v591_v61, 0.0 }
  0xc6   : > { %v605_v0 = vpack.c.bf16 %v599_v63, %v598_v62 }
  0xc7   : > { %v529_v2 = vpop.f32.mrf.mxu0 }
  0xc8   : > { %866 = vmatmul.msk.bf16.gmra.mxu2 %vm620_vm3, %v605_v0  ;;  %v575_v3 = vadd.f32 %v574_v1, %v529_v2 }
  0xca   : > { %v576_v4 = vpop.f32.mrf.mxu1  ;;  %v592_v6 = vadd.f32 %v911_v45, %v575_v3 }
  0xcc   : > { %v600_v9 = vmax.f32 %v592_v6, 0.0 }
  0xcf   : > { %v531_v5 = vpop.f32.mrf.mxu0 }
  0xd0   : > { %v577_v7 = vadd.f32 %v576_v4, %v531_v5 }
  0xd2   : > { %v593_v8 = vadd.f32 %v911_v45, %v577_v7  ;;  %v579_v12 = vpop.f32.mrf.mxu1 }
  0xd4   : > { %v601_v10 = vmax.f32 %v593_v8, 0.0 }
  0xd6   : > { %v606_v11 = vpack.c.bf16 %v601_v10, %v600_v9 }
  0xd7   : > { %v534_v13 = vpop.f32.mrf.mxu0 }
  0xd8   : > { %867 = vmatmul.msk.bf16.gmra.mxu2 %vm620_vm3, %v606_v11  ;;  %v580_v14 = vadd.f32 %v579_v12, %v534_v13 }
  0xda   : > { %v581_v15 = vpop.f32.mrf.mxu1  ;;  %v594_v17 = vadd.f32 %v911_v45, %v580_v14 }
  0xdc   : > { %v602_v20 = vmax.f32 %v594_v17, 0.0 }
  0xdf   : > { %v536_v16 = vpop.f32.mrf.mxu0 }
  0xe0   : > { %v582_v18 = vadd.f32 %v581_v15, %v536_v16 }
  0xe2   : > { %v595_v19 = vadd.f32 %v911_v45, %v582_v18 }
  0xe4   : > { %v603_v21 = vmax.f32 %v595_v19, 0.0 }
  0xe6   : > { %v607_v22 = vpack.c.bf16 %v603_v21, %v602_v20 }
  0xe8   : > { %868 = vmatmul.msk.bf16.gmra.mxu2 %vm620_vm3, %v607_v22 }
 0x13b   : > { %v642_v24 = vpop.f32.mrf.mxu2 }
 0x13c   : > { %v643_v26 = vadd.f32 %v912_v25, %v642_v24 }
 0x13e   : > { %v662_v29 = vmax.f32 %v643_v26, 0.0 }
 0x143   : > { %v644_v27 = vpop.f32.mrf.mxu2 }
 0x144   : > { %v645_v28 = vadd.f32 %v912_v25, %v644_v27 }
 0x146   : > { %v663_v30 = vmax.f32 %v645_v28, 0.0 }
 0x148   : > { %v670_v31 = vpack.c.bf16 %v663_v30, %v662_v29 }
 0x14a   : > { %873 = vmatmul.msk.bf16.vlgmr.msra.gmra.mxu3 %vm620_vm3, %v670_v31 }
 0x14b   : > { %v647_v32 = vpop.f32.mrf.mxu2 }
 0x14c   : > { %v648_v33 = vadd.f32 %v912_v25, %v647_v32 }
 0x14e   : > { %v664_v36 = vmax.f32 %v648_v33, 0.0 }
 0x153   : > { %v649_v34 = vpop.f32.mrf.mxu2 }
 0x154   : > { %v650_v35 = vadd.f32 %v912_v25, %v649_v34 }
 0x156   : > { %v665_v37 = vmax.f32 %v650_v35, 0.0 }
 0x158   : > { %v671_v38 = vpack.c.bf16 %v665_v37, %v664_v36 }
 0x15a   : > { %874 = vmatmul.msk.bf16.gmra.mxu3 %vm620_vm3, %v671_v38 }
 0x15b   : > { %v652_v39 = vpop.f32.mrf.mxu2 }
 0x15c   : > { %v653_v40 = vadd.f32 %v912_v25, %v652_v39 }
 0x15e   : > { %v666_v43 = vmax.f32 %v653_v40, 0.0 }
 0x163   : > { %v654_v41 = vpop.f32.mrf.mxu2 }
 0x164   : > { %v655_v42 = vadd.f32 %v912_v25, %v654_v41 }
 0x166   : > { %v667_v44 = vmax.f32 %v655_v42, 0.0 }
 0x168   : > { %v672_v45 = vpack.c.bf16 %v667_v44, %v666_v43 }
 0x16a   : > { %875 = vmatmul.msk.bf16.gmra.mxu3 %vm620_vm3, %v672_v45 }
 0x16b   : > { %v657_v46 = vpop.f32.mrf.mxu2 }
 0x16c   : > { %v658_v47 = vadd.f32 %v912_v25, %v657_v46 }
 0x16e   : > { %v668_v50 = vmax.f32 %v658_v47, 0.0 }
 0x173   : > { %v659_v48 = vpop.f32.mrf.mxu2 }
 0x174   : > { %v660_v49 = vadd.f32 %v912_v25, %v659_v48 }
 0x176   : > { %v669_v51 = vmax.f32 %v660_v49, 0.0 }
 0x178   : > { %v673_v52 = vpack.c.bf16 %v669_v51, %v668_v50 }
 0x17a   : > { %876 = vmatmul.msk.bf16.gmra.mxu3 %vm620_vm3, %v673_v52 }
 0x1cd   : > { %v707_v53 = vpop.f32.mrf.mxu3 }
 0x1ce   : > { %v708_v61 = vadd.f32 %v913_v58, %v707_v53 }
 0x1d0   : > { %v728_v0 = vsel %vm727_vm4, %v708_v61, 0.0 }
 0x1d5   : > { %v709_v54 = vpop.f32.mrf.mxu3 }
 0x1d6   : > { %v710_v7 = vadd.f32 %v913_v58, %v709_v54 }
 0x1d8   : > { %v735_v13 = vsel %vm727_vm4, %v710_v7, 0.0 }
 0x1dd   : > { %v712_v55 = vpop.f32.mrf.mxu3 }
 0x1de   : > { %v713_v60 = vadd.f32 %v913_v58, %v712_v55 }
 0x1e0   : > { %v729_v63 = vsel %vm727_vm4, %v713_v60, 0.0 }
 0x1e1   : > { %v730_v2 = vadd.f32 %v729_v63, %v728_v0 }
 0x1e5   : > { %v714_v56 = vpop.f32.mrf.mxu3 }
 0x1e6   : > { %v715_v4 = vadd.f32 %v913_v58, %v714_v56 }
 0x1e8   : > { %v736_v11 = vsel %vm727_vm4, %v715_v4, 0.0 }
 0x1e9   : > { %v737_v15 = vadd.f32 %v736_v11, %v735_v13 }
 0x1ed   : > { %v717_v57 = vpop.f32.mrf.mxu3 }
 0x1ee   : > { %v718_v62 = vadd.f32 %v913_v58, %v717_v57 }
 0x1f0   : > { %v731_v1 = vsel %vm727_vm4, %v718_v62, 0.0 }
 0x1f1   : > { %v732_v6 = vadd.f32 %v731_v1, %v730_v2 }
 0x1f5   : > { %v719_v59 = vpop.f32.mrf.mxu3 }
 0x1f6   : > { %v720_v8 = vadd.f32 %v913_v58, %v719_v59 }
 0x1f8   : > { %v738_v14 = vsel %vm727_vm4, %v720_v8, 0.0 }
 0x1f9   : > { %v739_v18 = vadd.f32 %v738_v14, %v737_v15 }
 0x1fd   : > { %v722_v3 = vpop.f32.mrf.mxu3 }
 0x1fe   : > { %v723_v5 = vadd.f32 %v913_v58, %v722_v3 }
 0x200   : > { %v733_v9 = vsel %vm727_vm4, %v723_v5, 0.0 }
 0x201   : > { %v734_v10 = vadd.f32 %v733_v9, %v732_v6 }
 0x203   : > { %v742_v12 = vmul.f32 0.25, %v734_v10 }
 0x205   : > { %744 = vst.msk [vmem:[%s427_s11] sm:$0xff] %vm727_vm4, %v742_v12  ;;  %v724_v16 = vpop.f32.mrf.mxu3 }
 0x206   : > { %v725_v17 = vadd.f32 %v913_v58, %v724_v16 }
 0x208   : > { %v740_v19 = vsel %vm727_vm4, %v725_v17, 0.0 }
 0x209   : > { %v741_v20 = vadd.f32 %v740_v19, %v739_v18 }
 0x20b   : > { %v743_v21 = vmul.f32 0.25, %v741_v20 }
 0x20d   : > { %745 = vst.msk [vmem:[%s427_s11 + $0x8] sm:$0xff] %vm727_vm4, %v743_v21 }
 0x20e PF: > { %p16_p9 = scmp.ge.s32.totalorder %s1005_s13, 4   ;;  %s1120_s30 = smov %s932_s10 }
 0x20f   : > { %s1121_s10 = smov %s1014_s16  ;;  %s1122_s11 = smov %s1005_s13 }
 0x210   :  { %18 = sbr.rel (!%p16_p9) target bundleno = 2 (0x2), region = 135 }

// kernel: neg.5
= control target key start
LH: loop header
LB: loop body
LE: loop exit
PB: predicated region body
PF: predicated region fallthrough
CT: control target
= control target key end

     0   :  { %s40_s0 = inlined_call_operand.vmem [shape: f32[2,8,16], index: 0, kind: input, shape index: {}]   ;;  %s41_s1 = inlined_call_operand.vmem [shape: f32[2,8,16], index: 1, kind: output, shape index: {}]  }
   0x1   :  { %v2_v0 = vld [vmem:[%s40_s0] sm:$0xff]  ;;  %v16_v1 = vld [vmem:[%s40_s0 + $0x8] sm:$0xff] }
   0x2   :  { %v5_v2 = vxor.u32 2147483648, %v2_v0  ;;  %v12_v3 = vxor.u32 2147483648, %v16_v1 }
   0x4   :  { %7 = vst [vmem:[%s41_s1] sm:$0xff] %v5_v2 }
   0x5   :  { %17 = vst [vmem:[%s41_s1 + $0x8] sm:$0xff] %v12_v3 }

// kernel: _lambda_.8
= control target key start
LH: loop header
LB: loop body
LE: loop exit
PB: predicated region body
PF: predicated region fallthrough
CT: control target
= control target key end

     0   :  { %s2037_s0 = inlined_call_operand.vmem [shape: bf16[8,32,32], index: 0, kind: input, shape index: {}]   ;;  %s2038_s1 = inlined_call_operand.vmem [shape: f32[32,8], index: 1, kind: input, shape index: {}]   ;;  %s2039_s2 = inlined_call_operand.vmem [shape: bf16[32,16], index: 2, kind: input, shape index: {}]   ;;  %s2040_s3 = inlined_call_operand.vmem [shape: bf16[32,8], index: 3, kind: input, shape index: {}]   ;;  %s2041_s4 = inlined_call_operand.vmem [shape: bf16[8,16], index: 4, kind: input, shape index: {}]   ;;  %s2042_s5 = inlined_call_operand.vmem [shape: bf16[32,16], index: 5, kind: input, shape index: {}]   ;;  %s2043_s6 = inlined_call_operand.vmem [shape: f32[1,16], index: 6, kind: input, shape index: {}]   ;;  %s2044_s7 = inlined_call_operand.vmem [shape: bf16[16,16], index: 7, kind: input, shape index: {}]   ;;  %s2045_s8 = inlined_call_operand.vmem [shape: f32[1,16], index: 8, kind: input, shape index: {}]   ;;  %s2046_s9 = inlined_call_operand.vmem [shape: bf16[16,8], index: 9, kind: input, shape index: {}]   ;;  %s2047_s10 = inlined_call_operand.vmem [shape: f32[1,8], index: 10, kind: input, shape index: {}]   ;;  %s2048_s11 = inlined_call_operand.vmem [shape: bf16[16,32], index: 11, kind: input, shape index: {}]   ;;  %s2049_s12 = inlined_call_operand.vmem [shape: bf16[8,32], index: 12, kind: input, shape index: {}]   ;;  %s2050_s13 = inlined_call_operand.vmem [shape: bf16[8,32], index: 13, kind: input, shape index: {}]   ;;  %s2051_s14 = inlined_call_operand.vmem [shape: f32[1,32], index: 14, kind: input, shape index: {}]   ;;  %s2052_s15 = inlined_call_operand.vmem [shape: bf16[32,32], index: 15, kind: input, shape index: {}]   ;;  %s2053_s16 = inlined_call_operand.vmem [shape: f32[1,32], index: 16, kind: input, shape index: {}]   ;;  %s2054_s17 = inlined_call_operand.vmem [shape: f32[32,32], index: 17, kind: output, shape index: {}]  }
   0x1   :  { %2055 = sst [smem:[#allocation3_spill]] %s2037_s0 }
   0x2   :  { %2056 = sst [smem:[#allocation4_spill]] %s2038_s1 }
   0x3   :  { %s1774_s24 = smov 0   ;;  %s1776_s25 = smov 0  }
   0x4   :  { %s1778_s26 = smov 0  }
   0x5 LB: > { %s1490_s27 = sadd.s32 4294967295, %s1682_s26   ;;  %s1791_s28 = sadd.s32 1, %s1682_s26   ;;  %s1682_s26 = sphi %s1778_s26, %s2061_s26   ;;  %s1678_s25 = sphi %s1776_s25, %s2060_s25   ;;  %s1674_s24 = sphi %s1774_s24, %s2059_s24  }
   0x6   : > { %s31_s29 = ssub.s32 %s1682_s26, %s1791_s28  ;;  %s34_s0 = sadd.s32 1, %s1678_s25 }
   0x7   : > { %p32_p0 = scmp.eq.s32.totalorder %s31_s29, 0  ;;  %p41_p1 = scmp.ne.s32.totalorder %s1678_s25, %s1674_s24 }
   0x8   : > { %p42_p2 = scmp.eq.s32.totalorder %s1682_s26, 0  ;;  %p1493_p4 = scmp.ge.s32.totalorder %s1682_s26, 2 }
   0x9   : > { %s1800_s30 = scalar_select %p32_p0, %s1678_s25, %s34_s0  }
   0xa   : > { %p43_p3 = por %p42_p2, %p41_p1  ;;  %483 = sbr.rel (%p1493_p4) target bundleno = 33 (0x21), region = 68 }
   0xf   : > { %486 = sbr.rel (!%p43_p3) target bundleno = 33 (0x21), region = 72  ;;  %s488_s18 = sand.u32 (%p43_p3), 1, %s1678_s25  }
  0x10   : > { %s1613_s19 = sshll.u32 (%p43_p3), %s1682_s26, 3  ;;  %s1494_s1 = sshll.u32 (%p43_p3), %s488_s18, 6 }
  0x11   : > { %s2057_s22 = sld [smem:[#allocation3_spill]] (%p43_p3)  ;;  %s490_s29 = scalar_lea.vmem (%p43_p3), [#allocation2], %s1494_s1 }
  0x17   : > { %s493_s23 = scalar_lea.vmem %s2057_s22, %s1613_s19 }
  0x18   : > { %v510_v0 = vld [vmem:[%s493_s23] sm:$0xff]   ;;  %v514_v1 = vld [vmem:[%s493_s23 + $0x10] sm:$0xff]  }
  0x19   : > { %v518_v2 = vld [vmem:[%s493_s23 + $0x20] sm:$0xff]   ;;  %511 = vst [vmem:[%s490_s29] sm:$0xff] %v510_v0   ;;  %v522_v3 = vld [vmem:[%s493_s23 + $0x30] sm:$0xff]  }
  0x1a   : > { %515 = vst [vmem:[%s490_s29 + $0x8] sm:$0xff] %v514_v1   ;;  %v526_v4 = vld [vmem:[%s493_s23 + $0x40] sm:$0xff]   ;;  %v530_v5 = vld [vmem:[%s493_s23 + $0x50] sm:$0xff]  }
  0x1b   : > { %519 = vst [vmem:[%s490_s29 + $0x10] sm:$0xff] %v518_v2   ;;  %v534_v6 = vld [vmem:[%s493_s23 + $0x60] sm:$0xff]   ;;  %v538_v7 = vld [vmem:[%s493_s23 + $0x70] sm:$0xff]  }
  0x1c   : > { %523 = vst [vmem:[%s490_s29 + $0x18] sm:$0xff] %v522_v3  }
  0x1d   : > { %527 = vst [vmem:[%s490_s29 + $0x20] sm:$0xff] %v526_v4  }
  0x1e   : > { %531 = vst [vmem:[%s490_s29 + $0x28] sm:$0xff] %v530_v5  }
  0x1f   : > { %535 = vst [vmem:[%s490_s29 + $0x30] sm:$0xff] %v534_v6  }
  0x20   : > { %539 = vst [vmem:[%s490_s29 + $0x38] sm:$0xff] %v538_v7  }
  0x21 PF: > { %p1497_p5 = scmp.ge.s32.totalorder %s1682_s26, 1  ;;  %p623_p6 = scmp.lt.s32.totalorder %s1682_s26, 3 }
  0x23   : > { %p624_p7 = pnand %p1497_p5, %p623_p6 }
  0x24   : > { %s630_s20 = sand.u32 (!%p624_p7), 1, %s1674_s24   ;;  %s1499_s29 = sshll.u32 (!%p624_p7), %s1490_s27, 1 }
  0x25   : > { %627 = sbr.rel (%p624_p7) target bundleno = 885 (0x375), region = 125  ;;  %s1498_s23 = sshll.u32 (!%p624_p7), %s630_s20, 6 }
  0x26   : > { %p698_p8 = scmp.lt.s32.totalorder (!%p624_p7), %s1499_s29, 3  ;;  %s1823_s0 = scalar_lea.vmem (!%p624_p7), [#allocation2], %s1498_s23 }
  0x27   : > { %s2058_s18 = sld [smem:[#allocation4_spill]] (!%p624_p7) }
  0x2a   : > { %v1623_v8 = vld [vmem:[%s2042_s5 + $0x8] sm:$0xff]  ;;  %v780_v9 = vld [vmem:[%s2041_s4] sm:$0xf]  ;;  %vm936_vm0 = vcmask 1043456   ;;  %s2063_s29 = smov (!%p698_p8, %s1499_s29), 3  ;;  %vm837_vm1 = vcmask 261120  }
  0x2b   : > { %v1622_v10 = vld [vmem:[%s2042_s5] sm:$0xff]  ;;  %v938_v11 = vsel %vm936_vm0, %v780_v9, 0  ;;  %868 = vmatpush.bf16.msra.mxu0 %v1623_v8  ;;  %s1500_s24 = sshll.u32 %s2063_s29, 3  ;;  %vm911_vm2 = vcmask 64512   ;;  %v724_v21 = vld [vmem:[%s1823_s0 + $0x8] sm:$0xff]   ;;  %v726_v28 = vld [vmem:[%s1823_s0 + $0x10] sm:$0xff]  }
  0x2c   : > { %947 = vmatpush.bf16.msra.mxu1 %v938_v11  ;;  %v722_v12 = vld [vmem:[%s1823_s0] sm:$0xff]   ;;  %v740_v22 = vunpack.c.l.bf16 %v724_v21  ;;  %v741_v23 = vunpack.c.h.bf16 %v724_v21  ;;  %v1615_v24 = vld [vmem:[%s1823_s0 + $0x8] sm:$0xff]  ;;  %v742_v29 = vunpack.c.l.bf16 %v726_v28  ;;  %v743_v30 = vunpack.c.h.bf16 %v726_v28  ;;  %v1616_v31 = vld [vmem:[%s1823_s0 + $0x10] sm:$0xff]  ;;  %s1502_s26 = sshll.u32 %s2063_s29, 2  ;;  %s719_s22 = scalar_lea.vmem %s2054_s17, %s1500_s24 }
  0x2d   : > { %v1614_v13 = vld [vmem:[%s1823_s0] sm:$0xff]  ;;  %v738_v14 = vunpack.c.l.bf16 %v722_v12  ;;  %v739_v15 = vunpack.c.h.bf16 %v722_v12  ;;  %s701_s19 = scalar_lea.vmem %s2058_s18, %s1500_s24  ;;  %v728_v35 = vld [vmem:[%s1823_s0 + $0x18] sm:$0xff]   ;;  %v732_v49 = vld [vmem:[%s1823_s0 + $0x28] sm:$0xff]   ;;  %vm1045_vm3 = vcmask 130048   ;;  %s713_s21 = scalar_lea.vmem %s2040_s3, %s1502_s26 }
  0x2e   : > { %v1835_v16 = vld [vmem:[%s701_s19] sm:$0xff]  ;;  %v1837_v17 = vld [vmem:[%s701_s19 + $0x8] sm:$0xff]  ;;  %v744_v36 = vunpack.c.l.bf16 %v728_v35  ;;  %v745_v37 = vunpack.c.h.bf16 %v728_v35  ;;  %v1617_v38 = vld [vmem:[%s1823_s0 + $0x18] sm:$0xff]  ;;  %v748_v50 = vunpack.c.l.bf16 %v732_v49  ;;  %v749_v51 = vunpack.c.h.bf16 %v732_v49  ;;  %s707_s19 = scalar_lea.vmem %s2039_s2, %s1502_s26 }
  0x2f   : > { %869 = vmatpush.bf16.msra.mxu0 %v1622_v10  ;;  %v756_v18 = vsub.f32 %v738_v14, %v1835_v16  ;;  %v757_v19 = vsub.f32 %v739_v15, %v1837_v17  ;;  %v758_v25 = vsub.f32 %v740_v22, %v1835_v16  ;;  %v759_v26 = vsub.f32 %v741_v23, %v1837_v17  ;;  %v730_v42 = vld [vmem:[%s1823_s0 + $0x20] sm:$0xff]   ;;  %v1619_v52 = vld [vmem:[%s1823_s0 + $0x28] sm:$0xff]  ;;  %v734_v56 = vld [vmem:[%s1823_s0 + $0x30] sm:$0xff]  }
  0x30   : > { %v760_v32 = vsub.f32 %v742_v29, %v1835_v16  ;;  %v761_v33 = vsub.f32 %v743_v30, %v1837_v17  ;;  %v762_v39 = vsub.f32 %v744_v36, %v1835_v16  ;;  %v763_v40 = vsub.f32 %v745_v37, %v1837_v17  ;;  %v1618_v45 = vld [vmem:[%s1823_s0 + $0x20] sm:$0xff]  ;;  %v1620_v59 = vld [vmem:[%s1823_s0 + $0x30] sm:$0xff]  ;;  %v736_v63 = vld [vmem:[%s1823_s0 + $0x38] sm:$0xff]  }
  0x31   : > { %v772_v20 = vpack.c.bf16 %v757_v19, %v756_v18  ;;  %v773_v27 = vpack.c.bf16 %v759_v26, %v758_v25  ;;  %v746_v43 = vunpack.c.l.bf16 %v730_v42  ;;  %v747_v44 = vunpack.c.h.bf16 %v730_v42  ;;  %v1621_v2 = vld [vmem:[%s1823_s0 + $0x38] sm:$0xff]  ;;  %v1624_v5 = vld [vmem:[%s2044_s7] sm:$0xff] }
  0x32   : > { %1547 = vmatmul.msk.bf16.vlgmr.msra.gmra.mxu0 %vm837_vm1, %v1614_v13  ;;  %v774_v34 = vpack.c.bf16 %v761_v33, %v760_v32  ;;  %v775_v41 = vpack.c.bf16 %v763_v40, %v762_v39  ;;  %v766_v53 = vsub.f32 %v748_v50, %v1835_v16  ;;  %v767_v54 = vsub.f32 %v749_v51, %v1837_v17  ;;  %v1891_v11 = vld [vmem:[%s2043_s6] ss:$0 sm:$0xff] }
  0x33   : > { %1555 = vmatmul.msk.bf16.vlgmr.msra.gmra.mxu1 %vm911_vm2, %v772_v20  ;;  %v764_v46 = vsub.f32 %v746_v43, %v1835_v16  ;;  %v765_v47 = vsub.f32 %v747_v44, %v1837_v17  ;;  %v750_v57 = vunpack.c.l.bf16 %v734_v56  ;;  %v751_v58 = vunpack.c.h.bf16 %v734_v56  ;;  %1077 = vmatpush.bf16.msra.mxu2 %v1624_v5 }
  0x34   : > { %v777_v55 = vpack.c.bf16 %v767_v54, %v766_v53  ;;  %v752_v0 = vunpack.c.l.bf16 %v736_v63  ;;  %v753_v1 = vunpack.c.h.bf16 %v736_v63 }
  0x35   : > { %v776_v48 = vpack.c.bf16 %v765_v47, %v764_v46  ;;  %v768_v60 = vsub.f32 %v750_v57, %v1835_v16  ;;  %v769_v61 = vsub.f32 %v751_v58, %v1837_v17 }
  0x36   : > { %v770_v3 = vsub.f32 %v752_v0, %v1835_v16  ;;  %v771_v4 = vsub.f32 %v753_v1, %v1837_v17 }
  0x37   : > { %v778_v62 = vpack.c.bf16 %v769_v61, %v768_v60 }
  0x38   : > { %v779_v6 = vpack.c.bf16 %v771_v4, %v770_v3 }
  0x42   : > { %1548 = vmatmul.msk.bf16.gmra.mxu0 %vm837_vm1, %v1615_v24 }
  0x43   : > { %1556 = vmatmul.msk.bf16.gmra.mxu1 %vm911_vm2, %v773_v27 }
  0x52   : > { %1549 = vmatmul.msk.bf16.gmra.mxu0 %vm837_vm1, %v1616_v31 }
  0x53   : > { %1557 = vmatmul.msk.bf16.gmra.mxu1 %vm911_vm2, %v774_v34 }
  0x62   : > { %1550 = vmatmul.msk.bf16.gmra.mxu0 %vm837_vm1, %v1617_v38 }
  0x63   : > { %1558 = vmatmul.msk.bf16.gmra.mxu1 %vm911_vm2, %v775_v41 }
  0x72   : > { %1551 = vmatmul.msk.bf16.gmra.mxu0 %vm837_vm1, %v1618_v45 }
  0x73   : > { %1559 = vmatmul.msk.bf16.gmra.mxu1 %vm911_vm2, %v776_v48 }
  0x82   : > { %1552 = vmatmul.msk.bf16.gmra.mxu0 %vm837_vm1, %v1619_v52 }
  0x83   : > { %1560 = vmatmul.msk.bf16.gmra.mxu1 %vm911_vm2, %v777_v55 }
  0x92   : > { %1553 = vmatmul.msk.bf16.gmra.mxu0 %vm837_vm1, %v1620_v59 }
  0x93   : > { %1561 = vmatmul.msk.bf16.gmra.mxu1 %vm911_vm2, %v778_v62 }
  0xa2   : > { %1554 = vmatmul.msk.bf16.gmra.mxu0 %vm837_vm1, %v1621_v2 }
  0xa3   : > { %1562 = vmatmul.msk.bf16.gmra.mxu1 %vm911_vm2, %v779_v6 }
  0xaf   : > { %v871_v7 = vpop.f32.mrf.mxu0 }
  0xb0   : > { %v949_v8 = vpop.f32.mrf.mxu1 }
  0xb1   : > { %v950_v10 = vadd.f32 %v949_v8, %v871_v7 }
  0xb3   : > { %v993_v13 = vadd.f32 %v1891_v11, %v950_v10 }
  0xb5   : > { %v1009_v17 = vmax.f32 %v993_v13, 0.0 }
  0xb7   : > { %v873_v9 = vpop.f32.mrf.mxu0 }
  0xb8   : > { %v951_v12 = vpop.f32.mrf.mxu1 }
  0xb9   : > { %v952_v14 = vadd.f32 %v951_v12, %v873_v9 }
  0xbb   : > { %v994_v15 = vadd.f32 %v1891_v11, %v952_v14 }
  0xbd   : > { %v1010_v18 = vmax.f32 %v994_v15, 0.0 }
  0xbf   : > { %v876_v16 = vpop.f32.mrf.mxu0  ;;  %v1025_v19 = vpack.c.bf16 %v1010_v18, %v1009_v17 }
  0xc0   : > { %v954_v20 = vpop.f32.mrf.mxu1 }
  0xc1   : > { %1567 = vmatmul.msk.bf16.vlgmr.msra.gmra.mxu2 %vm1045_vm3, %v1025_v19  ;;  %v955_v22 = vadd.f32 %v954_v20, %v876_v16 }
  0xc3   : > { %v995_v24 = vadd.f32 %v1891_v11, %v955_v22 }
  0xc5   : > { %v1011_v28 = vmax.f32 %v995_v24, 0.0 }
  0xc7   : > { %v878_v21 = vpop.f32.mrf.mxu0 }
  0xc8   : > { %v956_v23 = vpop.f32.mrf.mxu1 }
  0xc9   : > { %v957_v25 = vadd.f32 %v956_v23, %v878_v21 }
  0xcb   : > { %v996_v26 = vadd.f32 %v1891_v11, %v957_v25 }
  0xcd   : > { %v1012_v29 = vmax.f32 %v996_v26, 0.0 }
  0xcf   : > { %v881_v27 = vpop.f32.mrf.mxu0  ;;  %v1026_v30 = vpack.c.bf16 %v1012_v29, %v1011_v28 }
  0xd0   : > { %v959_v31 = vpop.f32.mrf.mxu1 }
  0xd1   : > { %1568 = vmatmul.msk.bf16.gmra.mxu2 %vm1045_vm3, %v1026_v30  ;;  %v960_v33 = vadd.f32 %v959_v31, %v881_v27 }
  0xd3   : > { %v997_v35 = vadd.f32 %v1891_v11, %v960_v33 }
  0xd5   : > { %v1013_v39 = vmax.f32 %v997_v35, 0.0  ;;  %v1923_v35 = vld [vmem:[%s2045_s8] ss:$0 sm:$0xff] }
  0xd7   : > { %v883_v32 = vpop.f32.mrf.mxu0 }
  0xd8   : > { %v961_v34 = vpop.f32.mrf.mxu1 }
  0xd9   : > { %v962_v36 = vadd.f32 %v961_v34, %v883_v32  ;;  %v1625_v32 = vld [vmem:[%s2046_s9] sm:$0xff] }
  0xda   : > { %1186 = vmatpush.bf16.msra.mxu3 %v1625_v32 }
  0xdb   : > { %v998_v37 = vadd.f32 %v1891_v11, %v962_v36 }
  0xdd   : > { %v1014_v40 = vmax.f32 %v998_v37, 0.0 }
  0xdf   : > { %v886_v38 = vpop.f32.mrf.mxu0  ;;  %v1027_v41 = vpack.c.bf16 %v1014_v40, %v1013_v39 }
  0xe0   : > { %v964_v42 = vpop.f32.mrf.mxu1 }
  0xe1   : > { %1569 = vmatmul.msk.bf16.gmra.mxu2 %vm1045_vm3, %v1027_v41  ;;  %v965_v44 = vadd.f32 %v964_v42, %v886_v38 }
  0xe3   : > { %v999_v46 = vadd.f32 %v1891_v11, %v965_v44 }
  0xe5   : > { %v1015_v50 = vmax.f32 %v999_v46, 0.0 }
  0xe7   : > { %v888_v43 = vpop.f32.mrf.mxu0 }
  0xe8   : > { %v966_v45 = vpop.f32.mrf.mxu1 }
  0xe9   : > { %v967_v47 = vadd.f32 %v966_v45, %v888_v43 }
  0xeb   : > { %v1000_v48 = vadd.f32 %v1891_v11, %v967_v47 }
  0xed   : > { %v1016_v51 = vmax.f32 %v1000_v48, 0.0 }
  0xef   : > { %v891_v49 = vpop.f32.mrf.mxu0  ;;  %v1028_v52 = vpack.c.bf16 %v1016_v51, %v1015_v50 }
  0xf0   : > { %v969_v53 = vpop.f32.mrf.mxu1 }
  0xf1   : > { %1570 = vmatmul.msk.bf16.gmra.mxu2 %vm1045_vm3, %v1028_v52  ;;  %v970_v55 = vadd.f32 %v969_v53, %v891_v49 }
  0xf3   : > { %v1001_v57 = vadd.f32 %v1891_v11, %v970_v55 }
  0xf5   : > { %v1017_v61 = vmax.f32 %v1001_v57, 0.0 }
  0xf7   : > { %v893_v54 = vpop.f32.mrf.mxu0 }
  0xf8   : > { %v971_v56 = vpop.f32.mrf.mxu1 }
  0xf9   : > { %v972_v58 = vadd.f32 %v971_v56, %v893_v54 }
  0xfb   : > { %v1002_v59 = vadd.f32 %v1891_v11, %v972_v58 }
  0xfd   : > { %v1018_v62 = vmax.f32 %v1002_v59, 0.0 }
  0xff   : > { %v896_v60 = vpop.f32.mrf.mxu0  ;;  %v1029_v63 = vpack.c.bf16 %v1018_v62, %v1017_v61 }
 0x100   : > { %v974_v0 = vpop.f32.mrf.mxu1 }
 0x101   : > { %1571 = vmatmul.msk.bf16.gmra.mxu2 %vm1045_vm3, %v1029_v63  ;;  %v975_v2 = vadd.f32 %v974_v0, %v896_v60 }
 0x103   : > { %v1003_v4 = vadd.f32 %v1891_v11, %v975_v2 }
 0x105   : > { %v1019_v8 = vmax.f32 %v1003_v4, 0.0 }
 0x107   : > { %v898_v1 = vpop.f32.mrf.mxu0 }
 0x108   : > { %v976_v3 = vpop.f32.mrf.mxu1 }
 0x109   : > { %v977_v5 = vadd.f32 %v976_v3, %v898_v1 }
 0x10b   : > { %v1004_v6 = vadd.f32 %v1891_v11, %v977_v5 }
 0x10d   : > { %v1020_v9 = vmax.f32 %v1004_v6, 0.0 }
 0x10f   : > { %v901_v7 = vpop.f32.mrf.mxu0  ;;  %v1030_v10 = vpack.c.bf16 %v1020_v9, %v1019_v8 }
 0x110   : > { %v979_v12 = vpop.f32.mrf.mxu1 }
 0x111   : > { %1572 = vmatmul.msk.bf16.gmra.mxu2 %vm1045_vm3, %v1030_v10  ;;  %v980_v14 = vadd.f32 %v979_v12, %v901_v7 }
 0x113   : > { %v1005_v16 = vadd.f32 %v1891_v11, %v980_v14 }
 0x115   : > { %v1021_v19 = vmax.f32 %v1005_v16, 0.0 }
 0x117   : > { %v903_v13 = vpop.f32.mrf.mxu0 }
 0x118   : > { %v981_v15 = vpop.f32.mrf.mxu1 }
 0x119   : > { %v982_v17 = vadd.f32 %v981_v15, %v903_v13 }
 0x11b   : > { %v1006_v18 = vadd.f32 %v1891_v11, %v982_v17 }
 0x11d   : > { %v1022_v20 = vmax.f32 %v1006_v18, 0.0 }
 0x11f   : > { %v906_v21 = vpop.f32.mrf.mxu0  ;;  %v1031_v22 = vpack.c.bf16 %v1022_v20, %v1021_v19 }
 0x120   : > { %v984_v23 = vpop.f32.mrf.mxu1 }
 0x121   : > { %1573 = vmatmul.msk.bf16.gmra.mxu2 %vm1045_vm3, %v1031_v22  ;;  %v985_v24 = vadd.f32 %v984_v23, %v906_v21  ;;  %v1627_v21 = vld [vmem:[%s2048_s11] sm:$0xff] }
 0x122   : > { %v1321_v22 = vld [vmem:[%s2050_s13] sm:$0xf]  ;;  %1313 = vmatpush.bf16.msrb.mxu2 %v1627_v21 }
 0x123   : > { %v1007_v27 = vadd.f32 %v1891_v11, %v985_v24  ;;  %v1266_v23 = vld [vmem:[%s2049_s12] sm:$0xf]  ;;  %v1326_v24 = vsel %vm936_vm0, %v1321_v22, 0 }
 0x124   : > { %1335 = vmatpush.bf16.msrb.mxu3 %v1326_v24 }
 0x125   : > { %v1023_v30 = vmax.f32 %v1007_v27, 0.0 }
 0x127   : > { %v908_v25 = vpop.f32.mrf.mxu0 }
 0x128   : > { %v986_v26 = vpop.f32.mrf.mxu1 }
 0x129   : > { %v987_v28 = vadd.f32 %v986_v26, %v908_v25  ;;  %v1276_v25 = vsel %vm936_vm0, %v1266_v23, 0 }
 0x12a   : > { %1285 = vmatpush.bf16.msrb.mxu1 %v1276_v25 }
 0x12b   : > { %v1008_v29 = vadd.f32 %v1891_v11, %v987_v28 }
 0x12d   : > { %v1024_v31 = vmax.f32 %v1008_v29, 0.0 }
 0x12f   : > { %v1032_v33 = vpack.c.bf16 %v1024_v31, %v1023_v30 }
 0x131   : > { %1574 = vmatmul.msk.bf16.gmra.mxu2 %vm1045_vm3, %v1032_v33 }
 0x144   : > { %v1079_v34 = vpop.f32.mrf.mxu2 }
 0x145   : > { %v1080_v36 = vadd.f32 %v1923_v35, %v1079_v34  ;;  %v1963_v34 = vld [vmem:[%s2047_s10] ss:$0 sm:$0xff] }
 0x147   : > { %v1119_v38 = vmax.f32 %v1080_v36, 0.0 }
 0x14c   : > { %v1081_v37 = vpop.f32.mrf.mxu2 }
 0x14d   : > { %v1082_v11 = vadd.f32 %v1923_v35, %v1081_v37 }
 0x14f   : > { %v1120_v39 = vmax.f32 %v1082_v11, 0.0 }
 0x151   : > { %v1135_v40 = vpack.c.bf16 %v1120_v39, %v1119_v38 }
 0x153   : > { %1579 = vmatmul.msk.bf16.vlgmr.msra.gmra.mxu3 %vm1045_vm3, %v1135_v40 }
 0x154   : > { %v1084_v41 = vpop.f32.mrf.mxu2 }
 0x155   : > { %v1085_v42 = vadd.f32 %v1923_v35, %v1084_v41 }
 0x157   : > { %v1121_v45 = vmax.f32 %v1085_v42, 0.0 }
 0x15c   : > { %v1086_v43 = vpop.f32.mrf.mxu2 }
 0x15d   : > { %v1087_v44 = vadd.f32 %v1923_v35, %v1086_v43 }
 0x15f   : > { %v1122_v46 = vmax.f32 %v1087_v44, 0.0 }
 0x161   : > { %v1136_v47 = vpack.c.bf16 %v1122_v46, %v1121_v45 }
 0x163   : > { %1580 = vmatmul.msk.bf16.gmra.mxu3 %vm1045_vm3, %v1136_v47 }
 0x164   : > { %v1089_v48 = vpop.f32.mrf.mxu2 }
 0x165   : > { %v1090_v49 = vadd.f32 %v1923_v35, %v1089_v48 }
 0x167   : > { %v1123_v52 = vmax.f32 %v1090_v49, 0.0 }
 0x16c   : > { %v1091_v50 = vpop.f32.mrf.mxu2 }
 0x16d   : > { %v1092_v51 = vadd.f32 %v1923_v35, %v1091_v50 }
 0x16f   : > { %v1124_v53 = vmax.f32 %v1092_v51, 0.0 }
 0x171   : > { %v1137_v54 = vpack.c.bf16 %v1124_v53, %v1123_v52 }
 0x173   : > { %1581 = vmatmul.msk.bf16.gmra.mxu3 %vm1045_vm3, %v1137_v54 }
 0x174   : > { %v1094_v55 = vpop.f32.mrf.mxu2 }
 0x175   : > { %v1095_v56 = vadd.f32 %v1923_v35, %v1094_v55 }
 0x177   : > { %v1125_v59 = vmax.f32 %v1095_v56, 0.0 }
 0x17c   : > { %v1096_v57 = vpop.f32.mrf.mxu2 }
 0x17d   : > { %v1097_v58 = vadd.f32 %v1923_v35, %v1096_v57 }
 0x17f   : > { %v1126_v60 = vmax.f32 %v1097_v58, 0.0 }
 0x181   : > { %v1138_v61 = vpack.c.bf16 %v1126_v60, %v1125_v59 }
 0x183   : > { %1582 = vmatmul.msk.bf16.gmra.mxu3 %vm1045_vm3, %v1138_v61 }
 0x184   : > { %v1099_v62 = vpop.f32.mrf.mxu2 }
 0x185   : > { %v1100_v63 = vadd.f32 %v1923_v35, %v1099_v62  ;;  %v1626_v62 = vld [vmem:[%s707_s19] sm:$0xff] }
 0x186   : > { %1600 = vmatmul.msk.bf16.vlgmr.msrb.gmra.mxu2 %vm1045_vm3, %v1626_v62 }
 0x187   : > { %v1127_v2 = vmax.f32 %v1100_v63, 0.0 }
 0x18c   : > { %v1101_v0 = vpop.f32.mrf.mxu2 }
 0x18d   : > { %v1102_v1 = vadd.f32 %v1923_v35, %v1101_v0  ;;  %v1628_v0 = vld [vmem:[%s713_s21] sm:$0xff] }
 0x18e   : > { %1591 = vmatmul.msk.bf16.vlgmr.msrb.gmra.mxu1 %vm911_vm2, %v1628_v0 }
 0x18f   : > { %v1128_v3 = vmax.f32 %v1102_v1, 0.0 }
 0x191   : > { %v1139_v4 = vpack.c.bf16 %v1128_v3, %v1127_v2  ;;  %v1630_v2 = vld [vmem:[%s2052_s15 + $0x8] sm:$0xff]  ;;  %v1629_v3 = vld [vmem:[%s2052_s15] sm:$0xff] }
 0x192   : > { %1382 = vmatpush.bf16.msrb.mxu0 %v1630_v2 }
 0x193   : > { %1583 = vmatmul.msk.bf16.gmra.mxu3 %vm1045_vm3, %v1139_v4 }
 0x194   : > { %v1104_v5 = vpop.f32.mrf.mxu2 }
 0x195   : > { %v1105_v6 = vadd.f32 %v1923_v35, %v1104_v5 }
 0x196   : > { %1383 = vmatpush.bf16.msrb.mxu0 %v1629_v3 }
 0x197   : > { %v1129_v9 = vmax.f32 %v1105_v6, 0.0 }
 0x19c   : > { %v1106_v7 = vpop.f32.mrf.mxu2 }
 0x19d   : > { %v1107_v8 = vadd.f32 %v1923_v35, %v1106_v7 }
 0x19f   : > { %v1130_v10 = vmax.f32 %v1107_v8, 0.0 }
 0x1a1   : > { %v1140_v12 = vpack.c.bf16 %v1130_v10, %v1129_v9 }
 0x1a3   : > { %1584 = vmatmul.msk.bf16.gmra.mxu3 %vm1045_vm3, %v1140_v12 }
 0x1a4   : > { %v1109_v13 = vpop.f32.mrf.mxu2 }
 0x1a5   : > { %v1110_v14 = vadd.f32 %v1923_v35, %v1109_v13 }
 0x1a7   : > { %v1131_v17 = vmax.f32 %v1110_v14, 0.0 }
 0x1ac   : > { %v1111_v15 = vpop.f32.mrf.mxu2 }
 0x1ad   : > { %v1112_v16 = vadd.f32 %v1923_v35, %v1111_v15 }
 0x1af   : > { %v1132_v18 = vmax.f32 %v1112_v16, 0.0 }
 0x1b1   : > { %v1141_v19 = vpack.c.bf16 %v1132_v18, %v1131_v17 }
 0x1b3   : > { %1585 = vmatmul.msk.bf16.gmra.mxu3 %vm1045_vm3, %v1141_v19 }
 0x1b4   : > { %v1114_v20 = vpop.f32.mrf.mxu2 }
 0x1b5   : > { %v1115_v26 = vadd.f32 %v1923_v35, %v1114_v20 }
 0x1b7   : > { %v1133_v29 = vmax.f32 %v1115_v26, 0.0 }
 0x1bc   : > { %v1116_v27 = vpop.f32.mrf.mxu2 }
 0x1bd   : > { %v1117_v28 = vadd.f32 %v1923_v35, %v1116_v27 }
 0x1bf   : > { %v1134_v30 = vmax.f32 %v1117_v28, 0.0 }
 0x1c1   : > { %v1142_v31 = vpack.c.bf16 %v1134_v30, %v1133_v29 }
 0x1c3   : > { %1586 = vmatmul.msk.bf16.gmra.mxu3 %vm1045_vm3, %v1142_v31 }
 0x1d6   : > { %v1188_v32 = vpop.f32.mrf.mxu3 }
 0x1d7   : > { %v1189_v36 = vadd.f32 %v1963_v34, %v1188_v32 }
 0x1d9   : > { %v1228_v38 = vsel %vm911_vm2, %v1189_v36, 0.0 }
 0x1de   : > { %v1190_v33 = vpop.f32.mrf.mxu3 }
 0x1df   : > { %v1191_v40 = vadd.f32 %v1963_v34, %v1190_v33 }
 0x1e1   : > { %v1243_v43 = vsel %vm911_vm2, %v1191_v40, 0.0 }
 0x1e6   : > { %v1193_v37 = vpop.f32.mrf.mxu3 }
 0x1e7   : > { %v1194_v11 = vadd.f32 %v1963_v34, %v1193_v37 }
 0x1e9   : > { %v1229_v35 = vsel %vm911_vm2, %v1194_v11, 0.0 }
 0x1ea   : > { %v1230_v39 = vadd.f32 %v1229_v35, %v1228_v38 }
 0x1ee   : > { %v1195_v41 = vpop.f32.mrf.mxu3 }
 0x1ef   : > { %v1196_v42 = vadd.f32 %v1963_v34, %v1195_v41 }
 0x1f1   : > { %v1244_v44 = vsel %vm911_vm2, %v1196_v42, 0.0 }
 0x1f2   : > { %v1245_v45 = vadd.f32 %v1244_v44, %v1243_v43 }
 0x1f6   : > { %v1198_v46 = vpop.f32.mrf.mxu3 }
 0x1f7   : > { %v1199_v47 = vadd.f32 %v1963_v34, %v1198_v46 }
 0x1f9   : > { %v1231_v48 = vsel %vm911_vm2, %v1199_v47, 0.0 }
 0x1fa   : > { %v1232_v49 = vadd.f32 %v1231_v48, %v1230_v39 }
 0x1fe   : > { %v1200_v50 = vpop.f32.mrf.mxu3 }
 0x1ff   : > { %v1201_v51 = vadd.f32 %v1963_v34, %v1200_v50 }
 0x201   : > { %v1246_v52 = vsel %vm911_vm2, %v1201_v51, 0.0 }
 0x202   : > { %v1247_v53 = vadd.f32 %v1246_v52, %v1245_v45 }
 0x206   : > { %v1203_v54 = vpop.f32.mrf.mxu3 }
 0x207   : > { %v1204_v55 = vadd.f32 %v1963_v34, %v1203_v54 }
 0x209   : > { %v1233_v56 = vsel %vm911_vm2, %v1204_v55, 0.0  ;;  %v1315_v39 = vpop.f32.mrf.mxu2 }
 0x20a   : > { %v1234_v57 = vadd.f32 %v1233_v56, %v1232_v49 }
 0x20b   : > { %v1287_v35 = vpop.f32.mrf.mxu1 }
 0x20c   : > { %v1316_v41 = vadd.f32 %v1315_v39, %v1287_v35 }
 0x20e   : > { %v1205_v58 = vpop.f32.mrf.mxu3 }
 0x20f   : > { %v1206_v5 = vadd.f32 %v1963_v34, %v1205_v58 }
 0x211   : > { %v1248_v10 = vsel %vm911_vm2, %v1206_v5, 0.0  ;;  %v1317_v43 = vpop.f32.mrf.mxu2 }
 0x212   : > { %v1249_v19 = vadd.f32 %v1248_v10, %v1247_v53  ;;  %v1659_v53 = vld [vmem:[%s2053_s16] ss:$0 sm:$0xff] }
 0x213   : > { %v1289_v42 = vpop.f32.mrf.mxu1 }
 0x214   : > { %v1318_v45 = vadd.f32 %v1317_v43, %v1289_v42 }
 0x216   : > { %v1208_v59 = vpop.f32.mrf.mxu3 }
 0x217   : > { %v1209_v6 = vadd.f32 %v1963_v34, %v1208_v59 }
 0x219   : > { %v1235_v12 = vsel %vm911_vm2, %v1209_v6, 0.0 }
 0x21a   : > { %v1236_v20 = vadd.f32 %v1235_v12, %v1234_v57 }
 0x21e   : > { %v1210_v60 = vpop.f32.mrf.mxu3 }
 0x21f   : > { %v1211_v7 = vadd.f32 %v1963_v34, %v1210_v60 }
 0x221   : > { %v1250_v15 = vsel %vm911_vm2, %v1211_v7, 0.0 }
 0x222   : > { %v1251_v23 = vadd.f32 %v1250_v15, %v1249_v19 }
 0x226   : > { %v1213_v61 = vpop.f32.mrf.mxu3 }
 0x227   : > { %v1214_v8 = vadd.f32 %v1963_v34, %v1213_v61 }
 0x229   : > { %v1237_v16 = vsel %vm911_vm2, %v1214_v8, 0.0 }
 0x22a   : > { %v1238_v24 = vadd.f32 %v1237_v16, %v1236_v20 }
 0x22e   : > { %v1215_v63 = vpop.f32.mrf.mxu3 }
 0x22f   : > { %v1216_v13 = vadd.f32 %v1963_v34, %v1215_v63 }
 0x231   : > { %v1252_v21 = vsel %vm911_vm2, %v1216_v13, 0.0 }
 0x232   : > { %v1253_v27 = vadd.f32 %v1252_v21, %v1251_v23 }
 0x236   : > { %v1218_v1 = vpop.f32.mrf.mxu3 }
 0x237   : > { %v1219_v14 = vadd.f32 %v1963_v34, %v1218_v1 }
 0x239   : > { %v1239_v22 = vsel %vm911_vm2, %v1219_v14, 0.0 }
 0x23a   : > { %v1240_v28 = vadd.f32 %v1239_v22, %v1238_v24 }
 0x23e   : > { %v1220_v4 = vpop.f32.mrf.mxu3 }
 0x23f   : > { %v1221_v17 = vadd.f32 %v1963_v34, %v1220_v4 }
 0x241   : > { %v1254_v25 = vsel %vm911_vm2, %v1221_v17, 0.0 }
 0x242   : > { %v1255_v31 = vadd.f32 %v1254_v25, %v1253_v27 }
 0x246   : > { %v1223_v9 = vpop.f32.mrf.mxu3 }
 0x247   : > { %v1224_v18 = vadd.f32 %v1963_v34, %v1223_v9 }
 0x249   : > { %v1241_v26 = vsel %vm911_vm2, %v1224_v18, 0.0 }
 0x24a   : > { %v1242_v32 = vadd.f32 %v1241_v26, %v1240_v28 }
 0x24c   : > { %v1258_v37 = vmul.f32 0.125, %v1242_v32 }
 0x24e   : > { %v1225_v29 = vpop.f32.mrf.mxu3 }
 0x24f   : > { %v1226_v30 = vadd.f32 %v1963_v34, %v1225_v29  ;;  %v1658_v34 = vld [vmem:[%s2051_s14] ss:$0 sm:$0xff] }
 0x251   : > { %v1256_v33 = vsel %vm911_vm2, %v1226_v30, 0.0 }
 0x252   : > { %v1257_v36 = vadd.f32 %v1256_v33, %v1255_v31 }
 0x254   : > { %v1259_v11 = vmul.f32 0.125, %v1257_v36 }
 0x256   : > { %v1320_v38 = vpack.c.bf16 %v1259_v11, %v1258_v37 }
 0x258   : > { %1601 = vmatmul.msk.bf16.vlgmr.msrb.gmra.mxu3 %vm911_vm2, %v1320_v38 }
 0x2db   : > { %v1337_v40 = vpop.f32.mrf.mxu3 }
 0x2dc   : > { %v1342_v44 = vadd.f32 %v1337_v40, %v1316_v41 }
 0x2de   : > { %v1348_v47 = vadd.f32 %v1658_v34, %v1342_v44 }
 0x2e0   : > { %v1350_v50 = vmax.f32 %v1348_v47, 0.0 }
 0x2e3   : > { %v1339_v46 = vpop.f32.mrf.mxu3 }
 0x2e4   : > { %v1343_v48 = vadd.f32 %v1339_v46, %v1318_v45 }
 0x2e6   : > { %v1349_v49 = vadd.f32 %v1658_v34, %v1343_v48 }
 0x2e8   : > { %v1351_v51 = vmax.f32 %v1349_v49, 0.0 }
 0x2ea   : > { %v1352_v52 = vpack.c.bf16 %v1351_v51, %v1350_v50 }
 0x2ec   : > { %1610 = vmatmul.msk.bf16.vlgmr.msrb.gmra.mxu0 %vm837_vm1, %v1352_v52 }
 0x369   : > { %v1385_v54 = vpop.f32.mrf.mxu0 }
 0x36a   : > { %v1386_v55 = vadd.f32 %v1659_v53, %v1385_v54 }
 0x36c   : > { %1390 = vst.msk [vmem:[%s719_s22] sm:$0xff] %vm837_vm1, %v1386_v55 }
 0x371   : > { %v1387_v56 = vpop.f32.mrf.mxu0 }
 0x372   : > { %v1388_v57 = vadd.f32 %v1659_v53, %v1387_v56 }
 0x374   : > { %1391 = vst.msk [vmem:[%s719_s22 + $0x8] sm:$0xff] %vm837_vm1, %v1388_v57 }
 0x375 PF: > { %p24_p9 = scmp.ge.s32.totalorder %s1791_s28, 4   ;;  %s2059_s24 = smov %s1678_s25 }
 0x376   : > { %s2060_s25 = smov %s1800_s30  ;;  %s2061_s26 = smov %s1791_s28 }
 0x377   :  { %26 = sbr.rel (!%p24_p9) target bundleno = 5 (0x5), region = 173 }

// kernel: _lambda_.9
= control target key start
LH: loop header
LB: loop body
LE: loop exit
PB: predicated region body
PF: predicated region fallthrough
CT: control target
= control target key end

     0   :  { %vm178_vm0 = vcmask 1043456   ;;  %vm231_vm1 = vcmask 64512   ;;  %s981_s0 = inlined_call_operand.vmem [shape: bf16[8,16,40], index: 0, kind: input, shape index: {}]   ;;  %s982_s1 = inlined_call_operand.vmem [shape: f32[16,8], index: 1, kind: input, shape index: {}]   ;;  %s983_s2 = inlined_call_operand.vmem [shape: bf16[8,32], index: 2, kind: input, shape index: {}]   ;;  %s984_s3 = inlined_call_operand.vmem [shape: bf16[40,32], index: 3, kind: input, shape index: {}]   ;;  %s985_s4 = inlined_call_operand.vmem [shape: f32[1,32], index: 4, kind: input, shape index: {}]   ;;  %s986_s5 = inlined_call_operand.vmem [shape: bf16[32,32], index: 5, kind: input, shape index: {}]   ;;  %s987_s6 = inlined_call_operand.vmem [shape: f32[1,32], index: 6, kind: input, shape index: {}]   ;;  %s988_s7 = inlined_call_operand.vmem [shape: bf16[32,16], index: 7, kind: input, shape index: {}]   ;;  %s989_s8 = inlined_call_operand.vmem [shape: f32[1,16], index: 8, kind: input, shape index: {}]   ;;  %s990_s9 = inlined_call_operand.hbm [shape: f32[16,16], index: 9, kind: output, shape index: {}]  }
   0x1   :  { %v97_v0 = vld [vmem:[%s984_s3 + $0x10] sm:$0xf]  ;;  %v92_v1 = vld [vmem:[%s983_s2] sm:$0xf]  ;;  %v820_v8 = vld [vmem:[%s982_s1 + $0x8] sm:$0xff] }
   0x2   :  { %v34_v2 = vld [vmem:[%s981_s0] sm:$0xff]   ;;  %v147_v3 = vunpack.c.l.b16 %v97_v0  ;;  %v257_v4 = vsel %vm178_vm0, %v92_v1, 0 }
   0x3   :  { %v50_v5 = vunpack.c.l.bf16 %v34_v2  ;;  %v51_v6 = vunpack.c.h.bf16 %v34_v2  ;;  %v815_v7 = vld [vmem:[%s982_s1] sm:$0xff]  ;;  %266 = vmatpush.bf16.msra.mxu1 %v257_v4 }
   0x4   :  { %v150_v9 = vpack.c.b16 %v147_v3, %v147_v3 }
   0x5   :  { %v68_v10 = vsub.f32 %v50_v5, %v815_v7  ;;  %v69_v11 = vsub.f32 %v51_v6, %v820_v8 }
   0x6   :  { %14 = vsyncpa [#allocation3], 0  ;;  %v180_v12 = vsel %vm178_vm0, %v150_v9, 0  ;;  %v713_v14 = vld [vmem:[%s984_s3 + $0x8] sm:$0xff]  ;;  %v712_v16 = vld [vmem:[%s984_s3] sm:$0xff]  ;;  %vm153_vm2 = vcmask 326656  }
   0x7   :  { %v84_v13 = vpack.c.bf16 %v69_v11, %v68_v10  ;;  %187 = vmatpush.bf16.msra.mxu0 %v180_v12  ;;  %v36_v15 = vld [vmem:[%s981_s0 + $0x8] sm:$0xff]   ;;  %v704_v19 = vld [vmem:[%s981_s0] sm:$0xff]  ;;  %v38_v23 = vld [vmem:[%s981_s0 + $0x10] sm:$0xff]   ;;  %vm372_vm3 = vcmask 261120   ;;  %vm563_vm4 = vcmask 130048   ;;  %s604_s17 = sshll.u32 %s990_s9, 4  ;;  %s605_s17 = int_to_ptr.hbm [resolvable:$true] %s604_s17 }
   0x8   :  { %v52_v17 = vunpack.c.l.bf16 %v36_v15  ;;  %v53_v18 = vunpack.c.h.bf16 %v36_v15  ;;  %v54_v24 = vunpack.c.l.bf16 %v38_v23  ;;  %v55_v25 = vunpack.c.h.bf16 %v38_v23  ;;  %v705_v26 = vld [vmem:[%s981_s0 + $0x8] sm:$0xff]  ;;  %v40_v30 = vld [vmem:[%s981_s0 + $0x18] sm:$0xff]   ;;  %v706_v33 = vld [vmem:[%s981_s0 + $0x10] sm:$0xff]  ;;  %s751_s18 = smov 128   ;;  %s752_s2 = smov 8  }
   0x9   :  { %664 = vmatmul.msk.bf16.vlgmr.msra.gmra.mxu1 %vm231_vm1, %v84_v13  ;;  %v56_v31 = vunpack.c.l.bf16 %v40_v30  ;;  %v57_v32 = vunpack.c.h.bf16 %v40_v30  ;;  %v42_v37 = vld [vmem:[%s981_s0 + $0x20] sm:$0xff]   ;;  %v707_v40 = vld [vmem:[%s981_s0 + $0x18] sm:$0xff]  ;;  %v44_v44 = vld [vmem:[%s981_s0 + $0x28] sm:$0xff]  }
   0xa   :  { %v70_v20 = vsub.f32 %v52_v17, %v815_v7  ;;  %v71_v21 = vsub.f32 %v53_v18, %v820_v8  ;;  %v72_v27 = vsub.f32 %v54_v24, %v815_v7  ;;  %v73_v28 = vsub.f32 %v55_v25, %v820_v8  ;;  %v708_v47 = vld [vmem:[%s981_s0 + $0x20] sm:$0xff]  ;;  %v46_v51 = vld [vmem:[%s981_s0 + $0x30] sm:$0xff]   ;;  %v709_v54 = vld [vmem:[%s981_s0 + $0x28] sm:$0xff] }
   0xb   :  { %188 = vmatpush.bf16.msra.mxu0 %v713_v14  ;;  %v74_v34 = vsub.f32 %v56_v31, %v815_v7  ;;  %v75_v35 = vsub.f32 %v57_v32, %v820_v8  ;;  %v58_v38 = vunpack.c.l.bf16 %v42_v37  ;;  %v59_v39 = vunpack.c.h.bf16 %v42_v37  ;;  %v48_v58 = vld [vmem:[%s981_s0 + $0x38] sm:$0xff]   ;;  %v710_v61 = vld [vmem:[%s981_s0 + $0x30] sm:$0xff]  ;;  %v715_v1 = vld [vmem:[%s986_s5 + $0x8] sm:$0xff] }
   0xc   :  { %v85_v22 = vpack.c.bf16 %v71_v21, %v70_v20  ;;  %v86_v29 = vpack.c.bf16 %v73_v28, %v72_v27  ;;  %v60_v45 = vunpack.c.l.bf16 %v44_v44  ;;  %v61_v46 = vunpack.c.h.bf16 %v44_v44  ;;  %403 = vmatpush.bf16.msra.mxu2 %v715_v1  ;;  %v714_v2 = vld [vmem:[%s986_s5] sm:$0xff]  ;;  %v711_v3 = vld [vmem:[%s981_s0 + $0x38] sm:$0xff] }
   0xd   :  { %v87_v36 = vpack.c.bf16 %v75_v35, %v74_v34  ;;  %v76_v41 = vsub.f32 %v58_v38, %v815_v7  ;;  %v77_v42 = vsub.f32 %v59_v39, %v820_v8  ;;  %v62_v52 = vunpack.c.l.bf16 %v46_v51 }
   0xe   :  { %v78_v48 = vsub.f32 %v60_v45, %v815_v7  ;;  %v79_v49 = vsub.f32 %v61_v46, %v820_v8  ;;  %v63_v53 = vunpack.c.h.bf16 %v46_v51  ;;  %v64_v59 = vunpack.c.l.bf16 %v48_v58 }
   0xf   :  { %189 = vmatpush.bf16.msra.mxu0 %v712_v16  ;;  %v88_v43 = vpack.c.bf16 %v77_v42, %v76_v41  ;;  %v80_v55 = vsub.f32 %v62_v52, %v815_v7  ;;  %v65_v60 = vunpack.c.h.bf16 %v48_v58 }
  0x10   :  { %v89_v50 = vpack.c.bf16 %v79_v49, %v78_v48  ;;  %v81_v56 = vsub.f32 %v63_v53, %v820_v8  ;;  %v82_v62 = vsub.f32 %v64_v59, %v815_v7  ;;  %404 = vmatpush.bf16.msra.mxu2 %v714_v2 }
  0x11   :  { %v83_v63 = vsub.f32 %v65_v60, %v820_v8  ;;  %v914_v8 = vld [vmem:[%s985_s4] ss:$0 sm:$0xff] }
  0x12   :  { %656 = vmatmul.msk.bf16.vlgmr.msra.gmra.mxu0 %vm153_vm2, %v704_v19  ;;  %v90_v57 = vpack.c.bf16 %v81_v56, %v80_v55 }
  0x13   :  { %v91_v0 = vpack.c.bf16 %v83_v63, %v82_v62 }
  0x19   :  { %665 = vmatmul.msk.bf16.gmra.mxu1 %vm231_vm1, %v85_v22 }
  0x22   :  { %657 = vmatmul.msk.bf16.gmra.mxu0 %vm153_vm2, %v705_v26 }
  0x29   :  { %666 = vmatmul.msk.bf16.gmra.mxu1 %vm231_vm1, %v86_v29 }
  0x32   :  { %658 = vmatmul.msk.bf16.gmra.mxu0 %vm153_vm2, %v706_v33 }
  0x39   :  { %667 = vmatmul.msk.bf16.gmra.mxu1 %vm231_vm1, %v87_v36 }
  0x42   :  { %659 = vmatmul.msk.bf16.gmra.mxu0 %vm153_vm2, %v707_v40 }
  0x49   :  { %668 = vmatmul.msk.bf16.gmra.mxu1 %vm231_vm1, %v88_v43 }
  0x52   :  { %660 = vmatmul.msk.bf16.gmra.mxu0 %vm153_vm2, %v708_v47 }
  0x59   :  { %669 = vmatmul.msk.bf16.gmra.mxu1 %vm231_vm1, %v89_v50 }
  0x62   :  { %661 = vmatmul.msk.bf16.gmra.mxu0 %vm153_vm2, %v709_v54 }
  0x69   :  { %670 = vmatmul.msk.bf16.gmra.mxu1 %vm231_vm1, %v90_v57 }
  0x72   :  { %662 = vmatmul.msk.bf16.gmra.mxu0 %vm153_vm2, %v710_v61 }
  0x79   :  { %671 = vmatmul.msk.bf16.gmra.mxu1 %vm231_vm1, %v91_v0 }
  0x82   :  { %663 = vmatmul.msk.bf16.gmra.mxu0 %vm153_vm2, %v711_v3 }
  0x86   :  { %v268_v4 = vpop.f32.mrf.mxu1 }
  0x8e   :  { %v270_v5 = vpop.f32.mrf.mxu1 }
  0x8f   :  { %v191_v6 = vpop.f32.mrf.mxu0 }
  0x90   :  { %v269_v7 = vadd.f32 %v268_v4, %v191_v6 }
  0x92   :  { %v312_v11 = vadd.f32 %v914_v8, %v269_v7 }
  0x94   :  { %v328_v14 = vmax.f32 %v312_v11, 0.0 }
  0x96   :  { %v273_v9 = vpop.f32.mrf.mxu1 }
  0x97   :  { %v193_v10 = vpop.f32.mrf.mxu0 }
  0x98   :  { %v271_v12 = vadd.f32 %v270_v5, %v193_v10 }
  0x9a   :  { %v313_v13 = vadd.f32 %v914_v8, %v271_v12 }
  0x9c   :  { %v329_v15 = vmax.f32 %v313_v13, 0.0 }
  0x9e   :  { %v275_v16 = vpop.f32.mrf.mxu1  ;;  %v344_v17 = vpack.c.bf16 %v329_v15, %v328_v14 }
  0x9f   :  { %v196_v18 = vpop.f32.mrf.mxu0 }
  0xa0   :  { %680 = vmatmul.msk.bf16.vlgmr.msra.gmra.mxu2 %vm372_vm3, %v344_v17  ;;  %v274_v19 = vadd.f32 %v273_v9, %v196_v18 }
  0xa2   :  { %v314_v22 = vadd.f32 %v914_v8, %v274_v19 }
  0xa4   :  { %v330_v25 = vmax.f32 %v314_v22, 0.0 }
  0xa6   :  { %v278_v20 = vpop.f32.mrf.mxu1 }
  0xa7   :  { %v198_v21 = vpop.f32.mrf.mxu0 }
  0xa8   :  { %v276_v23 = vadd.f32 %v275_v16, %v198_v21 }
  0xaa   :  { %v315_v24 = vadd.f32 %v914_v8, %v276_v23 }
  0xac   :  { %v331_v26 = vmax.f32 %v315_v24, 0.0 }
  0xae   :  { %v280_v27 = vpop.f32.mrf.mxu1  ;;  %v345_v28 = vpack.c.bf16 %v331_v26, %v330_v25  ;;  %v717_v26 = vld [vmem:[%s988_s7 + $0x8] sm:$0xff] }
  0xaf   :  { %v201_v29 = vpop.f32.mrf.mxu0  ;;  %520 = vmatpush.bf16.msra.mxu3 %v717_v26 }
  0xb0   :  { %681 = vmatmul.msk.bf16.gmra.mxu2 %vm372_vm3, %v345_v28  ;;  %v279_v30 = vadd.f32 %v278_v20, %v201_v29 }
  0xb2   :  { %v316_v33 = vadd.f32 %v914_v8, %v279_v30  ;;  %v716_v30 = vld [vmem:[%s988_s7] sm:$0xff] }
  0xb3   :  { %521 = vmatpush.bf16.msra.mxu3 %v716_v30 }
  0xb4   :  { %v332_v36 = vmax.f32 %v316_v33, 0.0  ;;  %v722_v33 = vld [vmem:[%s987_s6] ss:$0 sm:$0xff] }
  0xb6   :  { %v283_v31 = vpop.f32.mrf.mxu1 }
  0xb7   :  { %v203_v32 = vpop.f32.mrf.mxu0 }
  0xb8   :  { %v281_v34 = vadd.f32 %v280_v27, %v203_v32 }
  0xba   :  { %v317_v35 = vadd.f32 %v914_v8, %v281_v34 }
  0xbc   :  { %v333_v37 = vmax.f32 %v317_v35, 0.0 }
  0xbe   :  { %v285_v38 = vpop.f32.mrf.mxu1  ;;  %v346_v39 = vpack.c.bf16 %v333_v37, %v332_v36 }
  0xbf   :  { %v206_v40 = vpop.f32.mrf.mxu0 }
  0xc0   :  { %682 = vmatmul.msk.bf16.gmra.mxu2 %vm372_vm3, %v346_v39  ;;  %v284_v41 = vadd.f32 %v283_v31, %v206_v40 }
  0xc2   :  { %v318_v44 = vadd.f32 %v914_v8, %v284_v41 }
  0xc4   :  { %v334_v47 = vmax.f32 %v318_v44, 0.0 }
  0xc6   :  { %v288_v42 = vpop.f32.mrf.mxu1 }
  0xc7   :  { %v208_v43 = vpop.f32.mrf.mxu0 }
  0xc8   :  { %v286_v45 = vadd.f32 %v285_v38, %v208_v43 }
  0xca   :  { %v319_v46 = vadd.f32 %v914_v8, %v286_v45 }
  0xcc   :  { %v335_v48 = vmax.f32 %v319_v46, 0.0 }
  0xce   :  { %v290_v49 = vpop.f32.mrf.mxu1  ;;  %v347_v50 = vpack.c.bf16 %v335_v48, %v334_v47 }
  0xcf   :  { %v211_v51 = vpop.f32.mrf.mxu0 }
  0xd0   :  { %683 = vmatmul.msk.bf16.gmra.mxu2 %vm372_vm3, %v347_v50  ;;  %v289_v52 = vadd.f32 %v288_v42, %v211_v51 }
  0xd2   :  { %v320_v55 = vadd.f32 %v914_v8, %v289_v52 }
  0xd4   :  { %v336_v58 = vmax.f32 %v320_v55, 0.0 }
  0xd6   :  { %v293_v53 = vpop.f32.mrf.mxu1 }
  0xd7   :  { %v213_v54 = vpop.f32.mrf.mxu0 }
  0xd8   :  { %v291_v56 = vadd.f32 %v290_v49, %v213_v54 }
  0xda   :  { %v321_v57 = vadd.f32 %v914_v8, %v291_v56 }
  0xdc   :  { %v337_v59 = vmax.f32 %v321_v57, 0.0 }
  0xde   :  { %v348_v60 = vpack.c.bf16 %v337_v59, %v336_v58  ;;  %v295_v62 = vpop.f32.mrf.mxu1 }
  0xdf   :  { %v216_v61 = vpop.f32.mrf.mxu0 }
  0xe0   :  { %684 = vmatmul.msk.bf16.gmra.mxu2 %vm372_vm3, %v348_v60  ;;  %v294_v63 = vadd.f32 %v293_v53, %v216_v61 }
  0xe2   :  { %v322_v1 = vadd.f32 %v914_v8, %v294_v63 }
  0xe4   :  { %v338_v5 = vmax.f32 %v322_v1, 0.0 }
  0xe6   :  { %v298_v3 = vpop.f32.mrf.mxu1 }
  0xe7   :  { %v218_v0 = vpop.f32.mrf.mxu0 }
  0xe8   :  { %v296_v2 = vadd.f32 %v295_v62, %v218_v0 }
  0xea   :  { %v323_v4 = vadd.f32 %v914_v8, %v296_v2 }
  0xec   :  { %v339_v6 = vmax.f32 %v323_v4, 0.0 }
  0xee   :  { %v349_v7 = vpack.c.bf16 %v339_v6, %v338_v5  ;;  %v300_v10 = vpop.f32.mrf.mxu1 }
  0xef   :  { %v221_v9 = vpop.f32.mrf.mxu0 }
  0xf0   :  { %685 = vmatmul.msk.bf16.gmra.mxu2 %vm372_vm3, %v349_v7  ;;  %v299_v11 = vadd.f32 %v298_v3, %v221_v9 }
  0xf2   :  { %v324_v13 = vadd.f32 %v914_v8, %v299_v11 }
  0xf4   :  { %v340_v16 = vmax.f32 %v324_v13, 0.0 }
  0xf6   :  { %v303_v18 = vpop.f32.mrf.mxu1 }
  0xf7   :  { %v223_v12 = vpop.f32.mrf.mxu0 }
  0xf8   :  { %v301_v14 = vadd.f32 %v300_v10, %v223_v12 }
  0xfa   :  { %v325_v15 = vadd.f32 %v914_v8, %v301_v14 }
  0xfc   :  { %v341_v17 = vmax.f32 %v325_v15, 0.0 }
  0xfe   :  { %v350_v19 = vpack.c.bf16 %v341_v17, %v340_v16  ;;  %v305_v22 = vpop.f32.mrf.mxu1 }
  0xff   :  { %v226_v20 = vpop.f32.mrf.mxu0 }
 0x100   :  { %686 = vmatmul.msk.bf16.gmra.mxu2 %vm372_vm3, %v350_v19  ;;  %v304_v21 = vadd.f32 %v303_v18, %v226_v20 }
 0x102   :  { %v326_v24 = vadd.f32 %v914_v8, %v304_v21 }
 0x104   :  { %v342_v28 = vmax.f32 %v326_v24, 0.0 }
 0x107   :  { %v228_v23 = vpop.f32.mrf.mxu0 }
 0x108   :  { %v306_v25 = vadd.f32 %v305_v22, %v228_v23 }
 0x10a   :  { %v327_v27 = vadd.f32 %v914_v8, %v306_v25 }
 0x10c   :  { %v343_v29 = vmax.f32 %v327_v27, 0.0  ;;  %v723_v27 = vld [vmem:[%s989_s8] ss:$0 sm:$0xff]  ;;  %s750_s8 = smov [#allocation2]  }
 0x10d   :  { %s602_s14 = sshll.u32 %s750_s8, 4  ;;  %s603_s14 = int_to_ptr.vmem [resolvable:$true] %s602_s14 }
 0x10e   :  { %v351_v31 = vpack.c.bf16 %v343_v29, %v342_v28 }
 0x110   :  { %687 = vmatmul.msk.bf16.gmra.mxu2 %vm372_vm3, %v351_v31 }
 0x123   :  { %v406_v32 = vpop.f32.mrf.mxu2 }
 0x124   :  { %v407_v34 = vadd.f32 %v722_v33, %v406_v32 }
 0x126   :  { %v446_v8 = vmax.f32 %v407_v34, 0.0 }
 0x12b   :  { %v408_v35 = vpop.f32.mrf.mxu2 }
 0x12c   :  { %v409_v36 = vadd.f32 %v722_v33, %v408_v35 }
 0x12e   :  { %v447_v37 = vmax.f32 %v409_v36, 0.0 }
 0x130   :  { %v462_v38 = vpack.c.bf16 %v447_v37, %v446_v8 }
 0x132   :  { %696 = vmatmul.msk.bf16.vlgmr.msra.gmra.mxu3 %vm372_vm3, %v462_v38 }
 0x133   :  { %v411_v39 = vpop.f32.mrf.mxu2 }
 0x134   :  { %v412_v40 = vadd.f32 %v722_v33, %v411_v39 }
 0x136   :  { %v448_v43 = vmax.f32 %v412_v40, 0.0 }
 0x13b   :  { %v413_v41 = vpop.f32.mrf.mxu2 }
 0x13c   :  { %v414_v42 = vadd.f32 %v722_v33, %v413_v41 }
 0x13e   :  { %v449_v44 = vmax.f32 %v414_v42, 0.0 }
 0x140   :  { %v463_v45 = vpack.c.bf16 %v449_v44, %v448_v43 }
 0x142   :  { %697 = vmatmul.msk.bf16.gmra.mxu3 %vm372_vm3, %v463_v45 }
 0x143   :  { %v416_v46 = vpop.f32.mrf.mxu2 }
 0x144   :  { %v417_v47 = vadd.f32 %v722_v33, %v416_v46 }
 0x146   :  { %v450_v50 = vmax.f32 %v417_v47, 0.0 }
 0x14b   :  { %v418_v48 = vpop.f32.mrf.mxu2 }
 0x14c   :  { %v419_v49 = vadd.f32 %v722_v33, %v418_v48 }
 0x14e   :  { %v451_v51 = vmax.f32 %v419_v49, 0.0 }
 0x150   :  { %v464_v52 = vpack.c.bf16 %v451_v51, %v450_v50 }
 0x152   :  { %698 = vmatmul.msk.bf16.gmra.mxu3 %vm372_vm3, %v464_v52 }
 0x153   :  { %v421_v53 = vpop.f32.mrf.mxu2 }
 0x154   :  { %v422_v54 = vadd.f32 %v722_v33, %v421_v53 }
 0x156   :  { %v452_v57 = vmax.f32 %v422_v54, 0.0 }
 0x15b   :  { %v423_v55 = vpop.f32.mrf.mxu2 }
 0x15c   :  { %v424_v56 = vadd.f32 %v722_v33, %v423_v55 }
 0x15e   :  { %v453_v58 = vmax.f32 %v424_v56, 0.0 }
 0x160   :  { %v465_v59 = vpack.c.bf16 %v453_v58, %v452_v57 }
 0x162   :  { %699 = vmatmul.msk.bf16.gmra.mxu3 %vm372_vm3, %v465_v59 }
 0x163   :  { %v426_v60 = vpop.f32.mrf.mxu2 }
 0x164   :  { %v427_v61 = vadd.f32 %v722_v33, %v426_v60 }
 0x166   :  { %v454_v0 = vmax.f32 %v427_v61, 0.0 }
 0x16b   :  { %v428_v62 = vpop.f32.mrf.mxu2 }
 0x16c   :  { %v429_v63 = vadd.f32 %v722_v33, %v428_v62 }
 0x16e   :  { %v455_v1 = vmax.f32 %v429_v63, 0.0 }
 0x170   :  { %v466_v2 = vpack.c.bf16 %v455_v1, %v454_v0 }
 0x172   :  { %700 = vmatmul.msk.bf16.gmra.mxu3 %vm372_vm3, %v466_v2 }
 0x173   :  { %v431_v3 = vpop.f32.mrf.mxu2 }
 0x174   :  { %v432_v4 = vadd.f32 %v722_v33, %v431_v3 }
 0x176   :  { %v456_v7 = vmax.f32 %v432_v4, 0.0 }
 0x17b   :  { %v433_v5 = vpop.f32.mrf.mxu2 }
 0x17c   :  { %v434_v6 = vadd.f32 %v722_v33, %v433_v5 }
 0x17e   :  { %v457_v9 = vmax.f32 %v434_v6, 0.0 }
 0x180   :  { %v467_v10 = vpack.c.bf16 %v457_v9, %v456_v7 }
 0x182   :  { %701 = vmatmul.msk.bf16.gmra.mxu3 %vm372_vm3, %v467_v10 }
 0x183   :  { %v436_v11 = vpop.f32.mrf.mxu2 }
 0x184   :  { %v437_v12 = vadd.f32 %v722_v33, %v436_v11 }
 0x186   :  { %v458_v15 = vmax.f32 %v437_v12, 0.0 }
 0x18b   :  { %v438_v13 = vpop.f32.mrf.mxu2 }
 0x18c   :  { %v439_v14 = vadd.f32 %v722_v33, %v438_v13 }
 0x18e   :  { %v459_v16 = vmax.f32 %v439_v14, 0.0 }
 0x190   :  { %v468_v17 = vpack.c.bf16 %v459_v16, %v458_v15 }
 0x192   :  { %702 = vmatmul.msk.bf16.gmra.mxu3 %vm372_vm3, %v468_v17 }
 0x193   :  { %v441_v18 = vpop.f32.mrf.mxu2 }
 0x194   :  { %v442_v19 = vadd.f32 %v722_v33, %v441_v18 }
 0x196   :  { %v460_v22 = vmax.f32 %v442_v19, 0.0 }
 0x19b   :  { %v443_v20 = vpop.f32.mrf.mxu2 }
 0x19c   :  { %v444_v21 = vadd.f32 %v722_v33, %v443_v20 }
 0x19e   :  { %v461_v23 = vmax.f32 %v444_v21, 0.0 }
 0x1a0   :  { %v469_v24 = vpack.c.bf16 %v461_v23, %v460_v22 }
 0x1a2   :  { %703 = vmatmul.msk.bf16.gmra.mxu3 %vm372_vm3, %v469_v24 }
 0x1b5   :  { %v523_v25 = vpop.f32.mrf.mxu3 }
 0x1b6   :  { %v524_v28 = vadd.f32 %v723_v27, %v523_v25 }
 0x1b8   :  { %v564_v31 = vsel %vm563_vm4, %v524_v28, 0.0 }
 0x1bd   :  { %v525_v26 = vpop.f32.mrf.mxu3 }
 0x1be   :  { %v526_v34 = vadd.f32 %v723_v27, %v525_v26 }
 0x1c0   :  { %v579_v8 = vsel %vm563_vm4, %v526_v34, 0.0 }
 0x1c5   :  { %v528_v29 = vpop.f32.mrf.mxu3 }
 0x1c6   :  { %v529_v30 = vadd.f32 %v723_v27, %v528_v29 }
 0x1c8   :  { %v565_v32 = vsel %vm563_vm4, %v529_v30, 0.0 }
 0x1c9   :  { %v566_v33 = vadd.f32 %v565_v32, %v564_v31 }
 0x1cd   :  { %v530_v35 = vpop.f32.mrf.mxu3 }
 0x1ce   :  { %v531_v36 = vadd.f32 %v723_v27, %v530_v35 }
 0x1d0   :  { %v580_v37 = vsel %vm563_vm4, %v531_v36, 0.0 }
 0x1d1   :  { %v581_v38 = vadd.f32 %v580_v37, %v579_v8 }
 0x1d5   :  { %v533_v39 = vpop.f32.mrf.mxu3 }
 0x1d6   :  { %v534_v40 = vadd.f32 %v723_v27, %v533_v39 }
 0x1d8   :  { %v567_v41 = vsel %vm563_vm4, %v534_v40, 0.0 }
 0x1d9   :  { %v568_v42 = vadd.f32 %v567_v41, %v566_v33 }
 0x1dd   :  { %v535_v43 = vpop.f32.mrf.mxu3 }
 0x1de   :  { %v536_v44 = vadd.f32 %v723_v27, %v535_v43 }
 0x1e0   :  { %v582_v45 = vsel %vm563_vm4, %v536_v44, 0.0 }
 0x1e1   :  { %v583_v46 = vadd.f32 %v582_v45, %v581_v38 }
 0x1e5   :  { %v538_v47 = vpop.f32.mrf.mxu3 }
 0x1e6   :  { %v539_v54 = vadd.f32 %v723_v27, %v538_v47 }
 0x1e8   :  { %v569_v57 = vsel %vm563_vm4, %v539_v54, 0.0 }
 0x1e9   :  { %v570_v61 = vadd.f32 %v569_v57, %v568_v42 }
 0x1ed   :  { %v540_v48 = vpop.f32.mrf.mxu3 }
 0x1ee   :  { %v541_v62 = vadd.f32 %v723_v27, %v540_v48 }
 0x1f0   :  { %v584_v5 = vsel %vm563_vm4, %v541_v62, 0.0 }
 0x1f1   :  { %v585_v13 = vadd.f32 %v584_v5, %v583_v46 }
 0x1f5   :  { %v543_v49 = vpop.f32.mrf.mxu3 }
 0x1f6   :  { %v544_v55 = vadd.f32 %v723_v27, %v543_v49 }
 0x1f8   :  { %v571_v59 = vsel %vm563_vm4, %v544_v55, 0.0 }
 0x1f9   :  { %v572_v0 = vadd.f32 %v571_v59, %v570_v61 }
 0x1fd   :  { %v545_v50 = vpop.f32.mrf.mxu3 }
 0x1fe   :  { %v546_v1 = vadd.f32 %v723_v27, %v545_v50 }
 0x200   :  { %v586_v10 = vsel %vm563_vm4, %v546_v1, 0.0 }
 0x201   :  { %v587_v16 = vadd.f32 %v586_v10, %v585_v13 }
 0x205   :  { %v548_v51 = vpop.f32.mrf.mxu3 }
 0x206   :  { %v549_v58 = vadd.f32 %v723_v27, %v548_v51 }
 0x208   :  { %v573_v63 = vsel %vm563_vm4, %v549_v58, 0.0 }
 0x209   :  { %v574_v3 = vadd.f32 %v573_v63, %v572_v0 }
 0x20d   :  { %v550_v52 = vpop.f32.mrf.mxu3 }
 0x20e   :  { %v551_v6 = vadd.f32 %v723_v27, %v550_v52 }
 0x210   :  { %v588_v15 = vsel %vm563_vm4, %v551_v6, 0.0 }
 0x211   :  { %v589_v19 = vadd.f32 %v588_v15, %v587_v16 }
 0x215   :  { %v553_v53 = vpop.f32.mrf.mxu3 }
 0x216   :  { %v554_v60 = vadd.f32 %v723_v27, %v553_v53 }
 0x218   :  { %v575_v2 = vsel %vm563_vm4, %v554_v60, 0.0 }
 0x219   :  { %v576_v9 = vadd.f32 %v575_v2, %v574_v3 }
 0x21d   :  { %v555_v56 = vpop.f32.mrf.mxu3 }
 0x21e   :  { %v556_v11 = vadd.f32 %v723_v27, %v555_v56 }
 0x220   :  { %v590_v18 = vsel %vm563_vm4, %v556_v11, 0.0 }
 0x221   :  { %v591_v22 = vadd.f32 %v590_v18, %v589_v19 }
 0x225   :  { %v558_v4 = vpop.f32.mrf.mxu3 }
 0x226   :  { %v559_v7 = vadd.f32 %v723_v27, %v558_v4 }
 0x228   :  { %v577_v12 = vsel %vm563_vm4, %v559_v7, 0.0 }
 0x229   :  { %v578_v14 = vadd.f32 %v577_v12, %v576_v9 }
 0x22b   :  { %v594_v17 = vmul.f32 0.125, %v578_v14 }
 0x22d   :  { %596 = vst.msk [vmem:[#allocation2] sm:$0xff] %vm563_vm4, %v594_v17  ;;  %v560_v20 = vpop.f32.mrf.mxu3 }
 0x22e   :  { %v561_v21 = vadd.f32 %v723_v27, %v560_v20 }
 0x230   :  { %v592_v23 = vsel %vm563_vm4, %v561_v21, 0.0 }
 0x231   :  { %v593_v24 = vadd.f32 %v592_v23, %v591_v22 }
 0x233   :  { %v595_v25 = vmul.f32 0.125, %v593_v24 }
 0x235   :  { %597 = vst.msk [vmem:[#allocation2 + $0x8] sm:$0xff] %vm563_vm4, %v595_v25 }
 0x236   :  { %610 = dma.vmem_to_hbm [thread:$0]  %s603_s14, 256, %s605_s17, [#allocation3], %s751_s18, %s751_s18, %s752_s2  }
 0x237   :  { %748 = dma.done.wait [#allocation3], 256  }
 0x238   :  { %749 = vsyncadd [#allocation3], 4294967040 }
 0x239   :  { %615 = vsyncpa [#allocation3], 1 }

</bundles_post_ra>
